<compile_context>
chip_gen: v5e
topology: v5e:2x2
jax: 0.10.0
libtpu: 0.0.40
codegen_flags: <defaults>
</compile_context>

<pallas_src>
import functools

import jax
import jax.numpy as jnp
import numpy as np
from jax.experimental import pallas as pl
from jax.experimental.pallas import tpu as pltpu


# ---------------------------------------------------------------------------
# Fused kernel: one image per grid step, everything channel-major (C, H*W).
# ---------------------------------------------------------------------------
def _density_head_kernel(x_ref,
                         w1a_ref, b1a_ref, w1b_ref, b1b_ref,
                         w3a_ref, b3a_ref, w3b_ref, b3b_ref,
                         w5a_ref, b5a_ref, w5b_ref, b5b_ref,
                         whead_ref, bhead_ref,
                         o_ref,
                         pad3_ref, pad5_ref, col3_ref, col5_ref, obuf_ref,
                         *, H, W, C, Ch):
    HW = H * W
    x = x_ref[0]                                  # (C, HW) f32
    x_bf = x.astype(jnp.bfloat16)

    def conv1x1(w_ref, b_ref, inp_bf):
        # (Cout, Cin) @ (Cin, HW) on the MXU, f32 accumulate, fused bias + ReLU.
        y = jnp.dot(w_ref[...], inp_bf, preferred_element_type=jnp.float32)
        return jnp.maximum(y + b_ref[...], 0.0)

    # ---- branch 1: 1x1 -> 1x1 ------------------------------------------------
    t1 = conv1x1(w1a_ref, b1a_ref, x_bf)                        # (Ch, HW)
    b1 = conv1x1(w1b_ref, b1b_ref, t1.astype(jnp.bfloat16))     # (C,  HW)

    # ---- branches 2/3: 1x1 -> KxK, "same" padding done in VMEM ----------------
    def spatial_branch(wa_ref, ba_ref, wb_ref, bb_ref, pad_ref, col_ref, K):
        p = (K - 1) // 2
        Wp = W + 2 * p                           # padded row stride
        L = (H - 1) * Wp + W                     # flat span covering all outputs

        t = conv1x1(wa_ref, ba_ref, x_bf)        # (Ch, HW)

        # Zero-padded image stored flat as (Ch, (H+2p)*(W+2p)); rows are copied
        # with lane-slices only, so no layout-changing reshape is required.
        pad_ref[...] = jnp.zeros_like(pad_ref)
        for h in range(H):
            dst = (h + p) * Wp + p
            pad_ref[:, dst:dst + W] = t[:, h * W:(h + 1) * W]

        # im2col: tap (kh, kw) is a contiguous lane-slice of the flat padded
        # buffer at offset kh*Wp + kw.  Rows land in VMEM scratch so a single
        # deep (Cout, K*K*Ch) @ (K*K*Ch, L) MXU matmul performs the conv.
        for kh in range(K):
            for kw in range(K):
                r = (kh * K + kw) * Ch
                off = kh * Wp + kw
                col_ref[r:r + Ch, :] = pad_ref[:, off:off + L]

        y = jnp.dot(wb_ref[...], col_ref[...].astype(jnp.bfloat16),
                    preferred_element_type=jnp.float32)          # (C, L)

        # Drop the Wp-stride padding columns -> compact (C, HW), bias + ReLU.
        for h in range(H):
            obuf_ref[:, h * W:(h + 1) * W] = y[:, h * Wp:h * Wp + W]
        return jnp.maximum(obuf_ref[...] + bb_ref[...], 0.0)     # (C, HW)

    b3 = spatial_branch(w3a_ref, b3a_ref, w3b_ref, b3b_ref, pad3_ref, col3_ref, 3)
    b5 = spatial_branch(w5a_ref, b5a_ref, w5b_ref, b5b_ref, pad5_ref, col5_ref, 5)

    # ---- final 1x1 head: concat([b1, b3, b5, x]) -> 1 channel -----------------
    # Cout=1 is pathological MXU utilization; do a VPU weighted channel
    # reduction instead, with a lane-dense (1, HW) result.
    head = (jnp.sum(b1 * whead_ref[0 * C:1 * C, :], axis=0, keepdims=True)
            + jnp.sum(b3 * whead_ref[1 * C:2 * C, :], axis=0, keepdims=True)
            + jnp.sum(b5 * whead_ref[2 * C:3 * C, :], axis=0, keepdims=True)
            + jnp.sum(x * whead_ref[3 * C:4 * C, :], axis=0, keepdims=True)
            + bhead_ref[...])
    o_ref[...] = jnp.maximum(head, 0.0).reshape(1, 1, HW)


# ---------------------------------------------------------------------------
# Host-side weight folding (BN scale folded into conv weights, cast to bf16).
# ---------------------------------------------------------------------------
def _fold_1x1(w, scale):
    # (1,1,Cin,Cout) conv weight + per-channel scale -> (Cout, Cin) bf16.
    ws = w[0, 0] * scale[None, :]
    return jnp.transpose(ws, (1, 0)).astype(jnp.bfloat16)


def _fold_kxk(w, scale):
    # (K,K,Cin,Cout) conv weight + scale -> (Cout, K*K*Cin) bf16 im2col weight,
    # row order (kh, kw, cin) matching the kernel's im2col assembly.
    ws = w * scale[None, None, None, :]
    cout = w.shape[-1]
    return jnp.transpose(ws, (3, 0, 1, 2)).reshape(cout, -1).astype(jnp.bfloat16)


@jax.jit
def density_head_block(x_nchw, params):
    N, C, H, W = x_nchw.shape
    Ch = C // 2
    HW = H * W
    x_flat = x_nchw.reshape(N, C, HW).astype(jnp.float32)   # NCHW, pixels in lanes

    w1a_, s, b = params["b1x1"];      w1a = _fold_1x1(w1a_, s); b1a = b.reshape(-1, 1)
    w1b_, s, b = params["b1x1_1"];    w1b = _fold_1x1(w1b_, s); b1b = b.reshape(-1, 1)
    w3a_, s, b = params["b3x3_1"];    w3a = _fold_1x1(w3a_, s); b3a = b.reshape(-1, 1)
    w3b_, s, b = params["b3x3_2"];    w3b = _fold_kxk(w3b_, s); b3b = b.reshape(-1, 1)
    w5a_, s, b = params["b3x3dbl_1"]; w5a = _fold_1x1(w5a_, s); b5a = b.reshape(-1, 1)
    w5b_, s, b = params["b3x3dbl_2"]; w5b = _fold_kxk(w5b_, s); b5b = b.reshape(-1, 1)
    wh_, sh, bh = params["final"]
    w_head = (wh_[0, 0, :, 0] * sh).reshape(-1, 1).astype(jnp.float32)   # (4C, 1)
    b_head = bh.reshape(1, 1).astype(jnp.float32)

    operands = [x_flat,
                w1a, b1a, w1b, b1b,
                w3a, b3a, w3b, b3b,
                w5a, b5a, w5b, b5b,
                w_head, b_head]

    in_specs = [pl.BlockSpec((1, C, HW), lambda n: (n, 0, 0))]
    in_specs += [pl.BlockSpec(a.shape, lambda n: (0, 0)) for a in operands[1:]]

    L3 = (H - 1) * (W + 2) + W
    L5 = (H - 1) * (W + 4) + W
    kernel = functools.partial(_density_head_kernel, H=H, W=W, C=C, Ch=Ch)

    out = pl.pallas_call(
        kernel,
        out_shape=jax.ShapeDtypeStruct((N, 1, HW), jnp.float32),
        grid_spec=pltpu.PrefetchScalarGridSpec(
            num_scalar_prefetch=0,
            grid=(N,),
            in_specs=in_specs,
            out_specs=pl.BlockSpec((1, 1, HW), lambda n: (n, 0, 0)),
            scratch_shapes=[
                pltpu.VMEM((Ch, (H + 2) * (W + 2)), jnp.float32),   # flat pad, 3x3
                pltpu.VMEM((Ch, (H + 4) * (W + 4)), jnp.float32),   # flat pad, 5x5
                pltpu.VMEM((9 * Ch, L3), jnp.float32),              # im2col, 3x3
                pltpu.VMEM((25 * Ch, L5), jnp.float32),             # im2col, 5x5
                pltpu.VMEM((C, HW), jnp.float32),                   # branch out buffer
            ]),
        compiler_params=pltpu.CompilerParams(
            dimension_semantics=("parallel",)),
    )(*operands)
    return out.reshape(N, 1, H, W)


# ---------------------------------------------------------------------------
# Deterministic parameter init (synthetic; mirrors the PyTorch module shapes).
# ---------------------------------------------------------------------------
def init_params(key, in_branch):
    C = in_branch
    Ch = C // 2
    eps = 1e-3

    def conv_w(k, cout, cin, ks):
        fan_in = cin * ks * ks
        return jax.random.normal(k, (ks, ks, cin, cout), jnp.float32) / np.sqrt(fan_in)

    def bn(k, c):
        k1, k2, k3, k4 = jax.random.split(k, 4)
        gamma = 1.0 + 0.1 * jax.random.normal(k1, (c,), jnp.float32)
        beta = 0.1 * jax.random.normal(k2, (c,), jnp.float32)
        mean = 0.1 * jax.random.normal(k3, (c,), jnp.float32)
        var = jnp.abs(jax.random.normal(k4, (c,), jnp.float32)) + 0.5
        scale = gamma / jnp.sqrt(var + eps)
        bias = beta - mean * scale
        return scale, bias

    keys = jax.random.split(key, 16)
    p = {}
    p["b1x1"]      = (conv_w(keys[0],  Ch, C,  1),) + bn(keys[1],  Ch)
    p["b1x1_1"]    = (conv_w(keys[2],  C,  Ch, 1),) + bn(keys[3],  C)
    p["b3x3_1"]    = (conv_w(keys[4],  Ch, C,  1),) + bn(keys[5],  Ch)
    p["b3x3_2"]    = (conv_w(keys[6],  C,  Ch, 3),) + bn(keys[7],  C)
    p["b3x3dbl_1"] = (conv_w(keys[8],  Ch, C,  1),) + bn(keys[9],  Ch)
    p["b3x3dbl_2"] = (conv_w(keys[10], C,  Ch, 5),) + bn(keys[11], C)
    w_final = conv_w(keys[12], 1, 4 * C, 1)                       # Conv2d(in_conv, 1, 1)
    b_final = 0.1 * jax.random.normal(keys[13], (1,), jnp.float32)
    p["final"] = (w_final, jnp.ones((1,), jnp.float32), b_final)  # scale=1, bias=conv bias
    return p


# ---------------------------------------------------------------------------
# Pure-JAX reference (lax.conv) mirroring the kernel's bf16-matmul numerics.
# ---------------------------------------------------------------------------
def _ref_conv(x_nhwc, w, scale, bias, pad):
    ws = (w * scale.reshape(1, 1, 1, -1)).astype(jnp.bfloat16)
    y = jax.lax.conv_general_dilated(
        x_nhwc.astype(jnp.bfloat16), ws, window_strides=(1, 1),
        padding=[(pad, pad), (pad, pad)],
        dimension_numbers=("NHWC", "HWIO", "NHWC"),
        preferred_element_type=jnp.float32)
    return jnp.maximum(y + bias.reshape(1, 1, 1, -1), 0.0)


def density_head_block_ref(x_nchw, params):
    x = jnp.transpose(x_nchw, (0, 2, 3, 1)).astype(jnp.float32)   # NCHW -> NHWC
    w, s, b = params["b1x1"];      b1 = _ref_conv(x,  w, s, b, 0)
    w, s, b = params["b1x1_1"];    b1 = _ref_conv(b1, w, s, b, 0)
    w, s, b = params["b3x3_1"];    b3 = _ref_conv(x,  w, s, b, 0)
    w, s, b = params["b3x3_2"];    b3 = _ref_conv(b3, w, s, b, 1)
    w, s, b = params["b3x3dbl_1"]; b5 = _ref_conv(x,  w, s, b, 0)
    w, s, b = params["b3x3dbl_2"]; b5 = _ref_conv(b5, w, s, b, 2)
    cat = jnp.concatenate([b1, b3, b5, x], axis=-1)               # (N, H, W, 4C)
    wh, sh, bh = params["final"]
    wvec = (wh[0, 0, :, 0] * sh).reshape(1, 1, 1, -1)
    head = jnp.sum(cat * wvec, axis=-1, keepdims=True) + bh.reshape(1, 1, 1, 1)
    head = jnp.maximum(head, 0.0)                                 # Conv2d default NL='relu'
    return jnp.transpose(head, (0, 3, 1, 2))                      # -> (N, 1, H, W)


if __name__ == "__main__":
    key = jax.random.PRNGKey(0)
    k_x, k_p = jax.random.split(key)

    # in_branch=4 -> MultiBranchModule output channels = 4*4 = 16 = in_conv
    in_branch = 4
    N, H, W = 2, 16, 16
    x = jax.random.normal(k_x, (N, in_branch, H, W), jnp.float32)   # NCHW
    params = init_params(k_p, in_branch)

    out = jax.block_until_ready(density_head_block(x, params))
    ref = jax.block_until_ready(density_head_block_ref(x, params))

    assert out.shape == (N, 1, H, W), out.shape
    np.testing.assert_allclose(np.asarray(out), np.asarray(ref),
                               rtol=2e-3, atol=2e-3)
    print("KERNEL_OK")
</pallas_src>

<mosaic_0001>
module attributes {stable_mosaic.version = 11 : i64} {
  func.func @_density_head_kernel(%arg0: i32, %arg1: memref<1x4x256xf32, #tpu.memory_space<vmem>>, %arg2: memref<2x4xbf16, #tpu.memory_space<vmem>>, %arg3: memref<2x1xf32, #tpu.memory_space<vmem>>, %arg4: memref<4x2xbf16, #tpu.memory_space<vmem>>, %arg5: memref<4x1xf32, #tpu.memory_space<vmem>>, %arg6: memref<2x4xbf16, #tpu.memory_space<vmem>>, %arg7: memref<2x1xf32, #tpu.memory_space<vmem>>, %arg8: memref<4x18xbf16, #tpu.memory_space<vmem>>, %arg9: memref<4x1xf32, #tpu.memory_space<vmem>>, %arg10: memref<2x4xbf16, #tpu.memory_space<vmem>>, %arg11: memref<2x1xf32, #tpu.memory_space<vmem>>, %arg12: memref<4x50xbf16, #tpu.memory_space<vmem>>, %arg13: memref<4x1xf32, #tpu.memory_space<vmem>>, %arg14: memref<16x1xf32, #tpu.memory_space<vmem>>, %arg15: memref<1x1xf32, #tpu.memory_space<vmem>>, %arg16: memref<1x1x256xf32, #tpu.memory_space<vmem>>, %arg17: memref<2x324xf32, #tpu.memory_space<vmem>>, %arg18: memref<2x400xf32, #tpu.memory_space<vmem>>, %arg19: memref<18x286xf32, #tpu.memory_space<vmem>>, %arg20: memref<50x316xf32, #tpu.memory_space<vmem>>, %arg21: memref<4x256xf32, #tpu.memory_space<vmem>>) attributes {dimension_semantics = [#tpu.dimension_semantics<parallel>], iteration_bounds = array<i64: 2>, scalar_prefetch = 0 : i64, scratch_operands = 5 : i64, tpu.core_type = #tpu.core_type<tc>, window_params = [{transform_indices = @transform_0, window_bounds = array<i64: 1, 4, 256>}, {pipeline_mode = #tpu.pipeline_mode<synchronous>, transform_indices = @transform_1, window_bounds = array<i64: 2, 4>}, {pipeline_mode = #tpu.pipeline_mode<synchronous>, transform_indices = @transform_2, window_bounds = array<i64: 2, 1>}, {pipeline_mode = #tpu.pipeline_mode<synchronous>, transform_indices = @transform_3, window_bounds = array<i64: 4, 2>}, {pipeline_mode = #tpu.pipeline_mode<synchronous>, transform_indices = @transform_4, window_bounds = array<i64: 4, 1>}, {pipeline_mode = #tpu.pipeline_mode<synchronous>, transform_indices = @transform_5, window_bounds = array<i64: 2, 4>}, {pipeline_mode = #tpu.pipeline_mode<synchronous>, transform_indices = @transform_6, window_bounds = array<i64: 2, 1>}, {pipeline_mode = #tpu.pipeline_mode<synchronous>, transform_indices = @transform_7, window_bounds = array<i64: 4, 18>}, {pipeline_mode = #tpu.pipeline_mode<synchronous>, transform_indices = @transform_8, window_bounds = array<i64: 4, 1>}, {pipeline_mode = #tpu.pipeline_mode<synchronous>, transform_indices = @transform_9, window_bounds = array<i64: 2, 4>}, {pipeline_mode = #tpu.pipeline_mode<synchronous>, transform_indices = @transform_10, window_bounds = array<i64: 2, 1>}, {pipeline_mode = #tpu.pipeline_mode<synchronous>, transform_indices = @transform_11, window_bounds = array<i64: 4, 50>}, {pipeline_mode = #tpu.pipeline_mode<synchronous>, transform_indices = @transform_12, window_bounds = array<i64: 4, 1>}, {pipeline_mode = #tpu.pipeline_mode<synchronous>, transform_indices = @transform_13, window_bounds = array<i64: 16, 1>}, {pipeline_mode = #tpu.pipeline_mode<synchronous>, transform_indices = @transform_14, window_bounds = array<i64: 1, 1>}, {transform_indices = @transform_15, window_bounds = array<i64: 1, 1, 256>}]} {
    %c0 = arith.constant 0 : index
    %c0_0 = arith.constant 0 : index
    %c0_1 = arith.constant 0 : index
    %0 = vector.load %arg1[%c0, %c0_0, %c0_1] : memref<1x4x256xf32, #tpu.memory_space<vmem>>, vector<1x4x256xf32>
    %1 = vector.shape_cast %0 : vector<1x4x256xf32> to vector<4x256xf32>
    %2 = arith.truncf %1 : vector<4x256xf32> to vector<4x256xbf16>
    %c0_2 = arith.constant 0 : index
    %c0_3 = arith.constant 0 : index
    %3 = vector.load %arg2[%c0_2, %c0_3] : memref<2x4xbf16, #tpu.memory_space<vmem>>, vector<2x4xbf16>
    %cst = arith.constant dense<0.000000e+00> : vector<2x256xf32>
    %4 = tpu.matmul %3, %2, %cst {dimension_numbers = #tpu.dot_dimension_numbers<[1], [0], [0], [1], [0, 0, 1, 1], [], []>} : vector<2x4xbf16>, vector<4x256xbf16>, vector<2x256xf32> -> vector<2x256xf32>
    %c0_4 = arith.constant 0 : index
    %c0_5 = arith.constant 0 : index
    %5 = vector.load %arg3[%c0_4, %c0_5] : memref<2x1xf32, #tpu.memory_space<vmem>>, vector<2x1xf32>
    %6 = vector.broadcast %5 : vector<2x1xf32> to vector<2x256xf32>
    %7 = arith.addf %4, %6 : vector<2x256xf32>
    %cst_6 = arith.constant 0.000000e+00 : f32
    %8 = vector.broadcast %cst_6 : f32 to vector<2x256xf32>
    %9 = arith.maximumf %7, %8 : vector<2x256xf32>
    %10 = arith.truncf %9 : vector<2x256xf32> to vector<2x256xbf16>
    %c0_7 = arith.constant 0 : index
    %c0_8 = arith.constant 0 : index
    %11 = vector.load %arg4[%c0_7, %c0_8] : memref<4x2xbf16, #tpu.memory_space<vmem>>, vector<4x2xbf16>
    %cst_9 = arith.constant dense<0.000000e+00> : vector<4x256xf32>
    %12 = tpu.matmul %11, %10, %cst_9 {dimension_numbers = #tpu.dot_dimension_numbers<[1], [0], [0], [1], [0, 0, 1, 1], [], []>} : vector<4x2xbf16>, vector<2x256xbf16>, vector<4x256xf32> -> vector<4x256xf32>
    %c0_10 = arith.constant 0 : index
    %c0_11 = arith.constant 0 : index
    %13 = vector.load %arg5[%c0_10, %c0_11] : memref<4x1xf32, #tpu.memory_space<vmem>>, vector<4x1xf32>
    %14 = vector.broadcast %13 : vector<4x1xf32> to vector<4x256xf32>
    %15 = arith.addf %12, %14 : vector<4x256xf32>
    %cst_12 = arith.constant 0.000000e+00 : f32
    %16 = vector.broadcast %cst_12 : f32 to vector<4x256xf32>
    %17 = arith.maximumf %15, %16 : vector<4x256xf32>
    %c0_13 = arith.constant 0 : index
    %c0_14 = arith.constant 0 : index
    %18 = vector.load %arg6[%c0_13, %c0_14] : memref<2x4xbf16, #tpu.memory_space<vmem>>, vector<2x4xbf16>
    %cst_15 = arith.constant dense<0.000000e+00> : vector<2x256xf32>
    %19 = tpu.matmul %18, %2, %cst_15 {dimension_numbers = #tpu.dot_dimension_numbers<[1], [0], [0], [1], [0, 0, 1, 1], [], []>} : vector<2x4xbf16>, vector<4x256xbf16>, vector<2x256xf32> -> vector<2x256xf32>
    %c0_16 = arith.constant 0 : index
    %c0_17 = arith.constant 0 : index
    %20 = vector.load %arg7[%c0_16, %c0_17] : memref<2x1xf32, #tpu.memory_space<vmem>>, vector<2x1xf32>
    %21 = vector.broadcast %20 : vector<2x1xf32> to vector<2x256xf32>
    %22 = arith.addf %19, %21 : vector<2x256xf32>
    %cst_18 = arith.constant 0.000000e+00 : f32
    %23 = vector.broadcast %cst_18 : f32 to vector<2x256xf32>
    %24 = arith.maximumf %22, %23 : vector<2x256xf32>
    %cst_19 = arith.constant 0.000000e+00 : f32
    %25 = vector.broadcast %cst_19 : f32 to vector<2x324xf32>
    %c0_20 = arith.constant 0 : index
    %c0_21 = arith.constant 0 : index
    %26 = vector.load %arg17[%c0_20, %c0_21] : memref<2x324xf32, #tpu.memory_space<vmem>>, vector<2x324xf32>
    tpu.vector_store %arg17[%c0_20, %c0_21], %25 {strides = array<i32>} : memref<2x324xf32, #tpu.memory_space<vmem>>, vector<2x324xf32>,
    %27 = vector.extract_strided_slice %24 {offsets = [0, 0], sizes = [2, 16], strides = [1, 1]} : vector<2x256xf32> to vector<2x16xf32>
    %c0_22 = arith.constant 0 : index
    %c19 = arith.constant 19 : index
    %28 = vector.load %arg17[%c0_22, %c19] : memref<2x324xf32, #tpu.memory_space<vmem>>, vector<2x16xf32>
    tpu.vector_store %arg17[%c0_22, %c19], %27 {strides = array<i32>} : memref<2x324xf32, #tpu.memory_space<vmem>>, vector<2x16xf32>,
    %29 = vector.extract_strided_slice %24 {offsets = [0, 16], sizes = [2, 16], strides = [1, 1]} : vector<2x256xf32> to vector<2x16xf32>
    %c0_23 = arith.constant 0 : index
    %c37 = arith.constant 37 : index
    %30 = vector.load %arg17[%c0_23, %c37] : memref<2x324xf32, #tpu.memory_space<vmem>>, vector<2x16xf32>
    tpu.vector_store %arg17[%c0_23, %c37], %29 {strides = array<i32>} : memref<2x324xf32, #tpu.memory_space<vmem>>, vector<2x16xf32>,
    %31 = vector.extract_strided_slice %24 {offsets = [0, 32], sizes = [2, 16], strides = [1, 1]} : vector<2x256xf32> to vector<2x16xf32>
    %c0_24 = arith.constant 0 : index
    %c55 = arith.constant 55 : index
    %32 = vector.load %arg17[%c0_24, %c55] : memref<2x324xf32, #tpu.memory_space<vmem>>, vector<2x16xf32>
    tpu.vector_store %arg17[%c0_24, %c55], %31 {strides = array<i32>} : memref<2x324xf32, #tpu.memory_space<vmem>>, vector<2x16xf32>,
    %33 = vector.extract_strided_slice %24 {offsets = [0, 48], sizes = [2, 16], strides = [1, 1]} : vector<2x256xf32> to vector<2x16xf32>
    %c0_25 = arith.constant 0 : index
    %c73 = arith.constant 73 : index
    %34 = vector.load %arg17[%c0_25, %c73] : memref<2x324xf32, #tpu.memory_space<vmem>>, vector<2x16xf32>
    tpu.vector_store %arg17[%c0_25, %c73], %33 {strides = array<i32>} : memref<2x324xf32, #tpu.memory_space<vmem>>, vector<2x16xf32>,
    %35 = vector.extract_strided_slice %24 {offsets = [0, 64], sizes = [2, 16], strides = [1, 1]} : vector<2x256xf32> to vector<2x16xf32>
    %c0_26 = arith.constant 0 : index
    %c91 = arith.constant 91 : index
    %36 = vector.load %arg17[%c0_26, %c91] : memref<2x324xf32, #tpu.memory_space<vmem>>, vector<2x16xf32>
    tpu.vector_store %arg17[%c0_26, %c91], %35 {strides = array<i32>} : memref<2x324xf32, #tpu.memory_space<vmem>>, vector<2x16xf32>,
    %37 = vector.extract_strided_slice %24 {offsets = [0, 80], sizes = [2, 16], strides = [1, 1]} : vector<2x256xf32> to vector<2x16xf32>
    %c0_27 = arith.constant 0 : index
    %c109 = arith.constant 109 : index
    %38 = vector.load %arg17[%c0_27, %c109] : memref<2x324xf32, #tpu.memory_space<vmem>>, vector<2x16xf32>
    tpu.vector_store %arg17[%c0_27, %c109], %37 {strides = array<i32>} : memref<2x324xf32, #tpu.memory_space<vmem>>, vector<2x16xf32>,
    %39 = vector.extract_strided_slice %24 {offsets = [0, 96], sizes = [2, 16], strides = [1, 1]} : vector<2x256xf32> to vector<2x16xf32>
    %c0_28 = arith.constant 0 : index
    %c127 = arith.constant 127 : index
    %40 = vector.load %arg17[%c0_28, %c127] : memref<2x324xf32, #tpu.memory_space<vmem>>, vector<2x16xf32>
    tpu.vector_store %arg17[%c0_28, %c127], %39 {strides = array<i32>} : memref<2x324xf32, #tpu.memory_space<vmem>>, vector<2x16xf32>,
    %41 = vector.extract_strided_slice %24 {offsets = [0, 112], sizes = [2, 16], strides = [1, 1]} : vector<2x256xf32> to vector<2x16xf32>
    %c0_29 = arith.constant 0 : index
    %c145 = arith.constant 145 : index
    %42 = vector.load %arg17[%c0_29, %c145] : memref<2x324xf32, #tpu.memory_space<vmem>>, vector<2x16xf32>
    tpu.vector_store %arg17[%c0_29, %c145], %41 {strides = array<i32>} : memref<2x324xf32, #tpu.memory_space<vmem>>, vector<2x16xf32>,
    %43 = vector.extract_strided_slice %24 {offsets = [0, 128], sizes = [2, 16], strides = [1, 1]} : vector<2x256xf32> to vector<2x16xf32>
    %c0_30 = arith.constant 0 : index
    %c163 = arith.constant 163 : index
    %44 = vector.load %arg17[%c0_30, %c163] : memref<2x324xf32, #tpu.memory_space<vmem>>, vector<2x16xf32>
    tpu.vector_store %arg17[%c0_30, %c163], %43 {strides = array<i32>} : memref<2x324xf32, #tpu.memory_space<vmem>>, vector<2x16xf32>,
    %45 = vector.extract_strided_slice %24 {offsets = [0, 144], sizes = [2, 16], strides = [1, 1]} : vector<2x256xf32> to vector<2x16xf32>
    %c0_31 = arith.constant 0 : index
    %c181 = arith.constant 181 : index
    %46 = vector.load %arg17[%c0_31, %c181] : memref<2x324xf32, #tpu.memory_space<vmem>>, vector<2x16xf32>
    tpu.vector_store %arg17[%c0_31, %c181], %45 {strides = array<i32>} : memref<2x324xf32, #tpu.memory_space<vmem>>, vector<2x16xf32>,
    %47 = vector.extract_strided_slice %24 {offsets = [0, 160], sizes = [2, 16], strides = [1, 1]} : vector<2x256xf32> to vector<2x16xf32>
    %c0_32 = arith.constant 0 : index
    %c199 = arith.constant 199 : index
    %48 = vector.load %arg17[%c0_32, %c199] : memref<2x324xf32, #tpu.memory_space<vmem>>, vector<2x16xf32>
    tpu.vector_store %arg17[%c0_32, %c199], %47 {strides = array<i32>} : memref<2x324xf32, #tpu.memory_space<vmem>>, vector<2x16xf32>,
    %49 = vector.extract_strided_slice %24 {offsets = [0, 176], sizes = [2, 16], strides = [1, 1]} : vector<2x256xf32> to vector<2x16xf32>
    %c0_33 = arith.constant 0 : index
    %c217 = arith.constant 217 : index
    %50 = vector.load %arg17[%c0_33, %c217] : memref<2x324xf32, #tpu.memory_space<vmem>>, vector<2x16xf32>
    tpu.vector_store %arg17[%c0_33, %c217], %49 {strides = array<i32>} : memref<2x324xf32, #tpu.memory_space<vmem>>, vector<2x16xf32>,
    %51 = vector.extract_strided_slice %24 {offsets = [0, 192], sizes = [2, 16], strides = [1, 1]} : vector<2x256xf32> to vector<2x16xf32>
    %c0_34 = arith.constant 0 : index
    %c235 = arith.constant 235 : index
    %52 = vector.load %arg17[%c0_34, %c235] : memref<2x324xf32, #tpu.memory_space<vmem>>, vector<2x16xf32>
    tpu.vector_store %arg17[%c0_34, %c235], %51 {strides = array<i32>} : memref<2x324xf32, #tpu.memory_space<vmem>>, vector<2x16xf32>,
    %53 = vector.extract_strided_slice %24 {offsets = [0, 208], sizes = [2, 16], strides = [1, 1]} : vector<2x256xf32> to vector<2x16xf32>
    %c0_35 = arith.constant 0 : index
    %c253 = arith.constant 253 : index
    %54 = vector.load %arg17[%c0_35, %c253] : memref<2x324xf32, #tpu.memory_space<vmem>>, vector<2x16xf32>
    tpu.vector_store %arg17[%c0_35, %c253], %53 {strides = array<i32>} : memref<2x324xf32, #tpu.memory_space<vmem>>, vector<2x16xf32>,
    %55 = vector.extract_strided_slice %24 {offsets = [0, 224], sizes = [2, 16], strides = [1, 1]} : vector<2x256xf32> to vector<2x16xf32>
    %c0_36 = arith.constant 0 : index
    %c271 = arith.constant 271 : index
    %56 = vector.load %arg17[%c0_36, %c271] : memref<2x324xf32, #tpu.memory_space<vmem>>, vector<2x16xf32>
    tpu.vector_store %arg17[%c0_36, %c271], %55 {strides = array<i32>} : memref<2x324xf32, #tpu.memory_space<vmem>>, vector<2x16xf32>,
    %57 = vector.extract_strided_slice %24 {offsets = [0, 240], sizes = [2, 16], strides = [1, 1]} : vector<2x256xf32> to vector<2x16xf32>
    %c0_37 = arith.constant 0 : index
    %c289 = arith.constant 289 : index
    %58 = vector.load %arg17[%c0_37, %c289] : memref<2x324xf32, #tpu.memory_space<vmem>>, vector<2x16xf32>
    tpu.vector_store %arg17[%c0_37, %c289], %57 {strides = array<i32>} : memref<2x324xf32, #tpu.memory_space<vmem>>, vector<2x16xf32>,
    %c0_38 = arith.constant 0 : index
    %c0_39 = arith.constant 0 : index
    %59 = vector.load %arg17[%c0_38, %c0_39] : memref<2x324xf32, #tpu.memory_space<vmem>>, vector<2x286xf32>
    %c0_40 = arith.constant 0 : index
    %c0_41 = arith.constant 0 : index
    %60 = vector.load %arg19[%c0_40, %c0_41] : memref<18x286xf32, #tpu.memory_space<vmem>>, vector<2x286xf32>
    tpu.vector_store %arg19[%c0_40, %c0_41], %59 {strides = array<i32>} : memref<18x286xf32, #tpu.memory_space<vmem>>, vector<2x286xf32>,
    %c0_42 = arith.constant 0 : index
    %c1 = arith.constant 1 : index
    %61 = vector.load %arg17[%c0_42, %c1] : memref<2x324xf32, #tpu.memory_space<vmem>>, vector<2x286xf32>
    %c2 = arith.constant 2 : index
    %c0_43 = arith.constant 0 : index
    %62 = vector.load %arg19[%c2, %c0_43] : memref<18x286xf32, #tpu.memory_space<vmem>>, vector<2x286xf32>
    tpu.vector_store %arg19[%c2, %c0_43], %61 {strides = array<i32>} : memref<18x286xf32, #tpu.memory_space<vmem>>, vector<2x286xf32>,
    %c0_44 = arith.constant 0 : index
    %c2_45 = arith.constant 2 : index
    %63 = vector.load %arg17[%c0_44, %c2_45] : memref<2x324xf32, #tpu.memory_space<vmem>>, vector<2x286xf32>
    %c4 = arith.constant 4 : index
    %c0_46 = arith.constant 0 : index
    %64 = vector.load %arg19[%c4, %c0_46] : memref<18x286xf32, #tpu.memory_space<vmem>>, vector<2x286xf32>
    tpu.vector_store %arg19[%c4, %c0_46], %63 {strides = array<i32>} : memref<18x286xf32, #tpu.memory_space<vmem>>, vector<2x286xf32>,
    %c0_47 = arith.constant 0 : index
    %c18 = arith.constant 18 : index
    %65 = vector.load %arg17[%c0_47, %c18] : memref<2x324xf32, #tpu.memory_space<vmem>>, vector<2x286xf32>
    %c6 = arith.constant 6 : index
    %c0_48 = arith.constant 0 : index
    %66 = vector.load %arg19[%c6, %c0_48] : memref<18x286xf32, #tpu.memory_space<vmem>>, vector<2x286xf32>
    tpu.vector_store %arg19[%c6, %c0_48], %65 {strides = array<i32>} : memref<18x286xf32, #tpu.memory_space<vmem>>, vector<2x286xf32>,
    %c0_49 = arith.constant 0 : index
    %c19_50 = arith.constant 19 : index
    %67 = vector.load %arg17[%c0_49, %c19_50] : memref<2x324xf32, #tpu.memory_space<vmem>>, vector<2x286xf32>
    %c8 = arith.constant 8 : index
    %c0_51 = arith.constant 0 : index
    %68 = vector.load %arg19[%c8, %c0_51] : memref<18x286xf32, #tpu.memory_space<vmem>>, vector<2x286xf32>
    tpu.vector_store %arg19[%c8, %c0_51], %67 {strides = array<i32>} : memref<18x286xf32, #tpu.memory_space<vmem>>, vector<2x286xf32>,
    %c0_52 = arith.constant 0 : index
    %c20 = arith.constant 20 : index
    %69 = vector.load %arg17[%c0_52, %c20] : memref<2x324xf32, #tpu.memory_space<vmem>>, vector<2x286xf32>
    %c10 = arith.constant 10 : index
    %c0_53 = arith.constant 0 : index
    %70 = vector.load %arg19[%c10, %c0_53] : memref<18x286xf32, #tpu.memory_space<vmem>>, vector<2x286xf32>
    tpu.vector_store %arg19[%c10, %c0_53], %69 {strides = array<i32>} : memref<18x286xf32, #tpu.memory_space<vmem>>, vector<2x286xf32>,
    %c0_54 = arith.constant 0 : index
    %c36 = arith.constant 36 : index
    %71 = vector.load %arg17[%c0_54, %c36] : memref<2x324xf32, #tpu.memory_space<vmem>>, vector<2x286xf32>
    %c12 = arith.constant 12 : index
    %c0_55 = arith.constant 0 : index
    %72 = vector.load %arg19[%c12, %c0_55] : memref<18x286xf32, #tpu.memory_space<vmem>>, vector<2x286xf32>
    tpu.vector_store %arg19[%c12, %c0_55], %71 {strides = array<i32>} : memref<18x286xf32, #tpu.memory_space<vmem>>, vector<2x286xf32>,
    %c0_56 = arith.constant 0 : index
    %c37_57 = arith.constant 37 : index
    %73 = vector.load %arg17[%c0_56, %c37_57] : memref<2x324xf32, #tpu.memory_space<vmem>>, vector<2x286xf32>
    %c14 = arith.constant 14 : index
    %c0_58 = arith.constant 0 : index
    %74 = vector.load %arg19[%c14, %c0_58] : memref<18x286xf32, #tpu.memory_space<vmem>>, vector<2x286xf32>
    tpu.vector_store %arg19[%c14, %c0_58], %73 {strides = array<i32>} : memref<18x286xf32, #tpu.memory_space<vmem>>, vector<2x286xf32>,
    %c0_59 = arith.constant 0 : index
    %c38 = arith.constant 38 : index
    %75 = vector.load %arg17[%c0_59, %c38] : memref<2x324xf32, #tpu.memory_space<vmem>>, vector<2x286xf32>
    %c16 = arith.constant 16 : index
    %c0_60 = arith.constant 0 : index
    %76 = vector.load %arg19[%c16, %c0_60] : memref<18x286xf32, #tpu.memory_space<vmem>>, vector<2x286xf32>
    tpu.vector_store %arg19[%c16, %c0_60], %75 {strides = array<i32>} : memref<18x286xf32, #tpu.memory_space<vmem>>, vector<2x286xf32>,
    %c0_61 = arith.constant 0 : index
    %c0_62 = arith.constant 0 : index
    %77 = vector.load %arg8[%c0_61, %c0_62] : memref<4x18xbf16, #tpu.memory_space<vmem>>, vector<4x18xbf16>
    %c0_63 = arith.constant 0 : index
    %c0_64 = arith.constant 0 : index
    %78 = vector.load %arg19[%c0_63, %c0_64] : memref<18x286xf32, #tpu.memory_space<vmem>>, vector<18x286xf32>
    %79 = arith.truncf %78 : vector<18x286xf32> to vector<18x286xbf16>
    %cst_65 = arith.constant dense<0.000000e+00> : vector<4x286xf32>
    %80 = tpu.matmul %77, %79, %cst_65 {dimension_numbers = #tpu.dot_dimension_numbers<[1], [0], [0], [1], [0, 0, 1, 1], [], []>} : vector<4x18xbf16>, vector<18x286xbf16>, vector<4x286xf32> -> vector<4x286xf32>
    %81 = vector.extract_strided_slice %80 {offsets = [0, 0], sizes = [4, 16], strides = [1, 1]} : vector<4x286xf32> to vector<4x16xf32>
    %c0_66 = arith.constant 0 : index
    %c0_67 = arith.constant 0 : index
    %82 = vector.load %arg21[%c0_66, %c0_67] : memref<4x256xf32, #tpu.memory_space<vmem>>, vector<4x16xf32>
    tpu.vector_store %arg21[%c0_66, %c0_67], %81 {strides = array<i32>} : memref<4x256xf32, #tpu.memory_space<vmem>>, vector<4x16xf32>,
    %83 = vector.extract_strided_slice %80 {offsets = [0, 18], sizes = [4, 16], strides = [1, 1]} : vector<4x286xf32> to vector<4x16xf32>
    %c0_68 = arith.constant 0 : index
    %c16_69 = arith.constant 16 : index
    %84 = vector.load %arg21[%c0_68, %c16_69] : memref<4x256xf32, #tpu.memory_space<vmem>>, vector<4x16xf32>
    tpu.vector_store %arg21[%c0_68, %c16_69], %83 {strides = array<i32>} : memref<4x256xf32, #tpu.memory_space<vmem>>, vector<4x16xf32>,
    %85 = vector.extract_strided_slice %80 {offsets = [0, 36], sizes = [4, 16], strides = [1, 1]} : vector<4x286xf32> to vector<4x16xf32>
    %c0_70 = arith.constant 0 : index
    %c32 = arith.constant 32 : index
    %86 = vector.load %arg21[%c0_70, %c32] : memref<4x256xf32, #tpu.memory_space<vmem>>, vector<4x16xf32>
    tpu.vector_store %arg21[%c0_70, %c32], %85 {strides = array<i32>} : memref<4x256xf32, #tpu.memory_space<vmem>>, vector<4x16xf32>,
    %87 = vector.extract_strided_slice %80 {offsets = [0, 54], sizes = [4, 16], strides = [1, 1]} : vector<4x286xf32> to vector<4x16xf32>
    %c0_71 = arith.constant 0 : index
    %c48 = arith.constant 48 : index
    %88 = vector.load %arg21[%c0_71, %c48] : memref<4x256xf32, #tpu.memory_space<vmem>>, vector<4x16xf32>
    tpu.vector_store %arg21[%c0_71, %c48], %87 {strides = array<i32>} : memref<4x256xf32, #tpu.memory_space<vmem>>, vector<4x16xf32>,
    %89 = vector.extract_strided_slice %80 {offsets = [0, 72], sizes = [4, 16], strides = [1, 1]} : vector<4x286xf32> to vector<4x16xf32>
    %c0_72 = arith.constant 0 : index
    %c64 = arith.constant 64 : index
    %90 = vector.load %arg21[%c0_72, %c64] : memref<4x256xf32, #tpu.memory_space<vmem>>, vector<4x16xf32>
    tpu.vector_store %arg21[%c0_72, %c64], %89 {strides = array<i32>} : memref<4x256xf32, #tpu.memory_space<vmem>>, vector<4x16xf32>,
    %91 = vector.extract_strided_slice %80 {offsets = [0, 90], sizes = [4, 16], strides = [1, 1]} : vector<4x286xf32> to vector<4x16xf32>
    %c0_73 = arith.constant 0 : index
    %c80 = arith.constant 80 : index
    %92 = vector.load %arg21[%c0_73, %c80] : memref<4x256xf32, #tpu.memory_space<vmem>>, vector<4x16xf32>
    tpu.vector_store %arg21[%c0_73, %c80], %91 {strides = array<i32>} : memref<4x256xf32, #tpu.memory_space<vmem>>, vector<4x16xf32>,
    %93 = vector.extract_strided_slice %80 {offsets = [0, 108], sizes = [4, 16], strides = [1, 1]} : vector<4x286xf32> to vector<4x16xf32>
    %c0_74 = arith.constant 0 : index
    %c96 = arith.constant 96 : index
    %94 = vector.load %arg21[%c0_74, %c96] : memref<4x256xf32, #tpu.memory_space<vmem>>, vector<4x16xf32>
    tpu.vector_store %arg21[%c0_74, %c96], %93 {strides = array<i32>} : memref<4x256xf32, #tpu.memory_space<vmem>>, vector<4x16xf32>,
    %95 = vector.extract_strided_slice %80 {offsets = [0, 126], sizes = [4, 16], strides = [1, 1]} : vector<4x286xf32> to vector<4x16xf32>
    %c0_75 = arith.constant 0 : index
    %c112 = arith.constant 112 : index
    %96 = vector.load %arg21[%c0_75, %c112] : memref<4x256xf32, #tpu.memory_space<vmem>>, vector<4x16xf32>
    tpu.vector_store %arg21[%c0_75, %c112], %95 {strides = array<i32>} : memref<4x256xf32, #tpu.memory_space<vmem>>, vector<4x16xf32>,
    %97 = vector.extract_strided_slice %80 {offsets = [0, 144], sizes = [4, 16], strides = [1, 1]} : vector<4x286xf32> to vector<4x16xf32>
    %c0_76 = arith.constant 0 : index
    %c128 = arith.constant 128 : index
    %98 = vector.load %arg21[%c0_76, %c128] : memref<4x256xf32, #tpu.memory_space<vmem>>, vector<4x16xf32>
    tpu.vector_store %arg21[%c0_76, %c128], %97 {strides = array<i32>} : memref<4x256xf32, #tpu.memory_space<vmem>>, vector<4x16xf32>,
    %99 = vector.extract_strided_slice %80 {offsets = [0, 162], sizes = [4, 16], strides = [1, 1]} : vector<4x286xf32> to vector<4x16xf32>
    %c0_77 = arith.constant 0 : index
    %c144 = arith.constant 144 : index
    %100 = vector.load %arg21[%c0_77, %c144] : memref<4x256xf32, #tpu.memory_space<vmem>>, vector<4x16xf32>
    tpu.vector_store %arg21[%c0_77, %c144], %99 {strides = array<i32>} : memref<4x256xf32, #tpu.memory_space<vmem>>, vector<4x16xf32>,
    %101 = vector.extract_strided_slice %80 {offsets = [0, 180], sizes = [4, 16], strides = [1, 1]} : vector<4x286xf32> to vector<4x16xf32>
    %c0_78 = arith.constant 0 : index
    %c160 = arith.constant 160 : index
    %102 = vector.load %arg21[%c0_78, %c160] : memref<4x256xf32, #tpu.memory_space<vmem>>, vector<4x16xf32>
    tpu.vector_store %arg21[%c0_78, %c160], %101 {strides = array<i32>} : memref<4x256xf32, #tpu.memory_space<vmem>>, vector<4x16xf32>,
    %103 = vector.extract_strided_slice %80 {offsets = [0, 198], sizes = [4, 16], strides = [1, 1]} : vector<4x286xf32> to vector<4x16xf32>
    %c0_79 = arith.constant 0 : index
    %c176 = arith.constant 176 : index
    %104 = vector.load %arg21[%c0_79, %c176] : memref<4x256xf32, #tpu.memory_space<vmem>>, vector<4x16xf32>
    tpu.vector_store %arg21[%c0_79, %c176], %103 {strides = array<i32>} : memref<4x256xf32, #tpu.memory_space<vmem>>, vector<4x16xf32>,
    %105 = vector.extract_strided_slice %80 {offsets = [0, 216], sizes = [4, 16], strides = [1, 1]} : vector<4x286xf32> to vector<4x16xf32>
    %c0_80 = arith.constant 0 : index
    %c192 = arith.constant 192 : index
    %106 = vector.load %arg21[%c0_80, %c192] : memref<4x256xf32, #tpu.memory_space<vmem>>, vector<4x16xf32>
    tpu.vector_store %arg21[%c0_80, %c192], %105 {strides = array<i32>} : memref<4x256xf32, #tpu.memory_space<vmem>>, vector<4x16xf32>,
    %107 = vector.extract_strided_slice %80 {offsets = [0, 234], sizes = [4, 16], strides = [1, 1]} : vector<4x286xf32> to vector<4x16xf32>
    %c0_81 = arith.constant 0 : index
    %c208 = arith.constant 208 : index
    %108 = vector.load %arg21[%c0_81, %c208] : memref<4x256xf32, #tpu.memory_space<vmem>>, vector<4x16xf32>
    tpu.vector_store %arg21[%c0_81, %c208], %107 {strides = array<i32>} : memref<4x256xf32, #tpu.memory_space<vmem>>, vector<4x16xf32>,
    %109 = vector.extract_strided_slice %80 {offsets = [0, 252], sizes = [4, 16], strides = [1, 1]} : vector<4x286xf32> to vector<4x16xf32>
    %c0_82 = arith.constant 0 : index
    %c224 = arith.constant 224 : index
    %110 = vector.load %arg21[%c0_82, %c224] : memref<4x256xf32, #tpu.memory_space<vmem>>, vector<4x16xf32>
    tpu.vector_store %arg21[%c0_82, %c224], %109 {strides = array<i32>} : memref<4x256xf32, #tpu.memory_space<vmem>>, vector<4x16xf32>,
    %111 = vector.extract_strided_slice %80 {offsets = [0, 270], sizes = [4, 16], strides = [1, 1]} : vector<4x286xf32> to vector<4x16xf32>
    %c0_83 = arith.constant 0 : index
    %c240 = arith.constant 240 : index
    %112 = vector.load %arg21[%c0_83, %c240] : memref<4x256xf32, #tpu.memory_space<vmem>>, vector<4x16xf32>
    tpu.vector_store %arg21[%c0_83, %c240], %111 {strides = array<i32>} : memref<4x256xf32, #tpu.memory_space<vmem>>, vector<4x16xf32>,
    %c0_84 = arith.constant 0 : index
    %c0_85 = arith.constant 0 : index
    %113 = vector.load %arg21[%c0_84, %c0_85] : memref<4x256xf32, #tpu.memory_space<vmem>>, vector<4x256xf32>
    %c0_86 = arith.constant 0 : index
    %c0_87 = arith.constant 0 : index
    %114 = vector.load %arg9[%c0_86, %c0_87] : memref<4x1xf32, #tpu.memory_space<vmem>>, vector<4x1xf32>
    %115 = vector.broadcast %114 : vector<4x1xf32> to vector<4x256xf32>
    %116 = arith.addf %113, %115 : vector<4x256xf32>
    %cst_88 = arith.constant 0.000000e+00 : f32
    %117 = vector.broadcast %cst_88 : f32 to vector<4x256xf32>
    %118 = arith.maximumf %116, %117 : vector<4x256xf32>
    %c0_89 = arith.constant 0 : index
    %c0_90 = arith.constant 0 : index
    %119 = vector.load %arg10[%c0_89, %c0_90] : memref<2x4xbf16, #tpu.memory_space<vmem>>, vector<2x4xbf16>
    %cst_91 = arith.constant dense<0.000000e+00> : vector<2x256xf32>
    %120 = tpu.matmul %119, %2, %cst_91 {dimension_numbers = #tpu.dot_dimension_numbers<[1], [0], [0], [1], [0, 0, 1, 1], [], []>} : vector<2x4xbf16>, vector<4x256xbf16>, vector<2x256xf32> -> vector<2x256xf32>
    %c0_92 = arith.constant 0 : index
    %c0_93 = arith.constant 0 : index
    %121 = vector.load %arg11[%c0_92, %c0_93] : memref<2x1xf32, #tpu.memory_space<vmem>>, vector<2x1xf32>
    %122 = vector.broadcast %121 : vector<2x1xf32> to vector<2x256xf32>
    %123 = arith.addf %120, %122 : vector<2x256xf32>
    %cst_94 = arith.constant 0.000000e+00 : f32
    %124 = vector.broadcast %cst_94 : f32 to vector<2x256xf32>
    %125 = arith.maximumf %123, %124 : vector<2x256xf32>
    %cst_95 = arith.constant 0.000000e+00 : f32
    %126 = vector.broadcast %cst_95 : f32 to vector<2x400xf32>
    %c0_96 = arith.constant 0 : index
    %c0_97 = arith.constant 0 : index
    %127 = vector.load %arg18[%c0_96, %c0_97] : memref<2x400xf32, #tpu.memory_space<vmem>>, vector<2x400xf32>
    tpu.vector_store %arg18[%c0_96, %c0_97], %126 {strides = array<i32>} : memref<2x400xf32, #tpu.memory_space<vmem>>, vector<2x400xf32>,
    %128 = vector.extract_strided_slice %125 {offsets = [0, 0], sizes = [2, 16], strides = [1, 1]} : vector<2x256xf32> to vector<2x16xf32>
    %c0_98 = arith.constant 0 : index
    %c42 = arith.constant 42 : index
    %129 = vector.load %arg18[%c0_98, %c42] : memref<2x400xf32, #tpu.memory_space<vmem>>, vector<2x16xf32>
    tpu.vector_store %arg18[%c0_98, %c42], %128 {strides = array<i32>} : memref<2x400xf32, #tpu.memory_space<vmem>>, vector<2x16xf32>,
    %130 = vector.extract_strided_slice %125 {offsets = [0, 16], sizes = [2, 16], strides = [1, 1]} : vector<2x256xf32> to vector<2x16xf32>
    %c0_99 = arith.constant 0 : index
    %c62 = arith.constant 62 : index
    %131 = vector.load %arg18[%c0_99, %c62] : memref<2x400xf32, #tpu.memory_space<vmem>>, vector<2x16xf32>
    tpu.vector_store %arg18[%c0_99, %c62], %130 {strides = array<i32>} : memref<2x400xf32, #tpu.memory_space<vmem>>, vector<2x16xf32>,
    %132 = vector.extract_strided_slice %125 {offsets = [0, 32], sizes = [2, 16], strides = [1, 1]} : vector<2x256xf32> to vector<2x16xf32>
    %c0_100 = arith.constant 0 : index
    %c82 = arith.constant 82 : index
    %133 = vector.load %arg18[%c0_100, %c82] : memref<2x400xf32, #tpu.memory_space<vmem>>, vector<2x16xf32>
    tpu.vector_store %arg18[%c0_100, %c82], %132 {strides = array<i32>} : memref<2x400xf32, #tpu.memory_space<vmem>>, vector<2x16xf32>,
    %134 = vector.extract_strided_slice %125 {offsets = [0, 48], sizes = [2, 16], strides = [1, 1]} : vector<2x256xf32> to vector<2x16xf32>
    %c0_101 = arith.constant 0 : index
    %c102 = arith.constant 102 : index
    %135 = vector.load %arg18[%c0_101, %c102] : memref<2x400xf32, #tpu.memory_space<vmem>>, vector<2x16xf32>
    tpu.vector_store %arg18[%c0_101, %c102], %134 {strides = array<i32>} : memref<2x400xf32, #tpu.memory_space<vmem>>, vector<2x16xf32>,
    %136 = vector.extract_strided_slice %125 {offsets = [0, 64], sizes = [2, 16], strides = [1, 1]} : vector<2x256xf32> to vector<2x16xf32>
    %c0_102 = arith.constant 0 : index
    %c122 = arith.constant 122 : index
    %137 = vector.load %arg18[%c0_102, %c122] : memref<2x400xf32, #tpu.memory_space<vmem>>, vector<2x16xf32>
    tpu.vector_store %arg18[%c0_102, %c122], %136 {strides = array<i32>} : memref<2x400xf32, #tpu.memory_space<vmem>>, vector<2x16xf32>,
    %138 = vector.extract_strided_slice %125 {offsets = [0, 80], sizes = [2, 16], strides = [1, 1]} : vector<2x256xf32> to vector<2x16xf32>
    %c0_103 = arith.constant 0 : index
    %c142 = arith.constant 142 : index
    %139 = vector.load %arg18[%c0_103, %c142] : memref<2x400xf32, #tpu.memory_space<vmem>>, vector<2x16xf32>
    tpu.vector_store %arg18[%c0_103, %c142], %138 {strides = array<i32>} : memref<2x400xf32, #tpu.memory_space<vmem>>, vector<2x16xf32>,
    %140 = vector.extract_strided_slice %125 {offsets = [0, 96], sizes = [2, 16], strides = [1, 1]} : vector<2x256xf32> to vector<2x16xf32>
    %c0_104 = arith.constant 0 : index
    %c162 = arith.constant 162 : index
    %141 = vector.load %arg18[%c0_104, %c162] : memref<2x400xf32, #tpu.memory_space<vmem>>, vector<2x16xf32>
    tpu.vector_store %arg18[%c0_104, %c162], %140 {strides = array<i32>} : memref<2x400xf32, #tpu.memory_space<vmem>>, vector<2x16xf32>,
    %142 = vector.extract_strided_slice %125 {offsets = [0, 112], sizes = [2, 16], strides = [1, 1]} : vector<2x256xf32> to vector<2x16xf32>
    %c0_105 = arith.constant 0 : index
    %c182 = arith.constant 182 : index
    %143 = vector.load %arg18[%c0_105, %c182] : memref<2x400xf32, #tpu.memory_space<vmem>>, vector<2x16xf32>
    tpu.vector_store %arg18[%c0_105, %c182], %142 {strides = array<i32>} : memref<2x400xf32, #tpu.memory_space<vmem>>, vector<2x16xf32>,
    %144 = vector.extract_strided_slice %125 {offsets = [0, 128], sizes = [2, 16], strides = [1, 1]} : vector<2x256xf32> to vector<2x16xf32>
    %c0_106 = arith.constant 0 : index
    %c202 = arith.constant 202 : index
    %145 = vector.load %arg18[%c0_106, %c202] : memref<2x400xf32, #tpu.memory_space<vmem>>, vector<2x16xf32>
    tpu.vector_store %arg18[%c0_106, %c202], %144 {strides = array<i32>} : memref<2x400xf32, #tpu.memory_space<vmem>>, vector<2x16xf32>,
    %146 = vector.extract_strided_slice %125 {offsets = [0, 144], sizes = [2, 16], strides = [1, 1]} : vector<2x256xf32> to vector<2x16xf32>
    %c0_107 = arith.constant 0 : index
    %c222 = arith.constant 222 : index
    %147 = vector.load %arg18[%c0_107, %c222] : memref<2x400xf32, #tpu.memory_space<vmem>>, vector<2x16xf32>
    tpu.vector_store %arg18[%c0_107, %c222], %146 {strides = array<i32>} : memref<2x400xf32, #tpu.memory_space<vmem>>, vector<2x16xf32>,
    %148 = vector.extract_strided_slice %125 {offsets = [0, 160], sizes = [2, 16], strides = [1, 1]} : vector<2x256xf32> to vector<2x16xf32>
    %c0_108 = arith.constant 0 : index
    %c242 = arith.constant 242 : index
    %149 = vector.load %arg18[%c0_108, %c242] : memref<2x400xf32, #tpu.memory_space<vmem>>, vector<2x16xf32>
    tpu.vector_store %arg18[%c0_108, %c242], %148 {strides = array<i32>} : memref<2x400xf32, #tpu.memory_space<vmem>>, vector<2x16xf32>,
    %150 = vector.extract_strided_slice %125 {offsets = [0, 176], sizes = [2, 16], strides = [1, 1]} : vector<2x256xf32> to vector<2x16xf32>
    %c0_109 = arith.constant 0 : index
    %c262 = arith.constant 262 : index
    %151 = vector.load %arg18[%c0_109, %c262] : memref<2x400xf32, #tpu.memory_space<vmem>>, vector<2x16xf32>
    tpu.vector_store %arg18[%c0_109, %c262], %150 {strides = array<i32>} : memref<2x400xf32, #tpu.memory_space<vmem>>, vector<2x16xf32>,
    %152 = vector.extract_strided_slice %125 {offsets = [0, 192], sizes = [2, 16], strides = [1, 1]} : vector<2x256xf32> to vector<2x16xf32>
    %c0_110 = arith.constant 0 : index
    %c282 = arith.constant 282 : index
    %153 = vector.load %arg18[%c0_110, %c282] : memref<2x400xf32, #tpu.memory_space<vmem>>, vector<2x16xf32>
    tpu.vector_store %arg18[%c0_110, %c282], %152 {strides = array<i32>} : memref<2x400xf32, #tpu.memory_space<vmem>>, vector<2x16xf32>,
    %154 = vector.extract_strided_slice %125 {offsets = [0, 208], sizes = [2, 16], strides = [1, 1]} : vector<2x256xf32> to vector<2x16xf32>
    %c0_111 = arith.constant 0 : index
    %c302 = arith.constant 302 : index
    %155 = vector.load %arg18[%c0_111, %c302] : memref<2x400xf32, #tpu.memory_space<vmem>>, vector<2x16xf32>
    tpu.vector_store %arg18[%c0_111, %c302], %154 {strides = array<i32>} : memref<2x400xf32, #tpu.memory_space<vmem>>, vector<2x16xf32>,
    %156 = vector.extract_strided_slice %125 {offsets = [0, 224], sizes = [2, 16], strides = [1, 1]} : vector<2x256xf32> to vector<2x16xf32>
    %c0_112 = arith.constant 0 : index
    %c322 = arith.constant 322 : index
    %157 = vector.load %arg18[%c0_112, %c322] : memref<2x400xf32, #tpu.memory_space<vmem>>, vector<2x16xf32>
    tpu.vector_store %arg18[%c0_112, %c322], %156 {strides = array<i32>} : memref<2x400xf32, #tpu.memory_space<vmem>>, vector<2x16xf32>,
    %158 = vector.extract_strided_slice %125 {offsets = [0, 240], sizes = [2, 16], strides = [1, 1]} : vector<2x256xf32> to vector<2x16xf32>
    %c0_113 = arith.constant 0 : index
    %c342 = arith.constant 342 : index
    %159 = vector.load %arg18[%c0_113, %c342] : memref<2x400xf32, #tpu.memory_space<vmem>>, vector<2x16xf32>
    tpu.vector_store %arg18[%c0_113, %c342], %158 {strides = array<i32>} : memref<2x400xf32, #tpu.memory_space<vmem>>, vector<2x16xf32>,
    %c0_114 = arith.constant 0 : index
    %c0_115 = arith.constant 0 : index
    %160 = vector.load %arg18[%c0_114, %c0_115] : memref<2x400xf32, #tpu.memory_space<vmem>>, vector<2x316xf32>
    %c0_116 = arith.constant 0 : index
    %c0_117 = arith.constant 0 : index
    %161 = vector.load %arg20[%c0_116, %c0_117] : memref<50x316xf32, #tpu.memory_space<vmem>>, vector<2x316xf32>
    tpu.vector_store %arg20[%c0_116, %c0_117], %160 {strides = array<i32>} : memref<50x316xf32, #tpu.memory_space<vmem>>, vector<2x316xf32>,
    %c0_118 = arith.constant 0 : index
    %c1_119 = arith.constant 1 : index
    %162 = vector.load %arg18[%c0_118, %c1_119] : memref<2x400xf32, #tpu.memory_space<vmem>>, vector<2x316xf32>
    %c2_120 = arith.constant 2 : index
    %c0_121 = arith.constant 0 : index
    %163 = vector.load %arg20[%c2_120, %c0_121] : memref<50x316xf32, #tpu.memory_space<vmem>>, vector<2x316xf32>
    tpu.vector_store %arg20[%c2_120, %c0_121], %162 {strides = array<i32>} : memref<50x316xf32, #tpu.memory_space<vmem>>, vector<2x316xf32>,
    %c0_122 = arith.constant 0 : index
    %c2_123 = arith.constant 2 : index
    %164 = vector.load %arg18[%c0_122, %c2_123] : memref<2x400xf32, #tpu.memory_space<vmem>>, vector<2x316xf32>
    %c4_124 = arith.constant 4 : index
    %c0_125 = arith.constant 0 : index
    %165 = vector.load %arg20[%c4_124, %c0_125] : memref<50x316xf32, #tpu.memory_space<vmem>>, vector<2x316xf32>
    tpu.vector_store %arg20[%c4_124, %c0_125], %164 {strides = array<i32>} : memref<50x316xf32, #tpu.memory_space<vmem>>, vector<2x316xf32>,
    %c0_126 = arith.constant 0 : index
    %c3 = arith.constant 3 : index
    %166 = vector.load %arg18[%c0_126, %c3] : memref<2x400xf32, #tpu.memory_space<vmem>>, vector<2x316xf32>
    %c6_127 = arith.constant 6 : index
    %c0_128 = arith.constant 0 : index
    %167 = vector.load %arg20[%c6_127, %c0_128] : memref<50x316xf32, #tpu.memory_space<vmem>>, vector<2x316xf32>
    tpu.vector_store %arg20[%c6_127, %c0_128], %166 {strides = array<i32>} : memref<50x316xf32, #tpu.memory_space<vmem>>, vector<2x316xf32>,
    %c0_129 = arith.constant 0 : index
    %c4_130 = arith.constant 4 : index
    %168 = vector.load %arg18[%c0_129, %c4_130] : memref<2x400xf32, #tpu.memory_space<vmem>>, vector<2x316xf32>
    %c8_131 = arith.constant 8 : index
    %c0_132 = arith.constant 0 : index
    %169 = vector.load %arg20[%c8_131, %c0_132] : memref<50x316xf32, #tpu.memory_space<vmem>>, vector<2x316xf32>
    tpu.vector_store %arg20[%c8_131, %c0_132], %168 {strides = array<i32>} : memref<50x316xf32, #tpu.memory_space<vmem>>, vector<2x316xf32>,
    %c0_133 = arith.constant 0 : index
    %c20_134 = arith.constant 20 : index
    %170 = vector.load %arg18[%c0_133, %c20_134] : memref<2x400xf32, #tpu.memory_space<vmem>>, vector<2x316xf32>
    %c10_135 = arith.constant 10 : index
    %c0_136 = arith.constant 0 : index
    %171 = vector.load %arg20[%c10_135, %c0_136] : memref<50x316xf32, #tpu.memory_space<vmem>>, vector<2x316xf32>
    tpu.vector_store %arg20[%c10_135, %c0_136], %170 {strides = array<i32>} : memref<50x316xf32, #tpu.memory_space<vmem>>, vector<2x316xf32>,
    %c0_137 = arith.constant 0 : index
    %c21 = arith.constant 21 : index
    %172 = vector.load %arg18[%c0_137, %c21] : memref<2x400xf32, #tpu.memory_space<vmem>>, vector<2x316xf32>
    %c12_138 = arith.constant 12 : index
    %c0_139 = arith.constant 0 : index
    %173 = vector.load %arg20[%c12_138, %c0_139] : memref<50x316xf32, #tpu.memory_space<vmem>>, vector<2x316xf32>
    tpu.vector_store %arg20[%c12_138, %c0_139], %172 {strides = array<i32>} : memref<50x316xf32, #tpu.memory_space<vmem>>, vector<2x316xf32>,
    %c0_140 = arith.constant 0 : index
    %c22 = arith.constant 22 : index
    %174 = vector.load %arg18[%c0_140, %c22] : memref<2x400xf32, #tpu.memory_space<vmem>>, vector<2x316xf32>
    %c14_141 = arith.constant 14 : index
    %c0_142 = arith.constant 0 : index
    %175 = vector.load %arg20[%c14_141, %c0_142] : memref<50x316xf32, #tpu.memory_space<vmem>>, vector<2x316xf32>
    tpu.vector_store %arg20[%c14_141, %c0_142], %174 {strides = array<i32>} : memref<50x316xf32, #tpu.memory_space<vmem>>, vector<2x316xf32>,
    %c0_143 = arith.constant 0 : index
    %c23 = arith.constant 23 : index
    %176 = vector.load %arg18[%c0_143, %c23] : memref<2x400xf32, #tpu.memory_space<vmem>>, vector<2x316xf32>
    %c16_144 = arith.constant 16 : index
    %c0_145 = arith.constant 0 : index
    %177 = vector.load %arg20[%c16_144, %c0_145] : memref<50x316xf32, #tpu.memory_space<vmem>>, vector<2x316xf32>
    tpu.vector_store %arg20[%c16_144, %c0_145], %176 {strides = array<i32>} : memref<50x316xf32, #tpu.memory_space<vmem>>, vector<2x316xf32>,
    %c0_146 = arith.constant 0 : index
    %c24 = arith.constant 24 : index
    %178 = vector.load %arg18[%c0_146, %c24] : memref<2x400xf32, #tpu.memory_space<vmem>>, vector<2x316xf32>
    %c18_147 = arith.constant 18 : index
    %c0_148 = arith.constant 0 : index
    %179 = vector.load %arg20[%c18_147, %c0_148] : memref<50x316xf32, #tpu.memory_space<vmem>>, vector<2x316xf32>
    tpu.vector_store %arg20[%c18_147, %c0_148], %178 {strides = array<i32>} : memref<50x316xf32, #tpu.memory_space<vmem>>, vector<2x316xf32>,
    %c0_149 = arith.constant 0 : index
    %c40 = arith.constant 40 : index
    %180 = vector.load %arg18[%c0_149, %c40] : memref<2x400xf32, #tpu.memory_space<vmem>>, vector<2x316xf32>
    %c20_150 = arith.constant 20 : index
    %c0_151 = arith.constant 0 : index
    %181 = vector.load %arg20[%c20_150, %c0_151] : memref<50x316xf32, #tpu.memory_space<vmem>>, vector<2x316xf32>
    tpu.vector_store %arg20[%c20_150, %c0_151], %180 {strides = array<i32>} : memref<50x316xf32, #tpu.memory_space<vmem>>, vector<2x316xf32>,
    %c0_152 = arith.constant 0 : index
    %c41 = arith.constant 41 : index
    %182 = vector.load %arg18[%c0_152, %c41] : memref<2x400xf32, #tpu.memory_space<vmem>>, vector<2x316xf32>
    %c22_153 = arith.constant 22 : index
    %c0_154 = arith.constant 0 : index
    %183 = vector.load %arg20[%c22_153, %c0_154] : memref<50x316xf32, #tpu.memory_space<vmem>>, vector<2x316xf32>
    tpu.vector_store %arg20[%c22_153, %c0_154], %182 {strides = array<i32>} : memref<50x316xf32, #tpu.memory_space<vmem>>, vector<2x316xf32>,
    %c0_155 = arith.constant 0 : index
    %c42_156 = arith.constant 42 : index
    %184 = vector.load %arg18[%c0_155, %c42_156] : memref<2x400xf32, #tpu.memory_space<vmem>>, vector<2x316xf32>
    %c24_157 = arith.constant 24 : index
    %c0_158 = arith.constant 0 : index
    %185 = vector.load %arg20[%c24_157, %c0_158] : memref<50x316xf32, #tpu.memory_space<vmem>>, vector<2x316xf32>
    tpu.vector_store %arg20[%c24_157, %c0_158], %184 {strides = array<i32>} : memref<50x316xf32, #tpu.memory_space<vmem>>, vector<2x316xf32>,
    %c0_159 = arith.constant 0 : index
    %c43 = arith.constant 43 : index
    %186 = vector.load %arg18[%c0_159, %c43] : memref<2x400xf32, #tpu.memory_space<vmem>>, vector<2x316xf32>
    %c26 = arith.constant 26 : index
    %c0_160 = arith.constant 0 : index
    %187 = vector.load %arg20[%c26, %c0_160] : memref<50x316xf32, #tpu.memory_space<vmem>>, vector<2x316xf32>
    tpu.vector_store %arg20[%c26, %c0_160], %186 {strides = array<i32>} : memref<50x316xf32, #tpu.memory_space<vmem>>, vector<2x316xf32>,
    %c0_161 = arith.constant 0 : index
    %c44 = arith.constant 44 : index
    %188 = vector.load %arg18[%c0_161, %c44] : memref<2x400xf32, #tpu.memory_space<vmem>>, vector<2x316xf32>
    %c28 = arith.constant 28 : index
    %c0_162 = arith.constant 0 : index
    %189 = vector.load %arg20[%c28, %c0_162] : memref<50x316xf32, #tpu.memory_space<vmem>>, vector<2x316xf32>
    tpu.vector_store %arg20[%c28, %c0_162], %188 {strides = array<i32>} : memref<50x316xf32, #tpu.memory_space<vmem>>, vector<2x316xf32>,
    %c0_163 = arith.constant 0 : index
    %c60 = arith.constant 60 : index
    %190 = vector.load %arg18[%c0_163, %c60] : memref<2x400xf32, #tpu.memory_space<vmem>>, vector<2x316xf32>
    %c30 = arith.constant 30 : index
    %c0_164 = arith.constant 0 : index
    %191 = vector.load %arg20[%c30, %c0_164] : memref<50x316xf32, #tpu.memory_space<vmem>>, vector<2x316xf32>
    tpu.vector_store %arg20[%c30, %c0_164], %190 {strides = array<i32>} : memref<50x316xf32, #tpu.memory_space<vmem>>, vector<2x316xf32>,
    %c0_165 = arith.constant 0 : index
    %c61 = arith.constant 61 : index
    %192 = vector.load %arg18[%c0_165, %c61] : memref<2x400xf32, #tpu.memory_space<vmem>>, vector<2x316xf32>
    %c32_166 = arith.constant 32 : index
    %c0_167 = arith.constant 0 : index
    %193 = vector.load %arg20[%c32_166, %c0_167] : memref<50x316xf32, #tpu.memory_space<vmem>>, vector<2x316xf32>
    tpu.vector_store %arg20[%c32_166, %c0_167], %192 {strides = array<i32>} : memref<50x316xf32, #tpu.memory_space<vmem>>, vector<2x316xf32>,
    %c0_168 = arith.constant 0 : index
    %c62_169 = arith.constant 62 : index
    %194 = vector.load %arg18[%c0_168, %c62_169] : memref<2x400xf32, #tpu.memory_space<vmem>>, vector<2x316xf32>
    %c34 = arith.constant 34 : index
    %c0_170 = arith.constant 0 : index
    %195 = vector.load %arg20[%c34, %c0_170] : memref<50x316xf32, #tpu.memory_space<vmem>>, vector<2x316xf32>
    tpu.vector_store %arg20[%c34, %c0_170], %194 {strides = array<i32>} : memref<50x316xf32, #tpu.memory_space<vmem>>, vector<2x316xf32>,
    %c0_171 = arith.constant 0 : index
    %c63 = arith.constant 63 : index
    %196 = vector.load %arg18[%c0_171, %c63] : memref<2x400xf32, #tpu.memory_space<vmem>>, vector<2x316xf32>
    %c36_172 = arith.constant 36 : index
    %c0_173 = arith.constant 0 : index
    %197 = vector.load %arg20[%c36_172, %c0_173] : memref<50x316xf32, #tpu.memory_space<vmem>>, vector<2x316xf32>
    tpu.vector_store %arg20[%c36_172, %c0_173], %196 {strides = array<i32>} : memref<50x316xf32, #tpu.memory_space<vmem>>, vector<2x316xf32>,
    %c0_174 = arith.constant 0 : index
    %c64_175 = arith.constant 64 : index
    %198 = vector.load %arg18[%c0_174, %c64_175] : memref<2x400xf32, #tpu.memory_space<vmem>>, vector<2x316xf32>
    %c38_176 = arith.constant 38 : index
    %c0_177 = arith.constant 0 : index
    %199 = vector.load %arg20[%c38_176, %c0_177] : memref<50x316xf32, #tpu.memory_space<vmem>>, vector<2x316xf32>
    tpu.vector_store %arg20[%c38_176, %c0_177], %198 {strides = array<i32>} : memref<50x316xf32, #tpu.memory_space<vmem>>, vector<2x316xf32>,
    %c0_178 = arith.constant 0 : index
    %c80_179 = arith.constant 80 : index
    %200 = vector.load %arg18[%c0_178, %c80_179] : memref<2x400xf32, #tpu.memory_space<vmem>>, vector<2x316xf32>
    %c40_180 = arith.constant 40 : index
    %c0_181 = arith.constant 0 : index
    %201 = vector.load %arg20[%c40_180, %c0_181] : memref<50x316xf32, #tpu.memory_space<vmem>>, vector<2x316xf32>
    tpu.vector_store %arg20[%c40_180, %c0_181], %200 {strides = array<i32>} : memref<50x316xf32, #tpu.memory_space<vmem>>, vector<2x316xf32>,
    %c0_182 = arith.constant 0 : index
    %c81 = arith.constant 81 : index
    %202 = vector.load %arg18[%c0_182, %c81] : memref<2x400xf32, #tpu.memory_space<vmem>>, vector<2x316xf32>
    %c42_183 = arith.constant 42 : index
    %c0_184 = arith.constant 0 : index
    %203 = vector.load %arg20[%c42_183, %c0_184] : memref<50x316xf32, #tpu.memory_space<vmem>>, vector<2x316xf32>
    tpu.vector_store %arg20[%c42_183, %c0_184], %202 {strides = array<i32>} : memref<50x316xf32, #tpu.memory_space<vmem>>, vector<2x316xf32>,
    %c0_185 = arith.constant 0 : index
    %c82_186 = arith.constant 82 : index
    %204 = vector.load %arg18[%c0_185, %c82_186] : memref<2x400xf32, #tpu.memory_space<vmem>>, vector<2x316xf32>
    %c44_187 = arith.constant 44 : index
    %c0_188 = arith.constant 0 : index
    %205 = vector.load %arg20[%c44_187, %c0_188] : memref<50x316xf32, #tpu.memory_space<vmem>>, vector<2x316xf32>
    tpu.vector_store %arg20[%c44_187, %c0_188], %204 {strides = array<i32>} : memref<50x316xf32, #tpu.memory_space<vmem>>, vector<2x316xf32>,
    %c0_189 = arith.constant 0 : index
    %c83 = arith.constant 83 : index
    %206 = vector.load %arg18[%c0_189, %c83] : memref<2x400xf32, #tpu.memory_space<vmem>>, vector<2x316xf32>
    %c46 = arith.constant 46 : index
    %c0_190 = arith.constant 0 : index
    %207 = vector.load %arg20[%c46, %c0_190] : memref<50x316xf32, #tpu.memory_space<vmem>>, vector<2x316xf32>
    tpu.vector_store %arg20[%c46, %c0_190], %206 {strides = array<i32>} : memref<50x316xf32, #tpu.memory_space<vmem>>, vector<2x316xf32>,
    %c0_191 = arith.constant 0 : index
    %c84 = arith.constant 84 : index
    %208 = vector.load %arg18[%c0_191, %c84] : memref<2x400xf32, #tpu.memory_space<vmem>>, vector<2x316xf32>
    %c48_192 = arith.constant 48 : index
    %c0_193 = arith.constant 0 : index
    %209 = vector.load %arg20[%c48_192, %c0_193] : memref<50x316xf32, #tpu.memory_space<vmem>>, vector<2x316xf32>
    tpu.vector_store %arg20[%c48_192, %c0_193], %208 {strides = array<i32>} : memref<50x316xf32, #tpu.memory_space<vmem>>, vector<2x316xf32>,
    %c0_194 = arith.constant 0 : index
    %c0_195 = arith.constant 0 : index
    %210 = vector.load %arg12[%c0_194, %c0_195] : memref<4x50xbf16, #tpu.memory_space<vmem>>, vector<4x50xbf16>
    %c0_196 = arith.constant 0 : index
    %c0_197 = arith.constant 0 : index
    %211 = vector.load %arg20[%c0_196, %c0_197] : memref<50x316xf32, #tpu.memory_space<vmem>>, vector<50x316xf32>
    %212 = arith.truncf %211 : vector<50x316xf32> to vector<50x316xbf16>
    %cst_198 = arith.constant dense<0.000000e+00> : vector<4x316xf32>
    %213 = tpu.matmul %210, %212, %cst_198 {dimension_numbers = #tpu.dot_dimension_numbers<[1], [0], [0], [1], [0, 0, 1, 1], [], []>} : vector<4x50xbf16>, vector<50x316xbf16>, vector<4x316xf32> -> vector<4x316xf32>
    %214 = vector.extract_strided_slice %213 {offsets = [0, 0], sizes = [4, 16], strides = [1, 1]} : vector<4x316xf32> to vector<4x16xf32>
    %c0_199 = arith.constant 0 : index
    %c0_200 = arith.constant 0 : index
    %215 = vector.load %arg21[%c0_199, %c0_200] : memref<4x256xf32, #tpu.memory_space<vmem>>, vector<4x16xf32>
    tpu.vector_store %arg21[%c0_199, %c0_200], %214 {strides = array<i32>} : memref<4x256xf32, #tpu.memory_space<vmem>>, vector<4x16xf32>,
    %216 = vector.extract_strided_slice %213 {offsets = [0, 20], sizes = [4, 16], strides = [1, 1]} : vector<4x316xf32> to vector<4x16xf32>
    %c0_201 = arith.constant 0 : index
    %c16_202 = arith.constant 16 : index
    %217 = vector.load %arg21[%c0_201, %c16_202] : memref<4x256xf32, #tpu.memory_space<vmem>>, vector<4x16xf32>
    tpu.vector_store %arg21[%c0_201, %c16_202], %216 {strides = array<i32>} : memref<4x256xf32, #tpu.memory_space<vmem>>, vector<4x16xf32>,
    %218 = vector.extract_strided_slice %213 {offsets = [0, 40], sizes = [4, 16], strides = [1, 1]} : vector<4x316xf32> to vector<4x16xf32>
    %c0_203 = arith.constant 0 : index
    %c32_204 = arith.constant 32 : index
    %219 = vector.load %arg21[%c0_203, %c32_204] : memref<4x256xf32, #tpu.memory_space<vmem>>, vector<4x16xf32>
    tpu.vector_store %arg21[%c0_203, %c32_204], %218 {strides = array<i32>} : memref<4x256xf32, #tpu.memory_space<vmem>>, vector<4x16xf32>,
    %220 = vector.extract_strided_slice %213 {offsets = [0, 60], sizes = [4, 16], strides = [1, 1]} : vector<4x316xf32> to vector<4x16xf32>
    %c0_205 = arith.constant 0 : index
    %c48_206 = arith.constant 48 : index
    %221 = vector.load %arg21[%c0_205, %c48_206] : memref<4x256xf32, #tpu.memory_space<vmem>>, vector<4x16xf32>
    tpu.vector_store %arg21[%c0_205, %c48_206], %220 {strides = array<i32>} : memref<4x256xf32, #tpu.memory_space<vmem>>, vector<4x16xf32>,
    %222 = vector.extract_strided_slice %213 {offsets = [0, 80], sizes = [4, 16], strides = [1, 1]} : vector<4x316xf32> to vector<4x16xf32>
    %c0_207 = arith.constant 0 : index
    %c64_208 = arith.constant 64 : index
    %223 = vector.load %arg21[%c0_207, %c64_208] : memref<4x256xf32, #tpu.memory_space<vmem>>, vector<4x16xf32>
    tpu.vector_store %arg21[%c0_207, %c64_208], %222 {strides = array<i32>} : memref<4x256xf32, #tpu.memory_space<vmem>>, vector<4x16xf32>,
    %224 = vector.extract_strided_slice %213 {offsets = [0, 100], sizes = [4, 16], strides = [1, 1]} : vector<4x316xf32> to vector<4x16xf32>
    %c0_209 = arith.constant 0 : index
    %c80_210 = arith.constant 80 : index
    %225 = vector.load %arg21[%c0_209, %c80_210] : memref<4x256xf32, #tpu.memory_space<vmem>>, vector<4x16xf32>
    tpu.vector_store %arg21[%c0_209, %c80_210], %224 {strides = array<i32>} : memref<4x256xf32, #tpu.memory_space<vmem>>, vector<4x16xf32>,
    %226 = vector.extract_strided_slice %213 {offsets = [0, 120], sizes = [4, 16], strides = [1, 1]} : vector<4x316xf32> to vector<4x16xf32>
    %c0_211 = arith.constant 0 : index
    %c96_212 = arith.constant 96 : index
    %227 = vector.load %arg21[%c0_211, %c96_212] : memref<4x256xf32, #tpu.memory_space<vmem>>, vector<4x16xf32>
    tpu.vector_store %arg21[%c0_211, %c96_212], %226 {strides = array<i32>} : memref<4x256xf32, #tpu.memory_space<vmem>>, vector<4x16xf32>,
    %228 = vector.extract_strided_slice %213 {offsets = [0, 140], sizes = [4, 16], strides = [1, 1]} : vector<4x316xf32> to vector<4x16xf32>
    %c0_213 = arith.constant 0 : index
    %c112_214 = arith.constant 112 : index
    %229 = vector.load %arg21[%c0_213, %c112_214] : memref<4x256xf32, #tpu.memory_space<vmem>>, vector<4x16xf32>
    tpu.vector_store %arg21[%c0_213, %c112_214], %228 {strides = array<i32>} : memref<4x256xf32, #tpu.memory_space<vmem>>, vector<4x16xf32>,
    %230 = vector.extract_strided_slice %213 {offsets = [0, 160], sizes = [4, 16], strides = [1, 1]} : vector<4x316xf32> to vector<4x16xf32>
    %c0_215 = arith.constant 0 : index
    %c128_216 = arith.constant 128 : index
    %231 = vector.load %arg21[%c0_215, %c128_216] : memref<4x256xf32, #tpu.memory_space<vmem>>, vector<4x16xf32>
    tpu.vector_store %arg21[%c0_215, %c128_216], %230 {strides = array<i32>} : memref<4x256xf32, #tpu.memory_space<vmem>>, vector<4x16xf32>,
    %232 = vector.extract_strided_slice %213 {offsets = [0, 180], sizes = [4, 16], strides = [1, 1]} : vector<4x316xf32> to vector<4x16xf32>
    %c0_217 = arith.constant 0 : index
    %c144_218 = arith.constant 144 : index
    %233 = vector.load %arg21[%c0_217, %c144_218] : memref<4x256xf32, #tpu.memory_space<vmem>>, vector<4x16xf32>
    tpu.vector_store %arg21[%c0_217, %c144_218], %232 {strides = array<i32>} : memref<4x256xf32, #tpu.memory_space<vmem>>, vector<4x16xf32>,
    %234 = vector.extract_strided_slice %213 {offsets = [0, 200], sizes = [4, 16], strides = [1, 1]} : vector<4x316xf32> to vector<4x16xf32>
    %c0_219 = arith.constant 0 : index
    %c160_220 = arith.constant 160 : index
    %235 = vector.load %arg21[%c0_219, %c160_220] : memref<4x256xf32, #tpu.memory_space<vmem>>, vector<4x16xf32>
    tpu.vector_store %arg21[%c0_219, %c160_220], %234 {strides = array<i32>} : memref<4x256xf32, #tpu.memory_space<vmem>>, vector<4x16xf32>,
    %236 = vector.extract_strided_slice %213 {offsets = [0, 220], sizes = [4, 16], strides = [1, 1]} : vector<4x316xf32> to vector<4x16xf32>
    %c0_221 = arith.constant 0 : index
    %c176_222 = arith.constant 176 : index
    %237 = vector.load %arg21[%c0_221, %c176_222] : memref<4x256xf32, #tpu.memory_space<vmem>>, vector<4x16xf32>
    tpu.vector_store %arg21[%c0_221, %c176_222], %236 {strides = array<i32>} : memref<4x256xf32, #tpu.memory_space<vmem>>, vector<4x16xf32>,
    %238 = vector.extract_strided_slice %213 {offsets = [0, 240], sizes = [4, 16], strides = [1, 1]} : vector<4x316xf32> to vector<4x16xf32>
    %c0_223 = arith.constant 0 : index
    %c192_224 = arith.constant 192 : index
    %239 = vector.load %arg21[%c0_223, %c192_224] : memref<4x256xf32, #tpu.memory_space<vmem>>, vector<4x16xf32>
    tpu.vector_store %arg21[%c0_223, %c192_224], %238 {strides = array<i32>} : memref<4x256xf32, #tpu.memory_space<vmem>>, vector<4x16xf32>,
    %240 = vector.extract_strided_slice %213 {offsets = [0, 260], sizes = [4, 16], strides = [1, 1]} : vector<4x316xf32> to vector<4x16xf32>
    %c0_225 = arith.constant 0 : index
    %c208_226 = arith.constant 208 : index
    %241 = vector.load %arg21[%c0_225, %c208_226] : memref<4x256xf32, #tpu.memory_space<vmem>>, vector<4x16xf32>
    tpu.vector_store %arg21[%c0_225, %c208_226], %240 {strides = array<i32>} : memref<4x256xf32, #tpu.memory_space<vmem>>, vector<4x16xf32>,
    %242 = vector.extract_strided_slice %213 {offsets = [0, 280], sizes = [4, 16], strides = [1, 1]} : vector<4x316xf32> to vector<4x16xf32>
    %c0_227 = arith.constant 0 : index
    %c224_228 = arith.constant 224 : index
    %243 = vector.load %arg21[%c0_227, %c224_228] : memref<4x256xf32, #tpu.memory_space<vmem>>, vector<4x16xf32>
    tpu.vector_store %arg21[%c0_227, %c224_228], %242 {strides = array<i32>} : memref<4x256xf32, #tpu.memory_space<vmem>>, vector<4x16xf32>,
    %244 = vector.extract_strided_slice %213 {offsets = [0, 300], sizes = [4, 16], strides = [1, 1]} : vector<4x316xf32> to vector<4x16xf32>
    %c0_229 = arith.constant 0 : index
    %c240_230 = arith.constant 240 : index
    %245 = vector.load %arg21[%c0_229, %c240_230] : memref<4x256xf32, #tpu.memory_space<vmem>>, vector<4x16xf32>
    tpu.vector_store %arg21[%c0_229, %c240_230], %244 {strides = array<i32>} : memref<4x256xf32, #tpu.memory_space<vmem>>, vector<4x16xf32>,
    %c0_231 = arith.constant 0 : index
    %c0_232 = arith.constant 0 : index
    %246 = vector.load %arg21[%c0_231, %c0_232] : memref<4x256xf32, #tpu.memory_space<vmem>>, vector<4x256xf32>
    %c0_233 = arith.constant 0 : index
    %c0_234 = arith.constant 0 : index
    %247 = vector.load %arg13[%c0_233, %c0_234] : memref<4x1xf32, #tpu.memory_space<vmem>>, vector<4x1xf32>
    %248 = vector.broadcast %247 : vector<4x1xf32> to vector<4x256xf32>
    %249 = arith.addf %246, %248 : vector<4x256xf32>
    %cst_235 = arith.constant 0.000000e+00 : f32
    %250 = vector.broadcast %cst_235 : f32 to vector<4x256xf32>
    %251 = arith.maximumf %249, %250 : vector<4x256xf32>
    %c0_236 = arith.constant 0 : index
    %c0_237 = arith.constant 0 : index
    %252 = vector.load %arg14[%c0_236, %c0_237] : memref<16x1xf32, #tpu.memory_space<vmem>>, vector<4x1xf32>
    %253 = vector.broadcast %252 : vector<4x1xf32> to vector<4x256xf32>
    %254 = arith.mulf %17, %253 : vector<4x256xf32>
    %cst_238 = arith.constant dense<0.000000e+00> : vector<256xf32>
    %255 = vector.multi_reduction <add>, %254, %cst_238 [0] : vector<4x256xf32> to vector<256xf32>
    %256 = vector.shape_cast %255 : vector<256xf32> to vector<1x256xf32>
    %c4_239 = arith.constant 4 : index
    %c0_240 = arith.constant 0 : index
    %257 = vector.load %arg14[%c4_239, %c0_240] : memref<16x1xf32, #tpu.memory_space<vmem>>, vector<4x1xf32>
    %258 = vector.broadcast %257 : vector<4x1xf32> to vector<4x256xf32>
    %259 = arith.mulf %118, %258 : vector<4x256xf32>
    %cst_241 = arith.constant dense<0.000000e+00> : vector<256xf32>
    %260 = vector.multi_reduction <add>, %259, %cst_241 [0] : vector<4x256xf32> to vector<256xf32>
    %261 = vector.shape_cast %260 : vector<256xf32> to vector<1x256xf32>
    %262 = arith.addf %256, %261 : vector<1x256xf32>
    %c8_242 = arith.constant 8 : index
    %c0_243 = arith.constant 0 : index
    %263 = vector.load %arg14[%c8_242, %c0_243] : memref<16x1xf32, #tpu.memory_space<vmem>>, vector<4x1xf32>
    %264 = vector.broadcast %263 : vector<4x1xf32> to vector<4x256xf32>
    %265 = arith.mulf %251, %264 : vector<4x256xf32>
    %cst_244 = arith.constant dense<0.000000e+00> : vector<256xf32>
    %266 = vector.multi_reduction <add>, %265, %cst_244 [0] : vector<4x256xf32> to vector<256xf32>
    %267 = vector.shape_cast %266 : vector<256xf32> to vector<1x256xf32>
    %268 = arith.addf %262, %267 : vector<1x256xf32>
    %c12_245 = arith.constant 12 : index
    %c0_246 = arith.constant 0 : index
    %269 = vector.load %arg14[%c12_245, %c0_246] : memref<16x1xf32, #tpu.memory_space<vmem>>, vector<4x1xf32>
    %270 = vector.broadcast %269 : vector<4x1xf32> to vector<4x256xf32>
    %271 = arith.mulf %1, %270 : vector<4x256xf32>
    %cst_247 = arith.constant dense<0.000000e+00> : vector<256xf32>
    %272 = vector.multi_reduction <add>, %271, %cst_247 [0] : vector<4x256xf32> to vector<256xf32>
    %273 = vector.shape_cast %272 : vector<256xf32> to vector<1x256xf32>
    %274 = arith.addf %268, %273 : vector<1x256xf32>
    %c0_248 = arith.constant 0 : index
    %c0_249 = arith.constant 0 : index
    %275 = vector.load %arg15[%c0_248, %c0_249] : memref<1x1xf32, #tpu.memory_space<vmem>>, vector<1x1xf32>
    %276 = vector.broadcast %275 : vector<1x1xf32> to vector<1x256xf32>
    %277 = arith.addf %274, %276 : vector<1x256xf32>
    %cst_250 = arith.constant 0.000000e+00 : f32
    %278 = vector.broadcast %cst_250 : f32 to vector<1x256xf32>
    %279 = arith.maximumf %277, %278 : vector<1x256xf32>
    %280 = vector.shape_cast %279 : vector<1x256xf32> to vector<1x1x256xf32>
    %c0_251 = arith.constant 0 : index
    %c0_252 = arith.constant 0 : index
    %c0_253 = arith.constant 0 : index
    %281 = vector.load %arg16[%c0_251, %c0_252, %c0_253] : memref<1x1x256xf32, #tpu.memory_space<vmem>>, vector<1x1x256xf32>
    tpu.vector_store %arg16[%c0_251, %c0_252, %c0_253], %280 {strides = array<i32>} : memref<1x1x256xf32, #tpu.memory_space<vmem>>, vector<1x1x256xf32>,
    return
  }
  func.func @transform_0(%arg0: i32) -> (i32, i32, i32) {
    %c0_i32 = arith.constant 0 : i32
    %c0_i32_0 = arith.constant 0 : i32
    %c0_i32_1 = arith.constant 0 : i32
    return %arg0, %c0_i32, %c0_i32_0 : i32, i32, i32
  }
  func.func @transform_1(%arg0: i32) -> (i32, i32) {
    %c0_i32 = arith.constant 0 : i32
    %c0_i32_0 = arith.constant 0 : i32
    %c0_i32_1 = arith.constant 0 : i32
    return %c0_i32, %c0_i32_0 : i32, i32
  }
  func.func @transform_2(%arg0: i32) -> (i32, i32) {
    %c0_i32 = arith.constant 0 : i32
    %c0_i32_0 = arith.constant 0 : i32
    %c0_i32_1 = arith.constant 0 : i32
    return %c0_i32, %c0_i32_0 : i32, i32
  }
  func.func @transform_3(%arg0: i32) -> (i32, i32) {
    %c0_i32 = arith.constant 0 : i32
    %c0_i32_0 = arith.constant 0 : i32
    %c0_i32_1 = arith.constant 0 : i32
    return %c0_i32, %c0_i32_0 : i32, i32
  }
  func.func @transform_4(%arg0: i32) -> (i32, i32) {
    %c0_i32 = arith.constant 0 : i32
    %c0_i32_0 = arith.constant 0 : i32
    %c0_i32_1 = arith.constant 0 : i32
    return %c0_i32, %c0_i32_0 : i32, i32
  }
  func.func @transform_5(%arg0: i32) -> (i32, i32) {
    %c0_i32 = arith.constant 0 : i32
    %c0_i32_0 = arith.constant 0 : i32
    %c0_i32_1 = arith.constant 0 : i32
    return %c0_i32, %c0_i32_0 : i32, i32
  }
  func.func @transform_6(%arg0: i32) -> (i32, i32) {
    %c0_i32 = arith.constant 0 : i32
    %c0_i32_0 = arith.constant 0 : i32
    %c0_i32_1 = arith.constant 0 : i32
    return %c0_i32, %c0_i32_0 : i32, i32
  }
  func.func @transform_7(%arg0: i32) -> (i32, i32) {
    %c0_i32 = arith.constant 0 : i32
    %c0_i32_0 = arith.constant 0 : i32
    %c0_i32_1 = arith.constant 0 : i32
    return %c0_i32, %c0_i32_0 : i32, i32
  }
  func.func @transform_8(%arg0: i32) -> (i32, i32) {
    %c0_i32 = arith.constant 0 : i32
    %c0_i32_0 = arith.constant 0 : i32
    %c0_i32_1 = arith.constant 0 : i32
    return %c0_i32, %c0_i32_0 : i32, i32
  }
  func.func @transform_9(%arg0: i32) -> (i32, i32) {
    %c0_i32 = arith.constant 0 : i32
    %c0_i32_0 = arith.constant 0 : i32
    %c0_i32_1 = arith.constant 0 : i32
    return %c0_i32, %c0_i32_0 : i32, i32
  }
  func.func @transform_10(%arg0: i32) -> (i32, i32) {
    %c0_i32 = arith.constant 0 : i32
    %c0_i32_0 = arith.constant 0 : i32
    %c0_i32_1 = arith.constant 0 : i32
    return %c0_i32, %c0_i32_0 : i32, i32
  }
  func.func @transform_11(%arg0: i32) -> (i32, i32) {
    %c0_i32 = arith.constant 0 : i32
    %c0_i32_0 = arith.constant 0 : i32
    %c0_i32_1 = arith.constant 0 : i32
    return %c0_i32, %c0_i32_0 : i32, i32
  }
  func.func @transform_12(%arg0: i32) -> (i32, i32) {
    %c0_i32 = arith.constant 0 : i32
    %c0_i32_0 = arith.constant 0 : i32
    %c0_i32_1 = arith.constant 0 : i32
    return %c0_i32, %c0_i32_0 : i32, i32
  }
  func.func @transform_13(%arg0: i32) -> (i32, i32) {
    %c0_i32 = arith.constant 0 : i32
    %c0_i32_0 = arith.constant 0 : i32
    %c0_i32_1 = arith.constant 0 : i32
    return %c0_i32, %c0_i32_0 : i32, i32
  }
  func.func @transform_14(%arg0: i32) -> (i32, i32) {
    %c0_i32 = arith.constant 0 : i32
    %c0_i32_0 = arith.constant 0 : i32
    %c0_i32_1 = arith.constant 0 : i32
    return %c0_i32, %c0_i32_0 : i32, i32
  }
  func.func @transform_15(%arg0: i32) -> (i32, i32, i32) {
    %c0_i32 = arith.constant 0 : i32
    %c0_i32_0 = arith.constant 0 : i32
    %c0_i32_1 = arith.constant 0 : i32
    return %arg0, %c0_i32, %c0_i32_0 : i32, i32, i32
  }
}

</mosaic_0001>

<bundles_post_ra>
// kernel: density_head_block.1
= control target key start
LH: loop header
LB: loop body
LE: loop exit
PB: predicated region body
PF: predicated region fallthrough
CT: control target
= control target key end

     0   :  { %s2404_s20 = smov 0   ;;  %s3080_s0 = inlined_call_operand.vmem [shape: f32[2,4,256], index: 0, kind: input, shape index: {}]   ;;  %s3081_s1 = inlined_call_operand.vmem [shape: bf16[2,4], index: 1, kind: input, shape index: {}]   ;;  %s3082_s2 = inlined_call_operand.vmem [shape: f32[2,1], index: 2, kind: input, shape index: {}]   ;;  %s3083_s3 = inlined_call_operand.vmem [shape: bf16[4,2], index: 3, kind: input, shape index: {}]   ;;  %s3084_s4 = inlined_call_operand.vmem [shape: f32[4,1], index: 4, kind: input, shape index: {}]   ;;  %s3085_s5 = inlined_call_operand.vmem [shape: bf16[2,4], index: 5, kind: input, shape index: {}]   ;;  %s3086_s6 = inlined_call_operand.vmem [shape: f32[2,1], index: 6, kind: input, shape index: {}]   ;;  %s3087_s7 = inlined_call_operand.vmem [shape: bf16[4,18], index: 7, kind: input, shape index: {}]   ;;  %s3088_s8 = inlined_call_operand.vmem [shape: f32[4,1], index: 8, kind: input, shape index: {}]   ;;  %s3089_s9 = inlined_call_operand.vmem [shape: bf16[2,4], index: 9, kind: input, shape index: {}]   ;;  %s3090_s10 = inlined_call_operand.vmem [shape: f32[2,1], index: 10, kind: input, shape index: {}]   ;;  %s3091_s11 = inlined_call_operand.vmem [shape: bf16[4,50], index: 11, kind: input, shape index: {}]   ;;  %s3092_s12 = inlined_call_operand.vmem [shape: f32[4,1], index: 12, kind: input, shape index: {}]   ;;  %s3093_s13 = inlined_call_operand.vmem [shape: f32[16,1], index: 13, kind: input, shape index: {}]   ;;  %s3094_s14 = inlined_call_operand.<no memory space> [shape: f32[1,1], index: 14, kind: input, shape index: {}]   ;;  %s3095_s15 = inlined_call_operand.vmem [shape: f32[2,1,256], index: 15, kind: output, shape index: {}]  }
   0x1   :  { %v20_v0 = vstv %s3094_s14 }
   0x2   :  { %21 = vst [vmem:[#allocation7] sm:$0x1] %v20_v0 }
   0x3 LB: > { %s2139_s21 = sadd.s32 4294967295, %s2250_s20   ;;  %p2143_p0 = scmp.ge.s32.totalorder %s2250_s20, 1  ;;  %s2250_s20 = sphi %s2404_s20, %s27_s20  }
   0x4   : > { %p439_p1 = scmp.lt.s32.totalorder %s2250_s20, 3 }
   0x6   : > { %p440_p2 = pnand %p2143_p0, %p439_p1 }
   0x8   : > { %443 = sbr.rel (%p440_p2) target bundleno = 1704 (0x6a8), region = 80 }
   0xd   : > { %p486_p3 = scmp.lt.s32.totalorder %s2139_s21, 1  ;;  %v600_v1 = vld [vmem:[%s3086_s6] sm:$0x3]  ;;  %v2252_v3 = vmov 0   ;;  %vm516_vm0 = vcmask 1041408   ;;  %vm512_vm1 = vcmask 31744  }
   0xe   : > { %2241 = vset.pattern.permute.xlu0 %v2252_v3  ;;  %2242 = vset.pattern.permute.xlu2 %v2252_v3  ;;  %v505_v10 = vld [vmem:[%s3081_s1] sm:$0x1]  ;;  %s2253_s16 = smov 25   ;;  %s2254_s17 = smov 21   ;;  %vm637_vm2 = vcmask 1043458   ;;  %vm639_vm4 = vcmask 553988  }
   0xf   : > { %s3175_s21 = smov (!%p486_p3, %s2139_s21), 1  ;;  %603 = vperm.xlu0 %2241, %v600_v1   ;;  %2243 = vset.pattern.permute.xlu1 %v2252_v3  ;;  %v599_v11 = vld [vmem:[%s3085_s5] sm:$0x1]  ;;  %s2255_s18 = smov 19   ;;  %vm638_vm3 = vmor %vm637_vm2, %vm516_vm0  ;;  %vm1126_vm6 = vcmask 1045508   ;;  %vm1128_vm7 = vcmask 130054  }
  0x10   : > { %s2163_s14 = sshll.u32 %s3175_s21, 3  ;;  %s2256_s19 = smov 31   ;;  %v506_v25 = vld [vmem:[%s3082_s2] sm:$0x3]  ;;  %vm640_vm5 = vmor %vm639_vm4, %vm638_vm3  ;;  %v2269_v26 = vmov 0.0   ;;  %vm646_vm10 = vcmask 279704  }
  0x11   : > { %s490_s24 = scalar_lea.vmem %s3080_s0, %s2163_s14  ;;  %s2257_s14 = smov 23   ;;  %641 = vst.msk [vmem:[#allocation2] sm:$0x3f] %vm640_vm5, %v2269_v26  ;;  %vm1127_vm8 = vmor %vm1126_vm6, %vm638_vm3  ;;  %vm651_vm11 = vcmask 427304   ;;  %vm656_vm12 = vcmask 574904   ;;  %vm661_vm13 = vcmask 722504  }
  0x12   : > { %v2421_v2 = vld [vmem:[%s490_s24] sm:$0xff]  ;;  %s2258_s22 = smov 27   ;;  %s2259_s23 = smov 33   ;;  %vm1129_vm9 = vmor %vm1128_vm7, %vm1127_vm8  ;;  %vm666_vm14 = vcmask 870104   ;;  %vm679_vm15 = vcmask 1042424   ;;  %vm676_vm2 = vcmask 252928  }
  0x13   : > { %3125 = vst [vmem:[#allocation8_spill] sm:$0xff] %v2421_v2  ;;  %s2260_s24 = smov 29   ;;  %s2261_s25 = smov 35   ;;  %vm671_vm3 = vcmask 1017704   ;;  %vm686_vm5 = vcmask 263304   ;;  %vm692_vm6 = vcmask 410904  }
  0x14   : > { %498 = vst [vmem:[#allocation1] ss:$2 sm:$0xff] %v2421_v2  ;;  %s2262_s26 = smov 39   ;;  %s2263_s27 = smov 37   ;;  %vm564_vm7 = vcmask 1040384   ;;  %vm697_vm8 = vcmask 558504  }
  0x15   : > { %s3096_s28 = smov 45   ;;  %s2265_s29 = smov 43   ;;  %1130 = vst.msk [vmem:[#allocation3] sm:$0xff] %vm1129_vm9, %v2269_v26  ;;  %vm702_vm9 = vcmask 706104  }
  0x16   : > { %s2266_s30 = smov 41  }
  0x1b   : > { %v499_v4 = vld.sshfl [vmem:[#allocation1] sm:$0xff pattern:$0x75316420]  ;;  %v500_v5 = vld.sshfl [vmem:[#allocation1 + $0x8] sm:$0xff pattern:$0x75316420] }
  0x1c   : > { %v503_v6 = vpack.c.bf16 %v499_v4, %v499_v4  ;;  %v504_v7 = vpack.c.bf16 %v500_v5, %v500_v5 }
  0x1e   : > { %v518_v8 = vsel %vm516_vm0, %v503_v6, 0  ;;  %v2426_v9 = vsel %vm516_vm0, %v504_v7, 0  ;;  %vm680_vm0 = vcmask 117762  }
  0x1f   : > { %530 = vmatpush.bf16.msra.mxu0 %v518_v8  ;;  %543 = vmatpush.bf16.msra.mxu1 %v2426_v9  ;;  %vm681_vm4 = vmor %vm680_vm0, %vm679_vm15  ;;  %vm727_vm0 = vcmask 246904  }
  0x22   : > { %2147 = vmatmul.msk.bf16.vlgmr.msra.gmra.mxu0 %vm512_vm1, %v505_v10  ;;  %2148 = vmatmul.msk.bf16.vlgmr.msra.gmra.mxu1 %vm512_vm1, %v505_v10 }
  0x23   : > { %616 = vmatpush.bf16.msrb.mxu0 %v518_v8  ;;  %629 = vmatpush.bf16.msrb.mxu1 %v2426_v9 }
  0x27   : > { %1105 = vmatpush.bf16.msra.mxu1 %v518_v8 }
  0x32   : > { %2151 = vmatmul.msk.bf16.vlgmr.msrb.gmra.mxu0 %vm512_vm1, %v599_v11  ;;  %2152 = vmatmul.msk.bf16.vlgmr.msrb.gmra.mxu1 %vm512_vm1, %v599_v11 }
  0x81   : > { %v604_v16 = vpop.permute.xlu0 %603 }
  0x9f   : > { %v2440_v12 = vpop.f32.mrf.mxu0  ;;  %v2442_v13 = vpop.f32.mrf.mxu1 }
  0xa7   : > { %v534_v14 = vpop.f32.mrf.mxu0  ;;  %v547_v15 = vpop.f32.mrf.mxu1 }
  0xaf   : > { %v618_v17 = vpop.f32.mrf.mxu0  ;;  %v631_v18 = vpop.f32.mrf.mxu1 }
  0xb0   : > { %v619_v19 = vadd.f32 %v618_v17, %v604_v16  ;;  %v632_v23 = vadd.f32 %v631_v18, %v604_v16 }
  0xb2   : > { %v635_v20 = vmax.f32 %v619_v19, 0.0  ;;  %v636_v24 = vmax.f32 %v632_v23, 0.0 }
  0xb4   : > { %658 = vrot.lane.b32.xlu2 %v635_v20, %s2253_s16  ;;  %648 = vrot.lane.b32.xlu1 %v635_v20, %s2254_s17  ;;  %s3098_s16 = smov 47   ;;  %s2279_s17 = smov 58  }
  0xb5   : > { %643 = vrot.lane.b32.xlu0 %v635_v20, %s2255_s18  ;;  %s2280_s18 = smov 42  }
  0xb7   : > { %v620_v21 = vpop.f32.mrf.mxu0  ;;  %v633_v22 = vpop.f32.mrf.mxu1 }
  0xbc   : > { %673 = vrot.lane.b32.xlu2 %v635_v20, %s2256_s19  ;;  %653 = vrot.lane.b32.xlu1 %v635_v20, %s2257_s14  ;;  %s2268_s19 = smov 49   ;;  %s2270_s14 = smov 127  }
  0xbd   : > { %663 = vrot.lane.b32.xlu0 %v635_v20, %s2258_s22  ;;  %s2271_s22 = smov 126  }
  0xc4   : > { %683 = vrot.lane.b32.xlu2 %v635_v20, %s2259_s23  ;;  %668 = vrot.lane.b32.xlu1 %v635_v20, %s2260_s24  ;;  %s2272_s23 = smov 110   ;;  %s3101_s24 = smov 109  }
  0xc5   : > { %689 = vrot.lane.b32.xlu0 %v636_v24, %s2261_s25  ;;  %s2274_s25 = smov 108  }
  0xcc   : > { %699 = vrot.lane.b32.xlu2 %v636_v24, %s2262_s26  ;;  %694 = vrot.lane.b32.xlu1 %v636_v24, %s2263_s27  ;;  %s2275_s26 = smov 92   ;;  %s3100_s27 = smov 91  }
  0xcd   : > { %714 = vrot.lane.b32.xlu0 %v636_v24, %s3096_s28  ;;  %s2282_s28 = smov 62  }
  0xd4   : > { %709 = vrot.lane.b32.xlu2 %v636_v24, %s2265_s29  ;;  %704 = vrot.lane.b32.xlu1 %v636_v24, %s2266_s30  ;;  %s2277_s29 = smov 90   ;;  %s3102_s30 = smov 46  }
  0xd5   : > { %724 = vrot.lane.b32.xlu0 %v636_v24, %s3098_s16  ;;  %s2283_s16 = smov 50  }
  0xdc   : > { %509 = vperm.xlu2 %2242, %v506_v25   ;;  %729 = vrot.lane.b32.xlu1 %v636_v24, %s2268_s19  ;;  %s2281_s19 = smov 54  }
 0x10e   : > { %v659_v27 = vpop.permute.xlu2 %658 }
 0x116   : > { %v674_v28 = vpop.permute.xlu2 %673 }
 0x117   : > { %v675_v36 = vrot.slane %v674_v28, 6 }
 0x119   : > { %v677_v39 = vsel %vm676_vm2, %v675_v36, %v674_v28  ;;  %vm732_vm2 = vcmask 394504   ;;  %v553_v36 = vld [vmem:[%s3083_s3] sm:$0x3] }
 0x11e   : > { %v684_v29 = vpop.permute.xlu2 %683 }
 0x126   : > { %v700_v30 = vpop.permute.xlu2 %699  ;;  %v649_v31 = vpop.permute.xlu1 %648 }
 0x127   : > { %v644_v32 = vpop.permute.xlu0 %643 }
 0x128   : > { %647 = vst.msk [vmem:[#allocation2] sm:$0x3] %vm646_vm10, %v644_v32  ;;  %vm720_vm10 = vcmask 1042408  }
 0x129   : > { %652 = vst.msk [vmem:[#allocation2] sm:$0x3] %vm651_vm11, %v649_v31  ;;  %vm721_vm11 = vcmask 101378  }
 0x12a   : > { %vm722_vm15 = vmor %vm721_vm11, %vm720_vm10  ;;  %vm850_vm10 = vcmask 883712   ;;  %vm915_vm11 = vcmask 736256  }
 0x12e   : > { %v710_v33 = vpop.permute.xlu2 %709  ;;  %v654_v34 = vpop.permute.xlu1 %653 }
 0x12f   : > { %657 = vst.msk [vmem:[#allocation2] sm:$0x3] %vm656_vm12, %v654_v34  ;;  %v664_v35 = vpop.permute.xlu0 %663  ;;  %vm707_vm12 = vcmask 853704  }
 0x130   : > { %662 = vst.msk [vmem:[#allocation2] sm:$0x3] %vm661_vm13, %v659_v27  ;;  %vm3106_vm13 = vcmask 367616  }
 0x131   : > { %667 = vst.msk [vmem:[#allocation2] sm:$0x3] %vm666_vm14, %v664_v35  ;;  %vm712_vm14 = vcmask 1001304   ;;  %v1088_v35 = vld [vmem:[%s3089_s9] sm:$0x1] }
 0x132   : > { %2156 = vmatmul.msk.bf16.vlgmr.msra.gmra.mxu1 %vm512_vm1, %v1088_v35 }
 0x136   : > { %v510_v37 = vpop.permute.xlu2 %509  ;;  %v669_v38 = vpop.permute.xlu1 %668 }
 0x137   : > { %672 = vst.msk [vmem:[#allocation2] sm:$0x3] %vm671_vm3, %v669_v38  ;;  %v690_v40 = vpop.permute.xlu0 %689  ;;  %v533_v41 = vadd.f32 %v2440_v12, %v510_v37  ;;  %v546_v42 = vadd.f32 %v2442_v13, %v510_v37  ;;  %vm745_vm3 = vcmask 238592  }
 0x138   : > { %682 = vst.msk [vmem:[#allocation2] sm:$0xf] %vm681_vm4, %v677_v39  ;;  %vm760_vm4 = vcmask 1039360  }
 0x139   : > { %687 = vst.msk [vmem:[#allocation2 + $0x2] sm:$0x3] %vm686_vm5, %v684_v29  ;;  %v549_v43 = vmax.f32 %v533_v41, 0.0  ;;  %v550_v44 = vmax.f32 %v546_v42, 0.0  ;;  %vm3111_vm5 = vcmask 1031168  }
 0x13a   : > { %693 = vst.msk [vmem:[#allocation2 + $0x2] sm:$0x3] %vm692_vm6, %v690_v40  ;;  %vm560_vm6 = vcmask 15360  }
 0x13b   : > { %v551_v45 = vpack.c.bf16 %v549_v43, %v549_v43  ;;  %v552_v46 = vpack.c.bf16 %v550_v44, %v550_v44  ;;  %v1089_v43 = vld [vmem:[%s3090_s10] sm:$0x3] }
 0x13d   : > { %v566_v47 = vsel %vm564_vm7, %v551_v45, 0  ;;  %v569_v48 = vsel %vm564_vm7, %v552_v46, 0 }
 0x13e   : > { %578 = vmatpush.bf16.msra.mxu2 %v566_v47  ;;  %591 = vmatpush.bf16.msra.mxu3 %v569_v48  ;;  %v695_v49 = vpop.permute.xlu1 %694 }
 0x13f   : > { %698 = vst.msk [vmem:[#allocation2 + $0x2] sm:$0x3] %vm697_vm8, %v695_v49  ;;  %v715_v50 = vpop.permute.xlu0 %714  ;;  %vm806_vm8 = vcmask 900096  }
 0x140   : > { %703 = vst.msk [vmem:[#allocation2 + $0x2] sm:$0x3] %vm702_vm9, %v700_v30  ;;  %v716_v51 = vrot.slane %v715_v50, 6  ;;  %vm3110_vm9 = vcmask 891904  }
 0x141   : > { %2149 = vmatmul.msk.bf16.vlgmr.msra.gmra.mxu2 %vm560_vm6, %v553_v36  ;;  %2150 = vmatmul.msk.bf16.vlgmr.msra.gmra.mxu3 %vm560_vm6, %v553_v36  ;;  %vm1145_vm6 = vcmask 796304  }
 0x142   : > { %v718_v53 = vsel %vm3106_vm13, %v716_v51, %v715_v50  ;;  %vm1155_vm13 = vcmask 474112  }
 0x146   : > { %v705_v52 = vpop.permute.xlu1 %704 }
 0x147   : > { %708 = vst.msk [vmem:[#allocation2 + $0x2] sm:$0x3] %vm707_vm12, %v705_v52  ;;  %v725_v54 = vpop.permute.xlu0 %724  ;;  %vm872_vm12 = vcmask 752640  }
 0x148   : > { %713 = vst.msk [vmem:[#allocation2 + $0x2] sm:$0x3] %vm712_vm14, %v710_v33  ;;  %vm3109_vm14 = vcmask 744448  }
 0x149   : > { %723 = vst.msk [vmem:[#allocation2 + $0x2] sm:$0xf] %vm722_vm15, %v718_v53  ;;  %vm3108_vm15 = vcmask 146432  }
 0x14a   : > { %728 = vst.msk [vmem:[#allocation2 + $0x4] sm:$0x3] %vm727_vm0, %v725_v54  ;;  %vm1135_vm0 = vcmask 468304  }
 0x14e   : > { %v730_v55 = vpop.permute.xlu1 %729 }
 0x14f   : > { %733 = vst.msk [vmem:[#allocation2 + $0x4] sm:$0x3] %vm732_vm2, %v730_v55  ;;  %vm1140_vm2 = vcmask 632304  }
 0x156   : > { %v734_v56 = vld [vmem:[#allocation2] sm:$0x3f] }
 0x157   : > { %736 = vst [vmem:[#allocation1] ss:$4 sm:$0xff] %v734_v56  ;;  %v747_v57 = vld [vmem:[#allocation2] sm:$0x3f] }
 0x158   : > { %v770_v0 = vld [vmem:[#allocation2] sm:$0x3f] }
 0x159   : > { %v793_v5 = vld [vmem:[#allocation2] sm:$0x3f] }
 0x15a   : > { %v816_v10 = vld [vmem:[#allocation2] sm:$0x3f] }
 0x15b   : > { %v837_v14 = vld [vmem:[#allocation2] sm:$0x3f] }
 0x15c   : > { %v859_v18 = vld [vmem:[#allocation2] sm:$0x3f] }
 0x15d   : > { %v881_v22 = vld [vmem:[#allocation2] sm:$0x3f] }
 0x15e   : > { %v737_v58 = vld.sshfl [vmem:[#allocation1] sm:$0xff pattern:$0x73625140]  ;;  %v738_v59 = vld.sshfl [vmem:[#allocation1 + $0x8] sm:$0xff pattern:$0x73625140] }
 0x15f   : > { %v739_v60 = vld.sshfl [vmem:[#allocation1 + $0x10] sm:$0xff pattern:$0x73625140]  ;;  %743 = vst [vmem:[#allocation4] sm:$0x3] %v737_v58 }
 0x160   : > { %750 = vst [vmem:[#allocation1 + $0x1] ss:$4 sm:$0xff] %v747_v57  ;;  %v903_v26 = vld [vmem:[#allocation2] sm:$0x3f] }
 0x161   : > { %744 = vst [vmem:[#allocation4 + $0x8] sm:$0x3] %v738_v59 }
 0x162   : > { %746 = vst.msk [vmem:[#allocation4 + $0x10] sm:$0x3] %vm745_vm3, %v739_v60 }
 0x167   : > { %v751_v61 = vld.sshfl [vmem:[#allocation1] sm:$0xff pattern:$0x73625140]  ;;  %v752_v62 = vld.sshfl [vmem:[#allocation1 + $0x8] sm:$0xff pattern:$0x73625140] }
 0x168   : > { %v2456_v63 = vld.sshfl [vmem:[#allocation1 + $0x10] sm:$0xff pattern:$0x73625140]  ;;  %756 = vrot.lane.b32.xlu0 %v752_v62, %s2270_s14  ;;  %754 = vrot.lane.b32.xlu2 %v751_v61, %s2270_s14  ;;  %v2532_v62 = vld [vmem:[%s3087_s7] sm:$0x3] }
 0x169   : > { %773 = vst [vmem:[#allocation1 + $0x2] ss:$4 sm:$0xff] %v770_v0 }
 0x170   : > { %v774_v1 = vld.sshfl [vmem:[#allocation1] sm:$0xff pattern:$0x73625140]  ;;  %v775_v3 = vld.sshfl [vmem:[#allocation1 + $0x8] sm:$0xff pattern:$0x73625140] }
 0x171   : > { %v2460_v4 = vld.sshfl [vmem:[#allocation1 + $0x10] sm:$0xff pattern:$0x73625140]  ;;  %779 = vrot.lane.b32.xlu2 %v775_v3, %s2271_s22  ;;  %777 = vrot.lane.b32.xlu1 %v774_v1, %s2271_s22 }
 0x172   : > { %796 = vst [vmem:[#allocation1 + $0x3] ss:$4 sm:$0xff] %v793_v5 }
 0x179   : > { %v797_v6 = vld.sshfl [vmem:[#allocation1] sm:$0xff pattern:$0x73625140]  ;;  %v798_v7 = vld.sshfl [vmem:[#allocation1 + $0x8] sm:$0xff pattern:$0x73625140] }
 0x17a   : > { %v2464_v8 = vld.sshfl [vmem:[#allocation1 + $0x10] sm:$0xff pattern:$0x73625140]  ;;  %802 = vrot.lane.b32.xlu1 %v798_v7, %s2272_s23  ;;  %800 = vrot.lane.b32.xlu0 %v797_v6, %s2272_s23 }
 0x17b   : > { %818 = vst [vmem:[#allocation1] ss:$4 sm:$0xff] %v816_v10 }
 0x182   : > { %v819_v11 = vld.sshfl [vmem:[#allocation1] sm:$0xff pattern:$0x73625140]  ;;  %v820_v12 = vld.sshfl [vmem:[#allocation1 + $0x8] sm:$0xff pattern:$0x73625140] }
 0x183   : > { %v2468_v13 = vld.sshfl [vmem:[#allocation1 + $0x10] sm:$0xff pattern:$0x73625140]  ;;  %824 = vrot.lane.b32.xlu0 %v820_v12, %s3101_s24  ;;  %822 = vrot.lane.b32.xlu2 %v819_v11, %s3101_s24  ;;  %s3104_s24 = smov 66  }
 0x184   : > { %840 = vst [vmem:[#allocation1 + $0x1] ss:$4 sm:$0xff] %v837_v14 }
 0x18b   : > { %v841_v15 = vld.sshfl [vmem:[#allocation1] sm:$0xff pattern:$0x73625140]  ;;  %v842_v16 = vld.sshfl [vmem:[#allocation1 + $0x8] sm:$0xff pattern:$0x73625140] }
 0x18c   : > { %v2472_v17 = vld.sshfl [vmem:[#allocation1 + $0x10] sm:$0xff pattern:$0x73625140]  ;;  %846 = vrot.lane.b32.xlu2 %v842_v16, %s2274_s25  ;;  %844 = vrot.lane.b32.xlu1 %v841_v15, %s2274_s25 }
 0x18d   : > { %862 = vst [vmem:[#allocation1 + $0x2] ss:$4 sm:$0xff] %v859_v18  ;;  %v554_v18 = vld [vmem:[%s3084_s4] sm:$0xf] }
 0x194   : > { %v863_v19 = vld.sshfl [vmem:[#allocation1] sm:$0xff pattern:$0x73625140]  ;;  %v864_v20 = vld.sshfl [vmem:[#allocation1 + $0x8] sm:$0xff pattern:$0x73625140] }
 0x195   : > { %v2476_v21 = vld.sshfl [vmem:[#allocation1 + $0x10] sm:$0xff pattern:$0x73625140]  ;;  %866 = vrot.lane.b32.xlu0 %v863_v19, %s2275_s26 }
 0x196   : > { %884 = vst [vmem:[#allocation1 + $0x3] ss:$4 sm:$0xff] %v881_v22 }
 0x19d   : > { %v885_v23 = vld.sshfl [vmem:[#allocation1] sm:$0xff pattern:$0x73625140]  ;;  %v886_v24 = vld.sshfl [vmem:[#allocation1 + $0x8] sm:$0xff pattern:$0x73625140] }
 0x19e   : > { %v2479_v25 = vld.sshfl [vmem:[#allocation1 + $0x10] sm:$0xff pattern:$0x73625140]  ;;  %888 = vrot.lane.b32.xlu2 %v885_v23, %s3100_s27 }
 0x19f   : > { %905 = vst [vmem:[#allocation1] ss:$4 sm:$0xff] %v903_v26 }
 0x1a6   : > { %v906_v27 = vld.sshfl [vmem:[#allocation1] sm:$0xff pattern:$0x73625140]  ;;  %v907_v28 = vld.sshfl [vmem:[#allocation1 + $0x8] sm:$0xff pattern:$0x73625140] }
 0x1a7   : > { %911 = vrot.lane.b32.xlu1 %v907_v28, %s2277_s29  ;;  %909 = vrot.lane.b32.xlu0 %v906_v27, %s2277_s29 }
 0x1af   : > { %868 = vrot.lane.b32.xlu1 %v864_v20, %s2275_s26  ;;  %890 = vrot.lane.b32.xlu0 %v886_v24, %s3100_s27  ;;  %v1107_v0 = vpop.f32.mrf.mxu1  ;;  %s2284_s27 = smov 70  }
 0x1b7   : > { %1092 = vperm.xlu1 %2243, %v1089_v43   ;;  %v1109_v3 = vpop.f32.mrf.mxu1 }
 0x1c2   : > { %v755_v29 = vpop.permute.xlu2 %754 }
 0x1c4   : > { %v2538_v1 = vpop.f32.mrf.mxu2  ;;  %v593_v26 = vpop.f32.mrf.mxu3 }
 0x1c5   : > { %3126 = vst [vmem:[#allocation9_spill] sm:$0xff] %v2538_v1 }
 0x1cb   : > { %v2490_v32 = vpop.permute.xlu2 %779 }
 0x1cc   : > { %v582_v10 = vpop.f32.mrf.mxu2  ;;  %v595_v28 = vpop.f32.mrf.mxu3 }
 0x1da   : > { %v2486_v30 = vpop.permute.xlu0 %756 }
 0x1db   : > { %v761_v31 = vsel %vm760_vm4, %v755_v29, %v2486_v30 }
 0x1dc   : > { %766 = vst [vmem:[#allocation4] sm:$0xc] %v761_v31 }
 0x1dd   : > { %v823_v40 = vpop.permute.xlu2 %822 }
 0x1e3   : > { %v778_v33 = vpop.permute.xlu1 %777 }
 0x1e4   : > { %v784_v34 = vsel %vm3111_vm5, %v778_v33, %v2490_v32 }
 0x1e5   : > { %789 = vst [vmem:[#allocation4] sm:$0x30] %v784_v34 }
 0x1e6   : > { %v2512_v44 = vpop.permute.xlu2 %846 }
 0x1ec   : > { %v2501_v37 = vpop.permute.xlu1 %802  ;;  %v801_v38 = vpop.permute.xlu0 %800 }
 0x1ed   : > { %v807_v39 = vsel %vm806_vm8, %v801_v38, %v2501_v37 }
 0x1ee   : > { %812 = vst [vmem:[#allocation4] sm:$0xc0] %v807_v39 }
 0x1f5   : > { %v2505_v41 = vpop.permute.xlu0 %824  ;;  %v925_v59 = vld [vmem:[#allocation4] sm:$0xff] }
 0x1f6   : > { %v829_v42 = vsel %vm3110_vm9, %v823_v40, %v2505_v41  ;;  %vm1170_vm9 = vcmask 402704  }
 0x1f7   : > { %834 = vst [vmem:[#allocation4 + $0x18] sm:$0x3] %v829_v42 }
 0x1f8   : > { %v889_v51 = vpop.permute.xlu2 %888 }
 0x1fe   : > { %v845_v45 = vpop.permute.xlu1 %844 }
 0x1ff   : > { %v851_v46 = vsel %vm850_vm10, %v845_v45, %v2512_v44 }
 0x200   : > { %856 = vst [vmem:[#allocation4 + $0x18] sm:$0xc] %v851_v46 }
 0x207   : > { %v867_v47 = vpop.permute.xlu0 %866 }
 0x219   : > { %v2516_v48 = vpop.permute.xlu1 %911  ;;  %v910_v49 = vpop.permute.xlu0 %909 }
 0x21a   : > { %v916_v50 = vsel %vm915_vm11, %v910_v49, %v2516_v48 }
 0x21b   : > { %921 = vst [vmem:[#allocation4 + $0x30] sm:$0x3] %v916_v50 }
 0x221   : > { %v2520_v52 = vpop.permute.xlu1 %868  ;;  %v2522_v53 = vpop.permute.xlu0 %890 }
 0x222   : > { %v873_v54 = vsel %vm872_vm12, %v867_v47, %v2520_v52  ;;  %v895_v55 = vsel %vm3109_vm14, %v889_v51, %v2522_v53  ;;  %v931_v56 = vld [vmem:[#allocation4 + $0x30] sm:$0x3] }
 0x223   : > { %878 = vst [vmem:[#allocation4 + $0x18] sm:$0x30] %v873_v54  ;;  %v937_v57 = vpack.c.bf16 %v931_v56, %v931_v56 }
 0x224   : > { %900 = vst [vmem:[#allocation4 + $0x18] sm:$0xc0] %v895_v55 }
 0x225   : > { %v945_v58 = vsel %vm564_vm7, %v937_v57, 0 }
 0x226   : > { %959 = vmatpush.bf16.msrb.mxu2 %v945_v58 }
 0x229   : > { %v1093_v5 = vpop.permute.xlu1 %1092 }
 0x22a   : > { %v1108_v6 = vadd.f32 %v1107_v0, %v1093_v5 }
 0x22b   : > { %v928_v60 = vld [vmem:[#allocation4 + $0x18] sm:$0xff] }
 0x22c   : > { %v934_v61 = vpack.c.bf16 %v928_v60, %v925_v59  ;;  %v1124_v7 = vmax.f32 %v1108_v6, 0.0 }
 0x22e   : > { %960 = vmatpush.bf16.msrb.mxu2 %v934_v61  ;;  %1137 = vrot.lane.b32.xlu0 %v1124_v7, %s3102_s30  ;;  %s3127_s30 = smov 109  }
 0x22f   : > { %1152 = vrot.lane.b32.xlu1 %v1124_v7, %s2279_s17  ;;  %1132 = vrot.lane.b32.xlu2 %v1124_v7, %s2280_s18  ;;  %s2286_s17 = smov 78   ;;  %s2290_s18 = smov 86  }
 0x231   : > { %2153 = vmatmul.msk.bf16.vlgmr.msrb.gmra.mxu2 %vm3108_vm15, %v2532_v62  ;;  %vm1159_vm15 = vcmask 76802  }
 0x232   : > { %1118 = vmatpush.bf16.msra.mxu2 %v2426_v9 }
 0x236   : > { %1147 = vrot.lane.b32.xlu0 %v1124_v7, %s2281_s19  ;;  %s2295_s19 = smov 124  }
 0x237   : > { %1162 = vrot.lane.b32.xlu1 %v1124_v7, %s2282_s28  ;;  %1142 = vrot.lane.b32.xlu2 %v1124_v7, %s2283_s16  ;;  %s2287_s28 = smov 74   ;;  %s2288_s16 = smov 82  }
 0x23e   : > { %1172 = vrot.lane.b32.xlu0 %v1124_v7, %s2284_s27  ;;  %s2289_s27 = smov 94  }
 0x23f   : > { %1167 = vrot.lane.b32.xlu2 %v1124_v7, %s3104_s24  ;;  %s2291_s24 = smov 102  }
 0x241   : > { %2157 = vmatmul.msk.bf16.vlgmr.msra.gmra.mxu2 %vm512_vm1, %v1088_v35  ;;  %vm3107_vm1 = vcmask 125952  }
 0x289   : > { %v1133_v19 = vpop.permute.xlu2 %1132 }
 0x28a   : > { %1136 = vst.msk [vmem:[#allocation3] sm:$0x3] %vm1135_vm0, %v1133_v19  ;;  %vm1150_vm0 = vcmask 960304  }
 0x2a0   : > { %v1138_v20 = vpop.permute.xlu0 %1137 }
 0x2a1   : > { %v1153_v22 = vpop.permute.xlu1 %1152  ;;  %1141 = vst.msk [vmem:[#allocation3] sm:$0x3] %vm1140_vm2, %v1138_v20  ;;  %vm1165_vm2 = vcmask 238704  }
 0x2a2   : > { %v1154_v23 = vrot.slane %v1153_v22, 6 }
 0x2a9   : > { %v1163_v24 = vpop.permute.xlu1 %1162 }
 0x2b4   : > { %v2542_v9 = vpop.f32.mrf.mxu2 }
 0x2b5   : > { %993 = vst.msk [vmem:[#allocation6] sm:$0xf] %vm3107_vm1, %v2542_v9  ;;  %vm1158_vm1 = vcmask 1042384  }
 0x2b6   : > { %vm1160_vm14 = vmor %vm1159_vm15, %vm1158_vm1  ;;  %vm1194_vm15 = vcmask 1042320   ;;  %vm1195_vm1 = vcmask 11266  }
 0x2bc   : > { %v964_v11 = vpop.f32.mrf.mxu2 }
 0x2c4   : > { %v1120_v12 = vpop.f32.mrf.mxu2 }
 0x2c5   : > { %v1121_v14 = vadd.f32 %v1120_v12, %v1093_v5 }
 0x2c7   : > { %v1125_v15 = vmax.f32 %v1121_v14, 0.0 }
 0x2c9   : > { %1183 = vrot.lane.b32.xlu0 %v1125_v15, %s2286_s17  ;;  %1178 = vrot.lane.b32.xlu2 %v1125_v15, %s2287_s28  ;;  %s2292_s17 = smov 98   ;;  %s3128_s28 = smov 91  }
 0x2ca   : > { %1188 = vrot.lane.b32.xlu1 %v1125_v15, %s2288_s16  ;;  %s3114_s16 = smov 120  }
 0x2cc   : > { %v1122_v16 = vpop.f32.mrf.mxu2 }
 0x2d1   : > { %1208 = vrot.lane.b32.xlu0 %v1125_v15, %s2289_s27  ;;  %1203 = vrot.lane.b32.xlu2 %v1125_v15, %s2277_s29  ;;  %s2294_s27 = smov 122  }
 0x2d2   : > { %1198 = vrot.lane.b32.xlu1 %v1125_v15, %s2290_s18 }
 0x2d9   : > { %557 = vperm.xlu0 %2241, %v554_v18   ;;  %1218 = vrot.lane.b32.xlu2 %v1125_v15, %s2291_s24 }
 0x2da   : > { %1213 = vrot.lane.b32.xlu1 %v1125_v15, %s2292_s17 }
 0x2e1   : > { %804 = vrot.lane.b32.xlu0 %v2464_v8, %s2272_s23  ;;  %781 = vrot.lane.b32.xlu2 %v2460_v4, %s2271_s22  ;;  %v1156_v4 = vsel %vm1155_vm13, %v1154_v23, %v1153_v22  ;;  %v1148_v8 = vpop.permute.xlu0 %1147  ;;  %vm1175_vm13 = vcmask 566704  }
 0x2e2   : > { %758 = vrot.lane.b32.xlu1 %v2456_v63, %s2270_s14  ;;  %v1143_v63 = vpop.permute.xlu2 %1142 }
 0x2e3   : > { %1146 = vst.msk [vmem:[#allocation3] sm:$0x3] %vm1145_vm6, %v1143_v63  ;;  %vm791_vm6 = vcmask 242692  }
 0x2e4   : > { %1151 = vst.msk [vmem:[#allocation3] sm:$0x3] %vm1150_vm0, %v1148_v8  ;;  %vm1191_vm0 = vcmask 670720  }
 0x2e5   : > { %1161 = vst.msk [vmem:[#allocation3] sm:$0xf] %vm1160_vm14, %v1156_v4  ;;  %vm1186_vm14 = vcmask 894704  }
 0x2e6   : > { %1166 = vst.msk [vmem:[#allocation3 + $0x2] sm:$0x3] %vm1165_vm2, %v1163_v24  ;;  %vm1196_vm2 = vmor %vm1195_vm1, %vm1194_vm15  ;;  %vm1216_vm15 = vcmask 665104   ;;  %vm1221_vm1 = vcmask 829104  }
 0x2e9   : > { %870 = vrot.lane.b32.xlu0 %v2476_v21, %s2275_s26  ;;  %848 = vrot.lane.b32.xlu2 %v2472_v17, %s2274_s25  ;;  %v908_v21 = vld.sshfl [vmem:[#allocation1 + $0x10] sm:$0xff pattern:$0x73625140]  ;;  %v1173_v17 = vpop.permute.xlu0 %1172 }
 0x2ea   : > { %826 = vrot.lane.b32.xlu1 %v2468_v13, %s3127_s30  ;;  %v1168_v13 = vpop.permute.xlu2 %1167  ;;  %s2297_s30 = smov 118  }
 0x2eb   : > { %1171 = vst.msk [vmem:[#allocation3 + $0x2] sm:$0x3] %vm1170_vm9, %v1168_v13  ;;  %vm1181_vm9 = vcmask 730704  }
 0x2ec   : > { %1176 = vst.msk [vmem:[#allocation3 + $0x2] sm:$0x3] %vm1175_vm13, %v1173_v17  ;;  %vm768_vm13 = vcmask 240642  }
 0x2f1   : > { %995 = vrot.lane.b32.xlu0 %v2542_v9, %s2271_s22  ;;  %913 = vrot.lane.b32.xlu2 %v908_v21, %s2277_s29  ;;  %s2296_s29 = smov 116  }
 0x2f2   : > { %892 = vrot.lane.b32.xlu1 %v2479_v25, %s3128_s28  ;;  %s3115_s28 = smov 112  }
 0x2f9   : > { %1010 = vrot.lane.b32.xlu0 %v2542_v9, %s3114_s16  ;;  %1005 = vrot.lane.b32.xlu2 %v2542_v9, %s2294_s27  ;;  %s2299_s27 = smov 114   ;;  %s2307_s16 = smov 87  }
 0x2fa   : > { %1000 = vrot.lane.b32.xlu1 %v2542_v9, %s2295_s19 }
 0x301   : > { %1020 = vrot.lane.b32.xlu2 %v2542_v9, %s2296_s29 }
 0x302   : > { %1015 = vrot.lane.b32.xlu1 %v2542_v9, %s2297_s30  ;;  %s2301_s30 = smov 106  }
 0x323   : > { %v1179_v25 = vpop.permute.xlu2 %1178 }
 0x324   : > { %1182 = vst.msk [vmem:[#allocation3 + $0x2] sm:$0x3] %vm1181_vm9, %v1179_v25  ;;  %vm1201_vm9 = vcmask 173104  }
 0x32b   : > { %v1204_v27 = vpop.permute.xlu2 %1203 }
 0x333   : > { %v1219_v29 = vpop.permute.xlu2 %1218 }
 0x33b   : > { %v1184_v31 = vpop.permute.xlu0 %1183  ;;  %v782_v33 = vpop.permute.xlu2 %781 }
 0x33c   : > { %1187 = vst.msk [vmem:[#allocation3 + $0x2] sm:$0x3] %vm1186_vm14, %v1184_v31  ;;  %v785_v34 = vsel %vm3111_vm5, %v2490_v32, %v782_v33  ;;  %v1189_v35 = vpop.permute.xlu1 %1188  ;;  %vm1206_vm14 = vcmask 337104   ;;  %vm1211_vm5 = vcmask 501104  }
 0x33d   : > { %790 = vst [vmem:[#allocation4 + $0x8] sm:$0x30] %v785_v34  ;;  %v1190_v36 = vrot.slane %v1189_v35, 6 }
 0x33e   : > { %792 = vst.msk [vmem:[#allocation4 + $0x10] sm:$0x30] %vm791_vm6, %v782_v33 }
 0x33f   : > { %v1192_v38 = vsel %vm1191_vm0, %v1190_v36, %v1189_v35  ;;  %vm814_vm0 = vcmask 244742  }
 0x340   : > { %1197 = vst.msk [vmem:[#allocation3 + $0x2] sm:$0xf] %vm1196_vm2, %v1192_v38  ;;  %vm3123_vm2 = vcmask 519552  }
 0x343   : > { %v1209_v39 = vpop.permute.xlu0 %1208  ;;  %v849_v40 = vpop.permute.xlu2 %848 }
 0x344   : > { %v852_v42 = vsel %vm850_vm10, %v2512_v44, %v849_v40  ;;  %858 = vst.msk [vmem:[#allocation4 + $0x28] sm:$0xc] %vm768_vm13, %v849_v40  ;;  %v1199_v32 = vpop.permute.xlu1 %1198 }
 0x345   : > { %857 = vst [vmem:[#allocation4 + $0x20] sm:$0xc] %v852_v42 }
 0x346   : > { %1202 = vst.msk [vmem:[#allocation3 + $0x4] sm:$0x3] %vm1201_vm9, %v1199_v32  ;;  %vm3119_vm9 = vcmask 913152  }
 0x347   : > { %1207 = vst.msk [vmem:[#allocation3 + $0x4] sm:$0x3] %vm1206_vm14, %v1204_v27  ;;  %vm3133_vm14 = vcmask 146432  }
 0x348   : > { %1212 = vst.msk [vmem:[#allocation3 + $0x4] sm:$0x3] %vm1211_vm5, %v1209_v39  ;;  %vm3131_vm5 = vcmask 891904  }
 0x34b   : > { %v2584_v43 = vpop.permute.xlu0 %557  ;;  %v914_v45 = vpop.permute.xlu2 %913 }
 0x34c   : > { %3129 = vst [vmem:[#allocation10_spill] sm:$0xff] %v2584_v43  ;;  %v2587_v46 = vadd.f32 %v593_v26, %v2584_v43  ;;  %v917_v47 = vsel %vm915_vm11, %v2516_v48, %v914_v45  ;;  %v1214_v44 = vpop.permute.xlu1 %1213  ;;  %vm3132_vm11 = vcmask 744448  }
 0x34d   : > { %923 = vst.msk [vmem:[#allocation4 + $0x40] sm:$0x3] %vm745_vm3, %v914_v45 }
 0x34e   : > { %3130 = vst [vmem:[#allocation11_spill] sm:$0xff] %v2587_v46 }
 0x34f   : > { %922 = vst [vmem:[#allocation4 + $0x38] sm:$0x3] %v917_v47 }
 0x350   : > { %1217 = vst.msk [vmem:[#allocation3 + $0x4] sm:$0x3] %vm1216_vm15, %v1214_v44  ;;  %vm3134_vm15 = vmmov %vm3133_vm14 }
 0x351   : > { %1222 = vst.msk [vmem:[#allocation3 + $0x4] sm:$0x3] %vm1221_vm1, %v1219_v29  ;;  %vm1027_vm1 = vcmask 1043456  }
 0x353   : > { %v805_v49 = vpop.permute.xlu0 %804 }
 0x354   : > { %v808_v50 = vsel %vm806_vm8, %v2501_v37, %v805_v49  ;;  %815 = vst.msk [vmem:[#allocation4 + $0x10] sm:$0xc0] %vm814_vm0, %v805_v49  ;;  %v759_v51 = vpop.permute.xlu1 %758  ;;  %v933_v55 = vld [vmem:[#allocation4 + $0x40] sm:$0x3]  ;;  %vm998_vm8 = vcmask 257152  }
 0x355   : > { %813 = vst [vmem:[#allocation4 + $0x8] sm:$0xc0] %v808_v50  ;;  %v939_v48 = vpack.c.bf16 %v933_v55, %v933_v55  ;;  %v762_v58 = vsel %vm760_vm4, %v2486_v30, %v759_v51 }
 0x356   : > { %v932_v56 = vld [vmem:[#allocation4 + $0x38] sm:$0x3]  ;;  %767 = vst [vmem:[#allocation4 + $0x8] sm:$0xc] %v762_v58 }
 0x357   : > { %v938_v57 = vpack.c.bf16 %v932_v56, %v932_v56  ;;  %v951_v0 = vsel %vm564_vm7, %v939_v48, 0  ;;  %769 = vst.msk [vmem:[#allocation4 + $0x10] sm:$0xc] %vm768_vm13, %v759_v51  ;;  %vm3120_vm13 = vcmask 781952  }
 0x358   : > { %v1223_v54 = vld [vmem:[#allocation3] sm:$0x3f]  ;;  %985 = vmatpush.bf16.msra.mxu0 %v951_v0 }
 0x359   : > { %1225 = vst [vmem:[#allocation1] ss:$4 sm:$0xff] %v1223_v54  ;;  %v1236_v61 = vld [vmem:[#allocation3] sm:$0x3f]  ;;  %v948_v37 = vsel %vm564_vm7, %v938_v57, 0 }
 0x35a   : > { %972 = vmatpush.bf16.msrb.mxu3 %v948_v37  ;;  %v1258_v12 = vld [vmem:[#allocation3] sm:$0x3f] }
 0x35b   : > { %v871_v59 = vpop.permute.xlu0 %870  ;;  %v1303_v29 = vld [vmem:[#allocation3] sm:$0x3f] }
 0x35c   : > { %v827_v60 = vpop.permute.xlu1 %826  ;;  %v874_v7 = vsel %vm872_vm12, %v2520_v52, %v871_v59  ;;  %880 = vst.msk [vmem:[#allocation4 + $0x28] sm:$0x30] %vm791_vm6, %v871_v59  ;;  %vm1234_vm12 = vcmask 484352   ;;  %vm3124_vm6 = vcmask 388352   ;;  %v1324_v35 = vld [vmem:[#allocation3] sm:$0x3f] }
 0x35d   : > { %v830_v30 = vsel %vm3131_vm5, %v2505_v41, %v827_v60  ;;  %879 = vst [vmem:[#allocation4 + $0x20] sm:$0x30] %v874_v7  ;;  %v1006_v41 = vpop.permute.xlu2 %1005  ;;  %v926_v63 = vld [vmem:[#allocation4 + $0x8] sm:$0xff]  ;;  %v1345_v39 = vld [vmem:[#allocation3] sm:$0x3f]  ;;  %vm1032_vm5 = vcmask 932864  }
 0x35e   : > { %835 = vst [vmem:[#allocation4 + $0x20] sm:$0x3] %v830_v30  ;;  %v927_v8 = vld [vmem:[#allocation4 + $0x10] sm:$0xff]  ;;  %v1367_v45 = vld [vmem:[#allocation3] sm:$0x3f] }
 0x35f   : > { %836 = vst.msk [vmem:[#allocation4 + $0x28] sm:$0x3] %vm745_vm3, %v827_v60  ;;  %vm3122_vm3 = vcmask 650752   ;;  %v1389_v50 = vld [vmem:[#allocation3] sm:$0x3f] }
 0x360   : > { %v1226_v3 = vld.sshfl [vmem:[#allocation1] sm:$0xff pattern:$0x73625140]  ;;  %v1227_v5 = vld.sshfl [vmem:[#allocation1 + $0x8] sm:$0xff pattern:$0x73625140] }
 0x361   : > { %v1228_v6 = vld.sshfl [vmem:[#allocation1 + $0x10] sm:$0xff pattern:$0x73625140]  ;;  %1232 = vst [vmem:[#allocation5] sm:$0x3] %v1226_v3 }
 0x362   : > { %1239 = vst [vmem:[#allocation1 + $0x1] ss:$4 sm:$0xff] %v1236_v61  ;;  %v1410_v56 = vld [vmem:[#allocation3] sm:$0x3f] }
 0x363   : > { %1233 = vst [vmem:[#allocation5 + $0x8] sm:$0x3] %v1227_v5  ;;  %v996_v10 = vpop.permute.xlu0 %995  ;;  %v1432_v59 = vld [vmem:[#allocation3] sm:$0x3f] }
 0x364   : > { %v893_v11 = vpop.permute.xlu1 %892  ;;  %999 = vst.msk [vmem:[#allocation6] sm:$0xf] %vm998_vm8, %v996_v10  ;;  %v1454_v37 = vld [vmem:[#allocation3] sm:$0x3f] }
 0x365   : > { %v896_v52 = vsel %vm3132_vm11, %v2522_v53, %v893_v11  ;;  %902 = vst.msk [vmem:[#allocation4 + $0x28] sm:$0xc0] %vm814_vm0, %v893_v11  ;;  %v1280_v53 = vld [vmem:[#allocation3] sm:$0x3f]  ;;  %v1021_v25 = vpop.permute.xlu2 %1020  ;;  %vm3138_vm0 = vcmask 125952   ;;  %vm3118_vm11 = vcmask 1044352  }
 0x366   : > { %901 = vst [vmem:[#allocation4 + $0x20] sm:$0xc0] %v896_v52  ;;  %v1476_v7 = vld [vmem:[#allocation3] sm:$0x3f] }
 0x367   : > { %1235 = vst.msk [vmem:[#allocation5 + $0x10] sm:$0x3] %vm1234_vm12, %v1228_v6 }
 0x369   : > { %v2606_v14 = vld.sshfl [vmem:[#allocation1] sm:$0xff pattern:$0x73625140]  ;;  %v2608_v15 = vld.sshfl [vmem:[#allocation1 + $0x8] sm:$0xff pattern:$0x73625140] }
 0x36a   : > { %v2612_v16 = vld.sshfl [vmem:[#allocation1 + $0x10] sm:$0xff pattern:$0x73625140] }
 0x36b   : > { %1261 = vst [vmem:[#allocation1 + $0x2] ss:$4 sm:$0xff] %v1258_v12  ;;  %v1011_v19 = vpop.permute.xlu0 %1010  ;;  %v1497_v12 = vld [vmem:[#allocation3] sm:$0x3f] }
 0x36c   : > { %v1001_v18 = vpop.permute.xlu1 %1000  ;;  %v930_v24 = vld [vmem:[#allocation4 + $0x28] sm:$0xff] }
 0x36d   : > { %1004 = vst.msk [vmem:[#allocation6] sm:$0xf] %vm3124_vm6, %v1001_v18  ;;  %v929_v4 = vld [vmem:[#allocation4 + $0x20] sm:$0xff]  ;;  %v936_v13 = vpack.c.bf16 %v930_v24, %v927_v8  ;;  %v1541_v8 = vld [vmem:[#allocation3] sm:$0x3f] }
 0x36e   : > { %1009 = vst.msk [vmem:[#allocation6] sm:$0xf] %vm3123_vm2, %v1006_v41  ;;  %v935_v21 = vpack.c.bf16 %v929_v4, %v926_v63 }
 0x36f   : > { %1014 = vst.msk [vmem:[#allocation6] sm:$0xf] %vm3122_vm3, %v1011_v19  ;;  %986 = vmatpush.bf16.msra.mxu0 %v936_v13  ;;  %v1519_v19 = vld [vmem:[#allocation3] sm:$0x3f] }
 0x370   : > { %973 = vmatpush.bf16.msrb.mxu3 %v935_v21 }
 0x372   : > { %v2620_v20 = vld.sshfl [vmem:[#allocation1] sm:$0xff pattern:$0x73625140]  ;;  %v2622_v22 = vld.sshfl [vmem:[#allocation1 + $0x8] sm:$0xff pattern:$0x73625140]  ;;  %2155 = vmatmul.msk.bf16.vlgmr.msra.gmra.mxu0 %vm3134_vm15, %v2532_v62 }
 0x373   : > { %v2624_v23 = vld.sshfl [vmem:[#allocation1 + $0x10] sm:$0xff pattern:$0x73625140]  ;;  %2154 = vmatmul.msk.bf16.vlgmr.msrb.gmra.mxu3 %vm3133_vm14, %v2532_v62  ;;  %vm1067_vm14 = vcmask 818176   ;;  %vm3140_vm15 = vcmask 1031168  }
 0x374   : > { %1283 = vst [vmem:[#allocation1 + $0x3] ss:$4 sm:$0xff] %v1280_v53  ;;  %v1016_v17 = vpop.permute.xlu1 %1015 }
 0x375   : > { %1019 = vst.msk [vmem:[#allocation6] sm:$0xf] %vm3120_vm13, %v1016_v17  ;;  %v1563_v17 = vld [vmem:[#allocation3] sm:$0x3f] }
 0x376   : > { %1024 = vst.msk [vmem:[#allocation6] sm:$0xf] %vm3119_vm9, %v1021_v25 }
 0x37b   : > { %v2632_v26 = vld.sshfl [vmem:[#allocation1] sm:$0xff pattern:$0x73625140]  ;;  %v2634_v27 = vld.sshfl [vmem:[#allocation1 + $0x8] sm:$0xff pattern:$0x73625140] }
 0x37c   : > { %v2636_v28 = vld.sshfl [vmem:[#allocation1 + $0x10] sm:$0xff pattern:$0x73625140] }
 0x37d   : > { %1305 = vst [vmem:[#allocation1] ss:$4 sm:$0xff] %v1303_v29 }
 0x384   : > { %v2638_v31 = vld.sshfl [vmem:[#allocation1] sm:$0xff pattern:$0x73625140]  ;;  %v2640_v33 = vld.sshfl [vmem:[#allocation1 + $0x8] sm:$0xff pattern:$0x73625140] }
 0x385   : > { %v2642_v34 = vld.sshfl [vmem:[#allocation1 + $0x10] sm:$0xff pattern:$0x73625140] }
 0x386   : > { %1327 = vst [vmem:[#allocation1 + $0x1] ss:$4 sm:$0xff] %v1324_v35 }
 0x38d   : > { %v2644_v36 = vld.sshfl [vmem:[#allocation1] sm:$0xff pattern:$0x73625140]  ;;  %v2646_v38 = vld.sshfl [vmem:[#allocation1 + $0x8] sm:$0xff pattern:$0x73625140] }
 0x38e   : > { %v2648_v62 = vld.sshfl [vmem:[#allocation1 + $0x10] sm:$0xff pattern:$0x73625140] }
 0x38f   : > { %3135 = vst [vmem:[#allocation12_spill] sm:$0xff] %v2648_v62 }
 0x390   : > { %1348 = vst [vmem:[#allocation1 + $0x2] ss:$4 sm:$0xff] %v1345_v39  ;;  %v1584_v39 = vld [vmem:[#allocation3] sm:$0x3f] }
 0x397   : > { %v2650_v40 = vld.sshfl [vmem:[#allocation1] sm:$0xff pattern:$0x73625140]  ;;  %v2652_v42 = vld.sshfl [vmem:[#allocation1 + $0x8] sm:$0xff pattern:$0x73625140] }
 0x398   : > { %v2654_v32 = vld.sshfl [vmem:[#allocation1 + $0x10] sm:$0xff pattern:$0x73625140] }
 0x399   : > { %3136 = vst [vmem:[#allocation13_spill] sm:$0xff] %v2654_v32 }
 0x39a   : > { %1370 = vst [vmem:[#allocation1 + $0x3] ss:$4 sm:$0xff] %v1367_v45 }
 0x3a1   : > { %v2656_v47 = vld.sshfl [vmem:[#allocation1] sm:$0xff pattern:$0x73625140]  ;;  %v2658_v44 = vld.sshfl [vmem:[#allocation1 + $0x8] sm:$0xff pattern:$0x73625140] }
 0x3a2   : > { %v2660_v49 = vld.sshfl [vmem:[#allocation1 + $0x10] sm:$0xff pattern:$0x73625140] }
 0x3a3   : > { %3137 = vst [vmem:[#allocation14_spill] sm:$0xff] %v2660_v49 }
 0x3a4   : > { %1391 = vst [vmem:[#allocation1] ss:$4 sm:$0xff] %v1389_v50 }
 0x3ab   : > { %v2662_v51 = vld.sshfl [vmem:[#allocation1] sm:$0xff pattern:$0x73625140]  ;;  %v2664_v54 = vld.sshfl [vmem:[#allocation1 + $0x8] sm:$0xff pattern:$0x73625140] }
 0x3ac   : > { %v2666_v55 = vld.sshfl [vmem:[#allocation1 + $0x10] sm:$0xff pattern:$0x73625140] }
 0x3ad   : > { %1413 = vst [vmem:[#allocation1 + $0x1] ss:$4 sm:$0xff] %v1410_v56 }
 0x3b4   : > { %v2668_v48 = vld.sshfl [vmem:[#allocation1] sm:$0xff pattern:$0x73625140]  ;;  %v2670_v57 = vld.sshfl [vmem:[#allocation1 + $0x8] sm:$0xff pattern:$0x73625140] }
 0x3b5   : > { %v2672_v58 = vld.sshfl [vmem:[#allocation1 + $0x10] sm:$0xff pattern:$0x73625140] }
 0x3b6   : > { %1435 = vst [vmem:[#allocation1 + $0x2] ss:$4 sm:$0xff] %v1432_v59 }
 0x3bd   : > { %v2674_v60 = vld.sshfl [vmem:[#allocation1] sm:$0xff pattern:$0x73625140]  ;;  %v2676_v61 = vld.sshfl [vmem:[#allocation1 + $0x8] sm:$0xff pattern:$0x73625140] }
 0x3be   : > { %v2678_v0 = vld.sshfl [vmem:[#allocation1 + $0x10] sm:$0xff pattern:$0x73625140] }
 0x3bf   : > { %1457 = vst [vmem:[#allocation1 + $0x3] ss:$4 sm:$0xff] %v1454_v37  ;;  %v1606_v37 = vld [vmem:[#allocation3] sm:$0x3f] }
 0x3c6   : > { %v2680_v3 = vld.sshfl [vmem:[#allocation1] sm:$0xff pattern:$0x73625140]  ;;  %v2682_v5 = vld.sshfl [vmem:[#allocation1 + $0x8] sm:$0xff pattern:$0x73625140] }
 0x3c7   : > { %v2684_v6 = vld.sshfl [vmem:[#allocation1 + $0x10] sm:$0xff pattern:$0x73625140] }
 0x3c8   : > { %1478 = vst [vmem:[#allocation1] ss:$4 sm:$0xff] %v1476_v7 }
 0x3cf   : > { %v2686_v30 = vld.sshfl [vmem:[#allocation1] sm:$0xff pattern:$0x73625140]  ;;  %v2688_v10 = vld.sshfl [vmem:[#allocation1 + $0x8] sm:$0xff pattern:$0x73625140] }
 0x3d0   : > { %v2690_v11 = vld.sshfl [vmem:[#allocation1 + $0x10] sm:$0xff pattern:$0x73625140] }
 0x3d1   : > { %1500 = vst [vmem:[#allocation1 + $0x1] ss:$4 sm:$0xff] %v1497_v12 }
 0x3d8   : > { %v2692_v52 = vld.sshfl [vmem:[#allocation1] sm:$0xff pattern:$0x73625140]  ;;  %v2694_v41 = vld.sshfl [vmem:[#allocation1 + $0x8] sm:$0xff pattern:$0x73625140] }
 0x3d9   : > { %v2696_v18 = vld.sshfl [vmem:[#allocation1 + $0x10] sm:$0xff pattern:$0x73625140] }
 0x3da   : > { %1522 = vst [vmem:[#allocation1 + $0x2] ss:$4 sm:$0xff] %v1519_v19 }
 0x3e1   : > { %v2698_v53 = vld.sshfl [vmem:[#allocation1] sm:$0xff pattern:$0x73625140]  ;;  %v2700_v63 = vld.sshfl [vmem:[#allocation1 + $0x8] sm:$0xff pattern:$0x73625140] }
 0x3e2   : > { %v2702_v4 = vld.sshfl [vmem:[#allocation1 + $0x10] sm:$0xff pattern:$0x73625140] }
 0x3e3   : > { %1544 = vst [vmem:[#allocation1 + $0x3] ss:$4 sm:$0xff] %v1541_v8 }
 0x3ea   : > { %v2704_v24 = vld.sshfl [vmem:[#allocation1] sm:$0xff pattern:$0x73625140]  ;;  %v2706_v21 = vld.sshfl [vmem:[#allocation1 + $0x8] sm:$0xff pattern:$0x73625140] }
 0x3eb   : > { %v2708_v13 = vld.sshfl [vmem:[#allocation1 + $0x10] sm:$0xff pattern:$0x73625140] }
 0x3ec   : > { %1565 = vst [vmem:[#allocation1] ss:$4 sm:$0xff] %v1563_v17 }
 0x3ef   : > { %v988_v45 = vpop.f32.mrf.mxu0 }
 0x3f0   : > { %v1062_v1 = vrot.slane %v988_v45, 4 }
 0x3f3   : > { %v2710_v25 = vld.sshfl [vmem:[#allocation1] sm:$0xff pattern:$0x73625140]  ;;  %v2712_v29 = vld.sshfl [vmem:[#allocation1 + $0x8] sm:$0xff pattern:$0x73625140] }
 0x3f4   : > { %v2714_v35 = vld.sshfl [vmem:[#allocation1 + $0x10] sm:$0xff pattern:$0x73625140] }
 0x3f5   : > { %1587 = vst [vmem:[#allocation1 + $0x1] ss:$4 sm:$0xff] %v1584_v39 }
 0x3f6   : > { %v975_v7 = vpop.f32.mrf.mxu3 }
 0x3f7   : > { %1041 = vrot.lane.b32.xlu2 %v975_v7, %s2272_s23  ;;  %1037 = vrot.lane.b32.xlu1 %v975_v7, %s3115_s28  ;;  %v1026_v12 = vrot.slane %v975_v7, 4  ;;  %v990_v8 = vpop.f32.mrf.mxu0  ;;  %s3116_s23 = smov 104   ;;  %v1063_v43 = vsel %vm1027_vm1, %v975_v7, %v1062_v1  ;;  %s2308_s28 = smov 85  }
 0x3f8   : > { %v1650_v8 = vld [vmem:[#allocation3] sm:$0xff] }
 0x3f9   : > { %v1028_v19 = vsel %vm1027_vm1, %v2542_v9, %v1026_v12 }
 0x3fa   : > { %1029 = vrot.lane.b32.xlu0 %v1028_v19, %s2299_s27  ;;  %s2302_s27 = smov 100  }
 0x3fc   : > { %v2716_v50 = vld.sshfl [vmem:[#allocation1] sm:$0xff pattern:$0x73625140]  ;;  %v2718_v56 = vld.sshfl [vmem:[#allocation1 + $0x8] sm:$0xff pattern:$0x73625140] }
 0x3fd   : > { %v2720_v59 = vld.sshfl [vmem:[#allocation1 + $0x10] sm:$0xff pattern:$0x73625140] }
 0x3fe   : > { %1609 = vst [vmem:[#allocation1 + $0x2] ss:$4 sm:$0xff] %v1606_v37  ;;  %v1628_v37 = vld [vmem:[#allocation3] sm:$0x3f]  ;;  %v977_v46 = vpop.f32.mrf.mxu3 }
 0x3ff   : > { %1053 = vrot.lane.b32.xlu2 %v975_v7, %s3116_s23  ;;  %1049 = vrot.lane.b32.xlu1 %v975_v7, %s2301_s30  ;;  %v1076_v46 = vld [vmem:[%s3088_s8] sm:$0xf] }
 0x402   : > { %1045 = vrot.lane.b32.xlu0 %v975_v7, %s2274_s25 }
 0x405   : > { %v2726_v17 = vld.sshfl [vmem:[#allocation1] sm:$0xff pattern:$0x73625140]  ;;  %v2728_v39 = vld.sshfl [vmem:[#allocation1 + $0x8] sm:$0xff pattern:$0x73625140] }
 0x406   : > { %v2730_v2 = vld.sshfl [vmem:[#allocation1 + $0x10] sm:$0xff pattern:$0x73625140] }
 0x407   : > { %1631 = vst [vmem:[#allocation1 + $0x3] ss:$4 sm:$0xff] %v1628_v37  ;;  %1071 = vrot.lane.b32.xlu2 %v988_v45, %s2292_s17  ;;  %1064 = vrot.lane.b32.xlu1 %v1063_v43, %s2302_s27  ;;  %s2306_s17 = smov 88  }
 0x40a   : > { %1057 = vrot.lane.b32.xlu0 %v975_v7, %s2291_s24  ;;  %s2303_s24 = smov 125  }
 0x40e   : > { %v2735_v9 = vld.sshfl [vmem:[#allocation1] sm:$0xff pattern:$0x73625140]  ;;  %v2737_v12 = vld.sshfl [vmem:[#allocation1 + $0x8] sm:$0xff pattern:$0x73625140] }
 0x40f   : > { %v2739_v19 = vld.sshfl [vmem:[#allocation1 + $0x10] sm:$0xff pattern:$0x73625140]  ;;  %1245 = vrot.lane.b32.xlu2 %v2608_v15, %s2270_s14  ;;  %1243 = vrot.lane.b32.xlu1 %v2606_v14, %s2270_s14 }
 0x410   : > { %1652 = vst [vmem:[#allocation1] ss:$4 sm:$0xff] %v1650_v8 }
 0x412   : > { %1079 = vperm.xlu0 %2241, %v1076_v46  }
 0x417   : > { %v2748_v37 = vld.sshfl [vmem:[#allocation1] sm:$0xff pattern:$0x73625140]  ;;  %v2750_v62 = vld.sshfl [vmem:[#allocation1 + $0x8] sm:$0xff pattern:$0x73625140]  ;;  %1267 = vrot.lane.b32.xlu2 %v2622_v22, %s2271_s22  ;;  %1265 = vrot.lane.b32.xlu1 %v2620_v20, %s2271_s22 }
 0x418   : > { %v2752_v32 = vld.sshfl [vmem:[#allocation1 + $0x10] sm:$0xff pattern:$0x73625140]  ;;  %v2754_v49 = vld.sshfl [vmem:[#allocation1 + $0x18] sm:$0xff pattern:$0x73625140] }
 0x419   : > { %1678 = vst [vmem:[#allocation1 + $0x1] ss:$4 sm:$0xff] %v1650_v8 }
 0x41a   : > { %1247 = vrot.lane.b32.xlu0 %v2612_v16, %s2270_s14  ;;  %s2304_s14 = smov 107  }
 0x41f   : > { %1309 = vrot.lane.b32.xlu2 %v2638_v31, %s2295_s19  ;;  %1289 = vrot.lane.b32.xlu1 %v2634_v27, %s2303_s24 }
 0x420   : > { %v2760_v1 = vld.sshfl [vmem:[#allocation1] sm:$0xff pattern:$0x73625140]  ;;  %v2762_v43 = vld.sshfl [vmem:[#allocation1 + $0x8] sm:$0xff pattern:$0x73625140] }
 0x421   : > { %v2768_v45 = vld.sshfl [vmem:[#allocation1 + $0x10] sm:$0xff pattern:$0x73625140]  ;;  %v2770_v7 = vld.sshfl [vmem:[#allocation1 + $0x18] sm:$0xff pattern:$0x73625140] }
 0x422   : > { %1704 = vst [vmem:[#allocation1 + $0x2] ss:$4 sm:$0xff] %v1650_v8  ;;  %1269 = vrot.lane.b32.xlu0 %v2624_v23, %s2271_s22  ;;  %s2305_s22 = smov 105  }
 0x427   : > { %1333 = vrot.lane.b32.xlu2 %v2646_v38, %s2274_s25  ;;  %1331 = vrot.lane.b32.xlu1 %v2644_v36, %s2274_s25 }
 0x429   : > { %v2778_v14 = vld.sshfl [vmem:[#allocation1] sm:$0xff pattern:$0x73625140]  ;;  %v2780_v15 = vld.sshfl [vmem:[#allocation1 + $0x8] sm:$0xff pattern:$0x73625140] }
 0x42a   : > { %v2782_v20 = vld.sshfl [vmem:[#allocation1 + $0x10] sm:$0xff pattern:$0x73625140]  ;;  %v2784_v22 = vld.sshfl [vmem:[#allocation1 + $0x18] sm:$0xff pattern:$0x73625140]  ;;  %1287 = vrot.lane.b32.xlu0 %v2632_v26, %s2303_s24 }
 0x42b   : > { %1730 = vst [vmem:[#allocation1 + $0x3] ss:$4 sm:$0xff] %v1650_v8 }
 0x42f   : > { %1374 = vrot.lane.b32.xlu2 %v2656_v47, %s2301_s30  ;;  %1354 = vrot.lane.b32.xlu1 %v2652_v42, %s2304_s14 }
 0x432   : > { %v2792_v16 = vld.sshfl [vmem:[#allocation1 + $0x8] sm:$0xff pattern:$0x73625140]  ;;  %v2794_v27 = vld.sshfl [vmem:[#allocation1 + $0x18] sm:$0xff pattern:$0x73625140]  ;;  %1311 = vrot.lane.b32.xlu0 %v2640_v33, %s2295_s19 }
 0x433   : > { %v2798_v31 = vld.sshfl [vmem:[#allocation1] sm:$0xff pattern:$0x73625140]  ;;  %v2800_v46 = vld.sshfl [vmem:[#allocation1 + $0x10] sm:$0xff pattern:$0x73625140] }
 0x434   : > { %1754 = vst [vmem:[#allocation1] ss:$4 sm:$0xff] %v1650_v8 }
 0x437   : > { %1395 = vrot.lane.b32.xlu2 %v2662_v51, %s2305_s22  ;;  %1399 = vrot.lane.b32.xlu1 %v2666_v55, %s2305_s22 }
 0x43a   : > { %1352 = vrot.lane.b32.xlu0 %v2650_v40, %s2304_s14 }
 0x43f   : > { %1419 = vrot.lane.b32.xlu2 %v2670_v57, %s3116_s23  ;;  %1417 = vrot.lane.b32.xlu1 %v2668_v48, %s3116_s23 }
 0x442   : > { %1376 = vrot.lane.b32.xlu0 %v2658_v44, %s2301_s30 }
 0x447   : > { %1421 = vrot.lane.b32.xlu2 %v2672_v58, %s3116_s23  ;;  %1441 = vrot.lane.b32.xlu1 %v2676_v61, %s2306_s17  ;;  %s2312_s23 = smov 65  }
 0x44a   : > { %1397 = vrot.lane.b32.xlu0 %v2664_v54, %s2305_s22  ;;  %s2309_s22 = smov 84  }
 0x44f   : > { %1461 = vrot.lane.b32.xlu2 %v2680_v3, %s2307_s16  ;;  %1465 = vrot.lane.b32.xlu1 %v2684_v6, %s2307_s16 }
 0x451   : > { %v1042_v23 = vpop.permute.xlu2 %1041 }
 0x452   : > { %1439 = vrot.lane.b32.xlu0 %v2674_v60, %s2306_s17 }
 0x457   : > { %1484 = vrot.lane.b32.xlu2 %v2688_v10, %s2290_s18  ;;  %1482 = vrot.lane.b32.xlu1 %v2686_v30, %s2290_s18 }
 0x459   : > { %v1054_v26 = vpop.permute.xlu2 %1053 }
 0x45a   : > { %1443 = vrot.lane.b32.xlu0 %v2678_v0, %s2306_s17 }
 0x45f   : > { %1486 = vrot.lane.b32.xlu2 %v2690_v11, %s2290_s18  ;;  %1506 = vrot.lane.b32.xlu1 %v2694_v41, %s2308_s28  ;;  %s3117_s18 = smov 68  }
 0x461   : > { %v1072_v33 = vpop.permute.xlu2 %1071 }
 0x462   : > { %1463 = vrot.lane.b32.xlu0 %v2682_v5, %s2307_s16  ;;  %s2311_s16 = smov 67  }
 0x467   : > { %1526 = vrot.lane.b32.xlu2 %v2698_v53, %s2309_s22  ;;  %1530 = vrot.lane.b32.xlu1 %v2702_v4, %s2309_s22 }
 0x469   : > { %v1246_v36 = vpop.permute.xlu2 %1245  ;;  %v1038_v38 = vpop.permute.xlu1 %1037 }
 0x46a   : > { %1040 = vst.msk [vmem:[#allocation6 + $0x4] sm:$0xf] %vm3138_vm0, %v1038_v38  ;;  %1504 = vrot.lane.b32.xlu0 %v2692_v52, %s2308_s28  ;;  %vm1256_vm0 = vcmask 486402  }
 0x46b   : > { %1044 = vst.msk [vmem:[#allocation6 + $0x4] sm:$0xf] %vm998_vm8, %v1042_v23 }
 0x46c   : > { %v1030_v40 = vpop.permute.xlu0 %1029 }
 0x46d   : > { %v1031_v42 = vrot.slane %v1030_v40, 4 }
 0x46f   : > { %v1033_v47 = vsel %vm1032_vm5, %v1030_v40, %v1031_v42  ;;  %1550 = vrot.lane.b32.xlu2 %v2706_v21, %s3117_s18  ;;  %1548 = vrot.lane.b32.xlu1 %v2704_v24, %s3117_s18  ;;  %vm1278_vm5 = vcmask 488452  }
 0x470   : > { %1036 = vst.msk [vmem:[#allocation6] sm:$0xf] %vm3118_vm11, %v1033_v47 }
 0x471   : > { %v1268_v44 = vpop.permute.xlu2 %1267  ;;  %v1050_v51 = vpop.permute.xlu1 %1049 }
 0x472   : > { %1508 = vrot.lane.b32.xlu0 %v2696_v18, %s2308_s28  ;;  %s3139_s28 = smov 66  }
 0x474   : > { %v1046_v54 = vpop.permute.xlu0 %1045 }
 0x475   : > { %1048 = vst.msk [vmem:[#allocation6 + $0x4] sm:$0xf] %vm3124_vm6, %v1046_v54  ;;  %vm1532_vm6 = vcmask 687104  }
 0x476   : > { %1052 = vst.msk [vmem:[#allocation6 + $0x4] sm:$0xf] %vm3123_vm2, %v1050_v51  ;;  %vm1445_vm2 = vcmask 719872  }
 0x477   : > { %1056 = vst.msk [vmem:[#allocation6 + $0x4] sm:$0xf] %vm3122_vm3, %v1054_v26  ;;  %1552 = vrot.lane.b32.xlu2 %v2708_v13, %s3117_s18  ;;  %1571 = vrot.lane.b32.xlu1 %v2712_v29, %s2311_s16  ;;  %s2313_s18 = smov 64   ;;  %vm1301_vm3 = vcmask 490502  }
 0x478   : > { %v1757_v26 = vld.sshfl [vmem:[#allocation1 + $0x10] sm:$0xff pattern:$0x73625140] }
 0x479   : > { %v2856_v55 = vpop.permute.xlu2 %1309  ;;  %v1065_v48 = vpop.permute.xlu1 %1064 }
 0x47a   : > { %v1066_v57 = vrot.slane %v1065_v48, 4  ;;  %1528 = vrot.lane.b32.xlu0 %v2700_v63, %s2309_s22 }
 0x47c   : > { %v1068_v58 = vsel %vm1067_vm14, %v1065_v48, %v1066_v57  ;;  %v1058_v60 = vpop.permute.xlu0 %1057  ;;  %vm3141_vm14 = vmmov %vm3140_vm15 }
 0x47d   : > { %1060 = vst.msk [vmem:[#allocation6 + $0x4] sm:$0xf] %vm3120_vm13, %v1058_v60  ;;  %vm1488_vm13 = vcmask 703488  }
 0x47e   : > { %1070 = vst.msk [vmem:[#allocation6 + $0x4] sm:$0xf] %vm3119_vm9, %v1068_v58  ;;  %vm1380_vm9 = vcmask 867328  }
 0x47f   : > { %1074 = vst.msk [vmem:[#allocation6 + $0x4] sm:$0xf] %vm3118_vm11, %v1072_v33  ;;  %1591 = vrot.lane.b32.xlu2 %v2716_v50, %s3139_s28  ;;  %1595 = vrot.lane.b32.xlu1 %v2720_v59, %s3139_s28  ;;  %vm1358_vm11 = vcmask 875520  }
 0x481   : > { %v2867_v61 = vpop.permute.xlu2 %1333  ;;  %v1244_v0 = vpop.permute.xlu1 %1243 }
 0x482   : > { %v1249_v3 = vsel %vm760_vm4, %v1244_v0, %v1246_v36  ;;  %1569 = vrot.lane.b32.xlu0 %v2710_v25, %s2311_s16 }
 0x483   : > { %1254 = vst [vmem:[#allocation5] sm:$0xc] %v1249_v3 }
 0x484   : > { %v2871_v5 = vpop.permute.xlu0 %1079 }
 0x487   : > { %1615 = vrot.lane.b32.xlu2 %v2728_v39, %s2312_s23  ;;  %1613 = vrot.lane.b32.xlu1 %v2726_v17, %s2312_s23 }
 0x489   : > { %v2875_v6 = vpop.permute.xlu2 %1374  ;;  %v1266_v30 = vpop.permute.xlu1 %1265 }
 0x48a   : > { %v1271_v10 = vsel %vm3140_vm15, %v1266_v30, %v1268_v44  ;;  %1573 = vrot.lane.b32.xlu0 %v2714_v35, %s2311_s16  ;;  %s2314_s16 = smov 48   ;;  %vm3121_vm15 = vcmask 850944  }
 0x48b   : > { %1276 = vst [vmem:[#allocation5] sm:$0x30] %v1271_v10 }
 0x48c   : > { %v1248_v11 = vpop.permute.xlu0 %1247 }
 0x48d   : > { %v1250_v52 = vsel %vm760_vm4, %v1246_v36, %v1248_v11  ;;  %1257 = vst.msk [vmem:[#allocation5 + $0x10] sm:$0xc] %vm1256_vm0, %v1248_v11  ;;  %vm1293_vm4 = vcmask 1022976  }
 0x48e   : > { %1255 = vst [vmem:[#allocation5 + $0x8] sm:$0xc] %v1250_v52 }
 0x48f   : > { %1617 = vrot.lane.b32.xlu2 %v2730_v2, %s2312_s23  ;;  %1637 = vrot.lane.b32.xlu1 %v2737_v12, %s2313_s18  ;;  %s3142_s23 = smov 47  }
 0x491   : > { %v2883_v41 = vpop.permute.xlu2 %1395  ;;  %v2885_v18 = vpop.permute.xlu1 %1289 }
 0x492   : > { %1593 = vrot.lane.b32.xlu0 %v2718_v56, %s3139_s28  ;;  %s3144_s28 = smov 45  }
 0x494   : > { %v1270_v53 = vpop.permute.xlu0 %1269 }
 0x495   : > { %v1272_v63 = vsel %vm3141_vm14, %v1268_v44, %v1270_v53  ;;  %1279 = vst.msk [vmem:[#allocation5 + $0x10] sm:$0x30] %vm1278_vm5, %v1270_v53  ;;  %vm1315_vm14 = vcmask 1014784  }
 0x496   : > { %1277 = vst [vmem:[#allocation5 + $0x8] sm:$0x30] %v1272_v63 }
 0x497   : > { %1657 = vrot.lane.b32.xlu2 %v2748_v37, %s2314_s16  ;;  %1661 = vrot.lane.b32.xlu1 %v2752_v32, %s2314_s16 }
 0x499   : > { %v1420_v2 = vpop.permute.xlu2 %1419  ;;  %v1332_v4 = vpop.permute.xlu1 %1331 }
 0x49a   : > { %v1337_v24 = vsel %vm850_vm10, %v1332_v4, %v2867_v61  ;;  %1635 = vrot.lane.b32.xlu0 %v2735_v9, %s2313_s18 }
 0x49b   : > { %1342 = vst [vmem:[#allocation5 + $0x18] sm:$0xc] %v1337_v24 }
 0x49c   : > { %v1288_v21 = vpop.permute.xlu0 %1287 }
 0x49d   : > { %v1294_v13 = vsel %vm1293_vm4, %v1288_v21, %v2885_v18 }
 0x49e   : > { %1299 = vst [vmem:[#allocation5] sm:$0xc0] %v1294_v13 }
 0x49f   : > { %1685 = vrot.lane.b32.xlu2 %v2762_v43, %s3142_s23  ;;  %1683 = vrot.lane.b32.xlu1 %v2760_v1, %s3142_s23 }
 0x4a1   : > { %v1422_v32 = vpop.permute.xlu2 %1421  ;;  %v2904_v25 = vpop.permute.xlu1 %1354 }
 0x4a2   : > { %v1425_v29 = vsel %vm3121_vm15, %v1420_v2, %v1422_v32  ;;  %1431 = vst.msk [vmem:[#allocation5 + $0x40] sm:$0xc] %vm1256_vm0, %v1422_v32  ;;  %1639 = vrot.lane.b32.xlu0 %v2739_v19, %s2313_s18  ;;  %s3143_s18 = smov 46  }
 0x4a3   : > { %1430 = vst [vmem:[#allocation5 + $0x38] sm:$0xc] %v1425_v29 }
 0x4a4   : > { %v2909_v35 = vpop.permute.xlu0 %1311 }
 0x4a5   : > { %v1316_v50 = vsel %vm1315_vm14, %v2856_v55, %v2909_v35  ;;  %v3146_v55 = vld [vmem:[#allocation13_spill] sm:$0xff] }
 0x4a6   : > { %1321 = vst [vmem:[#allocation5 + $0x18] sm:$0x3] %v1316_v50 }
 0x4a7   : > { %1687 = vrot.lane.b32.xlu2 %v2768_v45, %s3142_s23  ;;  %1689 = vrot.lane.b32.xlu1 %v2770_v7, %s3142_s23  ;;  %s2317_s23 = smov 76  }
 0x4a9   : > { %v2918_v56 = vpop.permute.xlu2 %1461  ;;  %v1400_v59 = vpop.permute.xlu1 %1399 }
 0x4aa   : > { %1409 = vst.msk [vmem:[#allocation5 + $0x40] sm:$0x3] %vm1234_vm12, %v1400_v59  ;;  %1659 = vrot.lane.b32.xlu0 %v2750_v62, %s2314_s16 }
 0x4ac   : > { %v1353_v17 = vpop.permute.xlu0 %1352 }
 0x4ad   : > { %v1359_v39 = vsel %vm1358_vm11, %v1353_v17, %v2904_v25 }
 0x4ae   : > { %1364 = vst [vmem:[#allocation5 + $0x18] sm:$0x30] %v1359_v39 }
 0x4af   : > { %1715 = vrot.lane.b32.xlu2 %v2784_v22, %s3143_s18  ;;  %1711 = vrot.lane.b32.xlu1 %v2780_v15, %s3143_s18  ;;  %v1756_v15 = vld.sshfl [vmem:[#allocation1 + $0x8] sm:$0xff pattern:$0x73625140]  ;;  %v1755_v22 = vld.sshfl [vmem:[#allocation1] sm:$0xff pattern:$0x73625140] }
 0x4b1   : > { %v1485_v9 = vpop.permute.xlu2 %1484  ;;  %v1418_v12 = vpop.permute.xlu1 %1417 }
 0x4b2   : > { %v1424_v19 = vsel %vm3121_vm15, %v1418_v12, %v1420_v2  ;;  %1663 = vrot.lane.b32.xlu0 %v2754_v49, %s2314_s16  ;;  %vm1401_vm15 = vcmask 859136   ;;  %s2315_s16 = smov 44  }
 0x4b3   : > { %1429 = vst [vmem:[#allocation5 + $0x30] sm:$0xc] %v1424_v19 }
 0x4b4   : > { %v2932_v62 = vpop.permute.xlu0 %1376 }
 0x4b5   : > { %v1381_v8 = vsel %vm1380_vm9, %v2875_v6, %v2932_v62 }
 0x4b6   : > { %1386 = vst [vmem:[#allocation5 + $0x18] sm:$0xc0] %v1381_v8 }
 0x4b7   : > { %1735 = vrot.lane.b32.xlu2 %v2798_v31, %s3144_s28  ;;  %1739 = vrot.lane.b32.xlu1 %v2800_v46, %s3144_s28 }
 0x4b9   : > { %v1487_v37 = vpop.permute.xlu2 %1486  ;;  %v1442_v1 = vpop.permute.xlu1 %1441 }
 0x4ba   : > { %v1490_v49 = vsel %vm1488_vm13, %v1485_v9, %v1487_v37  ;;  %1496 = vst.msk [vmem:[#allocation5 + $0x58] sm:$0x3] %vm1234_vm12, %v1487_v37  ;;  %1709 = vrot.lane.b32.xlu0 %v2778_v14, %s3143_s18 }
 0x4bb   : > { %1495 = vst [vmem:[#allocation5 + $0x50] sm:$0x3] %v1490_v49 }
 0x4bc   : > { %v1398_v43 = vpop.permute.xlu0 %1397 }
 0x4bd   : > { %v1402_v45 = vsel %vm1401_vm15, %v2883_v41, %v1398_v43  ;;  %v1403_v7 = vsel %vm1401_vm15, %v1398_v43, %v1400_v59  ;;  %vm1554_vm15 = vcmask 556032  }
 0x4be   : > { %1407 = vst [vmem:[#allocation5 + $0x30] sm:$0x3] %v1402_v45 }
 0x4bf   : > { %1408 = vst [vmem:[#allocation5 + $0x38] sm:$0x3] %v1403_v7  ;;  %1761 = vrot.lane.b32.xlu2 %v1756_v15, %s2315_s16  ;;  %1759 = vrot.lane.b32.xlu1 %v1755_v22, %s2315_s16 }
 0x4c1   : > { %v2946_v31 = vpop.permute.xlu2 %1526  ;;  %v1466_v46 = vpop.permute.xlu1 %1465 }
 0x4c2   : > { %1475 = vst.msk [vmem:[#allocation5 + $0x40] sm:$0xc0] %vm1301_vm3, %v1466_v46  ;;  %1713 = vrot.lane.b32.xlu0 %v2782_v20, %s3143_s18  ;;  %v1758_v20 = vld.sshfl [vmem:[#allocation1 + $0x18] sm:$0xff pattern:$0x73625140]  ;;  %s2318_s18 = smov 80  }
 0x4c4   : > { %v1440_v14 = vpop.permute.xlu0 %1439 }
 0x4c5   : > { %v1446_v23 = vsel %vm1445_vm2, %v1440_v14, %v1442_v1 }
 0x4c6   : > { %1451 = vst [vmem:[#allocation5 + $0x30] sm:$0x30] %v1446_v23 }
 0x4c7   : > { %1313 = vrot.lane.b32.xlu2 %v2642_v34, %s2295_s19  ;;  %1763 = vrot.lane.b32.xlu1 %v1757_v26, %s2315_s16 }
 0x4c9   : > { %v1551_v33 = vpop.permute.xlu2 %1550  ;;  %v1483_v36 = vpop.permute.xlu1 %1482 }
 0x4ca   : > { %v1489_v38 = vsel %vm1488_vm13, %v1483_v36, %v1485_v9  ;;  %1737 = vrot.lane.b32.xlu0 %v2792_v16, %s3144_s28  ;;  %vm1467_vm13 = vcmask 711680  }
 0x4cb   : > { %1494 = vst [vmem:[#allocation5 + $0x48] sm:$0x3] %v1489_v38 }
 0x4cc   : > { %v1444_v40 = vpop.permute.xlu0 %1443 }
 0x4cd   : > { %v1447_v42 = vsel %vm1445_vm2, %v1442_v1, %v1444_v40  ;;  %1453 = vst.msk [vmem:[#allocation5 + $0x40] sm:$0x30] %vm1278_vm5, %v1444_v40  ;;  %vm1510_vm2 = vcmask 695296  }
 0x4ce   : > { %1452 = vst [vmem:[#allocation5 + $0x38] sm:$0x30] %v1447_v42 }
 0x4cf   : > { %1765 = vrot.lane.b32.xlu2 %v1758_v20, %s2315_s16  ;;  %1291 = vrot.lane.b32.xlu1 %v2636_v28, %s2303_s24  ;;  %v3145_v28 = vld [vmem:[#allocation14_spill] sm:$0xff]  ;;  %s3155_s16 = smov 104  }
 0x4d1   : > { %v1553_v34 = vpop.permute.xlu2 %1552  ;;  %v1507_v47 = vpop.permute.xlu1 %1506 }
 0x4d2   : > { %v1556_v44 = vsel %vm1554_vm15, %v1551_v33, %v1553_v34  ;;  %1562 = vst.msk [vmem:[#allocation5 + $0x58] sm:$0xc0] %vm1301_vm3, %v1553_v34  ;;  %1741 = vrot.lane.b32.xlu0 %v2794_v27, %s3144_s28  ;;  %v3147_v27 = vld [vmem:[#allocation12_spill] sm:$0xff]  ;;  %s2319_s28 = smov 72  }
 0x4d3   : > { %1561 = vst [vmem:[#allocation5 + $0x50] sm:$0xc0] %v1556_v44 }
 0x4d4   : > { %v1464_v16 = vpop.permute.xlu0 %1463 }
 0x4d5   : > { %v1468_v51 = vsel %vm1467_vm13, %v2918_v56, %v1464_v16  ;;  %v1469_v54 = vsel %vm1467_vm13, %v1464_v16, %v1466_v46  ;;  %vm1619_vm13 = vcmask 531456  }
 0x4d6   : > { %1473 = vst [vmem:[#allocation5 + $0x30] sm:$0xc0] %v1468_v51 }
 0x4d7   : > { %1474 = vst [vmem:[#allocation5 + $0x38] sm:$0xc0] %v1469_v54  ;;  %1378 = vrot.lane.b32.xlu2 %v3145_v28, %s2301_s30  ;;  %1356 = vrot.lane.b32.xlu1 %v3146_v55, %s2304_s14  ;;  %s2316_s14 = smov 96  }
 0x4d9   : > { %v1592_v48 = vpop.permute.xlu2 %1591  ;;  %v1531_v57 = vpop.permute.xlu1 %1530 }
 0x4da   : > { %1540 = vst.msk [vmem:[#allocation5 + $0x58] sm:$0x30] %vm1278_vm5, %v1531_v57  ;;  %1335 = vrot.lane.b32.xlu0 %v3147_v27, %s2274_s25 }
 0x4dc   : > { %v1505_v58 = vpop.permute.xlu0 %1504 }
 0x4dd   : > { %v1511_v60 = vsel %vm1510_vm2, %v1505_v58, %v1507_v47 }
 0x4de   : > { %1516 = vst [vmem:[#allocation5 + $0x48] sm:$0xc] %v1511_v60 }
 0x4e1   : > { %v1616_v0 = vpop.permute.xlu2 %1615  ;;  %v1549_v3 = vpop.permute.xlu1 %1548 }
 0x4e2   : > { %v1555_v6 = vsel %vm1554_vm15, %v1549_v3, %v1551_v33  ;;  %vm1575_vm15 = vcmask 547840  }
 0x4e3   : > { %1560 = vst [vmem:[#allocation5 + $0x48] sm:$0xc0] %v1555_v6 }
 0x4e4   : > { %v1509_v30 = vpop.permute.xlu0 %1508 }
 0x4e5   : > { %v1512_v10 = vsel %vm1510_vm2, %v1507_v47, %v1509_v30  ;;  %1518 = vst.msk [vmem:[#allocation5 + $0x58] sm:$0xc] %vm1256_vm0, %v1509_v30  ;;  %vm1597_vm2 = vcmask 539648  }
 0x4e6   : > { %1517 = vst [vmem:[#allocation5 + $0x50] sm:$0xc] %v1512_v10 }
 0x4e9   : > { %v1618_v11 = vpop.permute.xlu2 %1617  ;;  %v1572_v52 = vpop.permute.xlu1 %1571 }
 0x4ea   : > { %v1621_v41 = vsel %vm1619_vm13, %v1616_v0, %v1618_v11  ;;  %1627 = vst.msk [vmem:[#allocation5 + $0x70] sm:$0x30] %vm1278_vm5, %v1618_v11 }
 0x4eb   : > { %1626 = vst [vmem:[#allocation5 + $0x68] sm:$0x30] %v1621_v41 }
 0x4ec   : > { %v1529_v53 = vpop.permute.xlu0 %1528 }
 0x4ed   : > { %v1533_v63 = vsel %vm1532_vm6, %v2946_v31, %v1529_v53  ;;  %v1534_v2 = vsel %vm1532_vm6, %v1529_v53, %v1531_v57  ;;  %vm1691_vm6 = vcmask 384000  }
 0x4ee   : > { %1538 = vst [vmem:[#allocation5 + $0x48] sm:$0x30] %v1533_v63 }
 0x4ef   : > { %1539 = vst [vmem:[#allocation5 + $0x50] sm:$0x30] %v1534_v2 }
 0x4f1   : > { %v1658_v4 = vpop.permute.xlu2 %1657  ;;  %v1596_v24 = vpop.permute.xlu1 %1595 }
 0x4f2   : > { %1605 = vst.msk [vmem:[#allocation5 + $0x70] sm:$0xc] %vm1256_vm0, %v1596_v24 }
 0x4f4   : > { %v1570_v21 = vpop.permute.xlu0 %1569 }
 0x4f5   : > { %v1576_v13 = vsel %vm1575_vm15, %v1570_v21, %v1572_v52 }
 0x4f6   : > { %1581 = vst [vmem:[#allocation5 + $0x60] sm:$0x3] %v1576_v13 }
 0x4f9   : > { %v1686_v32 = vpop.permute.xlu2 %1685  ;;  %v1614_v29 = vpop.permute.xlu1 %1613 }
 0x4fa   : > { %v1620_v50 = vsel %vm1619_vm13, %v1614_v29, %v1616_v0  ;;  %vm1641_vm13 = vcmask 523264  }
 0x4fb   : > { %1625 = vst [vmem:[#allocation5 + $0x60] sm:$0x30] %v1620_v50 }
 0x4fc   : > { %v1574_v56 = vpop.permute.xlu0 %1573 }
 0x4fd   : > { %v1577_v59 = vsel %vm1575_vm15, %v1572_v52, %v1574_v56  ;;  %1583 = vst.msk [vmem:[#allocation5 + $0x70] sm:$0x3] %vm1234_vm12, %v1574_v56  ;;  %vm1665_vm15 = vcmask 392192  }
 0x4fe   : > { %1582 = vst [vmem:[#allocation5 + $0x68] sm:$0x3] %v1577_v59 }
 0x501   : > { %v1688_v17 = vpop.permute.xlu2 %1687  ;;  %v1638_v39 = vpop.permute.xlu1 %1637 }
 0x502   : > { %v1693_v9 = vsel %vm1691_vm6, %v1686_v32, %v1688_v17 }
 0x503   : > { %1699 = vst [vmem:[#allocation5 + $0x80] sm:$0xc] %v1693_v9 }
 0x504   : > { %v1594_v12 = vpop.permute.xlu0 %1593 }
 0x505   : > { %v1598_v19 = vsel %vm1597_vm2, %v1592_v48, %v1594_v12  ;;  %v1599_v8 = vsel %vm1597_vm2, %v1594_v12, %v1596_v24  ;;  %vm1767_vm2 = vcmask 359424   ;;  %v1784_v12 = vld [vmem:[#allocation5 + $0x30] sm:$0xff] }
 0x506   : > { %1603 = vst [vmem:[#allocation5 + $0x60] sm:$0xc] %v1598_v19  ;;  %v1788_v19 = vld [vmem:[#allocation5 + $0x50] sm:$0xff] }
 0x507   : > { %1604 = vst [vmem:[#allocation5 + $0x68] sm:$0xc] %v1599_v8 }
 0x509   : > { %v1716_v37 = vpop.permute.xlu2 %1715  ;;  %v1662_v1 = vpop.permute.xlu1 %1661 }
 0x50c   : > { %v1636_v49 = vpop.permute.xlu0 %1635 }
 0x50d   : > { %v1642_v43 = vsel %vm1641_vm13, %v1636_v49, %v1638_v39  ;;  %v1781_v49 = vld [vmem:[#allocation5 + $0x18] sm:$0xff] }
 0x50e   : > { %1647 = vst [vmem:[#allocation5 + $0x60] sm:$0xc0] %v1642_v43 }
 0x511   : > { %v1736_v45 = vpop.permute.xlu2 %1735  ;;  %v1684_v7 = vpop.permute.xlu1 %1683 }
 0x512   : > { %v1692_v15 = vsel %vm1691_vm6, %v1684_v7, %v1686_v32 }
 0x513   : > { %1698 = vst [vmem:[#allocation5 + $0x78] sm:$0xc] %v1692_v15  ;;  %v1778_v15 = vld [vmem:[#allocation5] sm:$0xff] }
 0x514   : > { %v1640_v22 = vpop.permute.xlu0 %1639 }
 0x515   : > { %v1643_v31 = vsel %vm1641_vm13, %v1638_v39, %v1640_v22  ;;  %1649 = vst.msk [vmem:[#allocation5 + $0x70] sm:$0xc0] %vm1301_vm3, %v1640_v22  ;;  %v1790_v32 = vld [vmem:[#allocation5 + $0x60] sm:$0xff]  ;;  %vm3160_vm13 = vcmask 781952  }
 0x516   : > { %1648 = vst [vmem:[#allocation5 + $0x68] sm:$0xc0] %v1643_v31 }
 0x519   : > { %v1762_v46 = vpop.permute.xlu2 %1761  ;;  %v1690_v14 = vpop.permute.xlu1 %1689 }
 0x51a   : > { %v1694_v23 = vsel %vm1691_vm6, %v1688_v17, %v1690_v14  ;;  %vm1717_vm6 = vcmask 375808   ;;  %v1787_v17 = vld [vmem:[#allocation5 + $0x48] sm:$0xff]  ;;  %v1789_v14 = vld [vmem:[#allocation5 + $0x58] sm:$0xff] }
 0x51b   : > { %1700 = vst.msk [vmem:[#allocation5 + $0x88] sm:$0xc] %vm1256_vm0, %v1694_v23  ;;  %v1777_v23 = vld [vmem:[%s3091_s11] sm:$0x3] }
 0x51c   : > { %v1660_v26 = vpop.permute.xlu0 %1659  ;;  %v1792_v22 = vld [vmem:[#allocation5 + $0x70] sm:$0xff] }
 0x51d   : > { %v1666_v33 = vsel %vm1665_vm15, %v1658_v4, %v1660_v26  ;;  %v1667_v36 = vsel %vm1665_vm15, %v1660_v26, %v1662_v1  ;;  %v1791_v59 = vld [vmem:[#allocation5 + $0x68] sm:$0xff]  ;;  %v1786_v26 = vld [vmem:[#allocation5 + $0x40] sm:$0xff] }
 0x51e   : > { %1672 = vst [vmem:[#allocation5 + $0x78] sm:$0x3] %v1666_v33  ;;  %v1804_v33 = vpack.c.bf16 %v1789_v14, %v1786_v26 }
 0x51f   : > { %1673 = vst [vmem:[#allocation5 + $0x80] sm:$0x3] %v1667_v36 }
 0x521   : > { %v1314_v38 = vpop.permute.xlu2 %1313  ;;  %v1712_v40 = vpop.permute.xlu1 %1711 }
 0x522   : > { %v1317_v42 = vsel %vm1315_vm14, %v2909_v35, %v1314_v38  ;;  %1323 = vst.msk [vmem:[#allocation5 + $0x28] sm:$0x3] %vm1234_vm12, %v1314_v38 }
 0x523   : > { %1322 = vst [vmem:[#allocation5 + $0x20] sm:$0x3] %v1317_v42 }
 0x524   : > { %v1664_v20 = vpop.permute.xlu0 %1663 }
 0x525   : > { %v1668_v34 = vsel %vm1665_vm15, %v1662_v1, %v1664_v20  ;;  %v1785_v1 = vld [vmem:[#allocation5 + $0x38] sm:$0xff]  ;;  %vm3161_vm15 = vcmask 913152  }
 0x526   : > { %1674 = vst.msk [vmem:[#allocation5 + $0x88] sm:$0x3] %vm1234_vm12, %v1668_v34  ;;  %v3012_v34 = vld [vmem:[#allocation6] sm:$0xff] }
 0x529   : > { %v1766_v47 = vpop.permute.xlu2 %1765  ;;  %v1740_v44 = vpop.permute.xlu1 %1739 }
 0x52c   : > { %v1710_v16 = vpop.permute.xlu0 %1709 }
 0x52d   : > { %v1718_v51 = vsel %vm1717_vm6, %v1710_v16, %v1712_v40 }
 0x52e   : > { %1724 = vst [vmem:[#allocation5 + $0x78] sm:$0x30] %v1718_v51 }
 0x531   : > { %v1379_v54 = vpop.permute.xlu2 %1378  ;;  %v1760_v28 = vpop.permute.xlu1 %1759 }
 0x532   : > { %v1382_v55 = vsel %vm1380_vm9, %v2932_v62, %v1379_v54  ;;  %1388 = vst.msk [vmem:[#allocation5 + $0x28] sm:$0xc0] %vm1301_vm3, %v1379_v54  ;;  %v1768_v35 = vsel %vm1767_vm2, %v1760_v28, %v1762_v46  ;;  %vm3148_vm9 = vcmask 367616  }
 0x533   : > { %1387 = vst [vmem:[#allocation5 + $0x20] sm:$0xc0] %v1382_v55  ;;  %vm3149_vm14 = vmmov %vm3148_vm9 }
 0x534   : > { %1774 = vst [vmem:[#allocation5 + $0x90] sm:$0x3] %v1768_v35  ;;  %v1714_v48 = vpop.permute.xlu0 %1713 }
 0x535   : > { %v1719_v57 = vsel %vm1717_vm6, %v1712_v40, %v1714_v48  ;;  %v1720_v27 = vsel %vm1717_vm6, %v1714_v48, %v1716_v37  ;;  %v1802_v37 = vpack.c.bf16 %v1787_v17, %v1784_v12  ;;  %v1932_v48 = vld [vmem:[%s3092_s12] sm:$0xf]  ;;  %vm3162_vm6 = vcmask 1044352  }
 0x536   : > { %1725 = vst [vmem:[#allocation5 + $0x80] sm:$0x30] %v1719_v57  ;;  %v1999_v57 = vld [vmem:[%s3093_s13 + $0x8] sm:$0xf] }
 0x537   : > { %1726 = vst.msk [vmem:[#allocation5 + $0x88] sm:$0x30] %vm1278_vm5, %v1720_v27  ;;  %v1966_v27 = vld [vmem:[%s3093_s13 + $0x4] sm:$0xf] }
 0x539   : > { %v1764_v58 = vpop.permute.xlu1 %1763 }
 0x53a   : > { %v1769_v60 = vsel %vm1767_vm2, %v1762_v46, %v1764_v58  ;;  %v1770_v0 = vsel %vm1767_vm2, %v1764_v58, %v1766_v47  ;;  %v1944_v58 = vld [vmem:[%s3093_s13] sm:$0xf] }
 0x53b   : > { %1775 = vst [vmem:[#allocation5 + $0x98] sm:$0x3] %v1769_v60  ;;  %v1796_v3 = vld [vmem:[#allocation5 + $0x90] sm:$0x3] }
 0x53c   : > { %1776 = vst.msk [vmem:[#allocation5 + $0xa0] sm:$0x3] %vm1234_vm12, %v1770_v0  ;;  %v1738_v6 = vpop.permute.xlu0 %1737  ;;  %v1808_v62 = vpack.c.bf16 %v1796_v3, %v1796_v3  ;;  %vm3150_vm12 = vmmov %vm3148_vm9  ;;  %v2065_v60 = vld [vmem:[#allocation7] sm:$0x1] }
 0x53d   : > { %v1743_v30 = vsel %vm3148_vm9, %v1736_v45, %v1738_v6  ;;  %v1744_v10 = vsel %vm3149_vm14, %v1738_v6, %v1740_v44  ;;  %v1803_v45 = vpack.c.bf16 %v1788_v19, %v1785_v1  ;;  %v2032_v0 = vld [vmem:[%s3093_s13 + $0xc] sm:$0xf] }
 0x53e   : > { %1749 = vst [vmem:[#allocation5 + $0x78] sm:$0xc0] %v1743_v30  ;;  %v1816_v11 = vsel %vm564_vm7, %v1808_v62, 0 }
 0x53f   : > { %1750 = vst [vmem:[#allocation5 + $0x80] sm:$0xc0] %v1744_v10  ;;  %1828 = vmatpush.bf16.msra.mxu3 %v1816_v11 }
 0x541   : > { %v1292_v52 = vpop.permute.xlu1 %1291 }
 0x542   : > { %v1295_v41 = vsel %vm1293_vm4, %v2885_v18, %v1292_v52  ;;  %1302 = vst.msk [vmem:[#allocation5 + $0x10] sm:$0xc0] %vm1301_vm3, %v1292_v52  ;;  %v1797_v53 = vld [vmem:[#allocation5 + $0x98] sm:$0x3]  ;;  %vm3159_vm4 = vcmask 650752  }
 0x543   : > { %1300 = vst [vmem:[#allocation5 + $0x8] sm:$0xc0] %v1295_v41  ;;  %v1809_v63 = vpack.c.bf16 %v1797_v53, %v1797_v53  ;;  %v1798_v2 = vld [vmem:[#allocation5 + $0xa0] sm:$0x3]  ;;  %vm3165_vm14 = vmmov %vm3159_vm4 }
 0x544   : > { %v1742_v4 = vpop.permute.xlu0 %1741  ;;  %v1810_v24 = vpack.c.bf16 %v1798_v2, %v1798_v2 }
 0x545   : > { %v1745_v21 = vsel %vm3150_vm12, %v1740_v44, %v1742_v4  ;;  %v1819_v13 = vsel %vm564_vm7, %v1809_v63, 0  ;;  %v1793_v29 = vld [vmem:[#allocation5 + $0x78] sm:$0xff]  ;;  %vm3166_vm12 = vmmov %vm3160_vm13 }
 0x546   : > { %1751 = vst.msk [vmem:[#allocation5 + $0x88] sm:$0xc0] %vm1301_vm3, %v1745_v21  ;;  %1841 = vmatpush.bf16.msrb.mxu0 %v1819_v13  ;;  %v1822_v50 = vsel %vm564_vm7, %v1810_v24, 0  ;;  %v1805_v18 = vpack.c.bf16 %v1793_v29, %v1790_v32  ;;  %v1794_v56 = vld [vmem:[#allocation5 + $0x80] sm:$0xff]  ;;  %vm1811_vm3 = vcmask 408576  }
 0x547   : > { %1854 = vmatpush.bf16.msrb.mxu1 %v1822_v50  ;;  %v1806_v39 = vpack.c.bf16 %v1794_v56, %v1791_v59  ;;  %v2320_v21 = vmov 839922192  }
 0x548   : > { %1829 = vmatpush.bf16.msra.mxu3 %v1805_v18  ;;  %v1082_v13 = vunpack.c.l.s4 %v2320_v21 }
 0x549   : > { %v1357_v9 = vpop.permute.xlu1 %1356 }
 0x54a   : > { %v1360_v8 = vsel %vm1358_vm11, %v2904_v25, %v1357_v9  ;;  %1366 = vst.msk [vmem:[#allocation5 + $0x28] sm:$0x30] %vm1278_vm5, %v1357_v9  ;;  %1842 = vmatpush.bf16.msrb.mxu0 %v1806_v39  ;;  %v1799_v25 = vpack.c.bf16 %v1781_v49, %v1778_v15  ;;  %v1779_v38 = vld [vmem:[#allocation5 + $0x8] sm:$0xff]  ;;  %vm3158_vm5 = vcmask 519552   ;;  %v1083_v32 = vunpack.c.0.s8 %v1082_v13 }
 0x54b   : > { %1365 = vst [vmem:[#allocation5 + $0x20] sm:$0x30] %v1360_v8  ;;  %vm3164_vm9 = vmmov %vm3158_vm5  ;;  %v3170_v8 = vld [vmem:[#allocation10_spill] sm:$0xff]  ;;  %v3172_v15 = vld [vmem:[#allocation11_spill] sm:$0xff] }
 0x54c   : > { %v1336_v43 = vpop.permute.xlu0 %1335  ;;  %1830 = vmatpush.bf16.msra.mxu3 %v1802_v37  ;;  %v1084_v18 = vperm.slane %v2871_v5, %v1083_v32  ;;  %v3171_v37 = vld [vmem:[#allocation9_spill] sm:$0xff] }
 0x54d   : > { %v1338_v7 = vsel %vm850_vm10, %v2867_v61, %v1336_v43  ;;  %1344 = vst.msk [vmem:[#allocation5 + $0x28] sm:$0xc] %vm1256_vm0, %v1336_v43  ;;  %v1795_v31 = vld [vmem:[#allocation5 + $0x88] sm:$0xff]  ;;  %v1780_v61 = vld [vmem:[#allocation5 + $0x10] sm:$0xff]  ;;  %vm3151_vm10 = vcmask 125952   ;;  %vm3157_vm0 = vcmask 388352   ;;  %v581_v1 = vadd.f32 %v3171_v37, %v3170_v8 }
 0x54e   : > { %1343 = vst [vmem:[#allocation5 + $0x20] sm:$0xc] %v1338_v7  ;;  %1843 = vmatpush.bf16.msrb.mxu0 %v1803_v45  ;;  %v1807_v46 = vpack.c.bf16 %v1795_v31, %v1792_v22  ;;  %vm3156_vm11 = vmmov %vm3151_vm10  ;;  %v1086_v17 = vadd.f32 %v1084_v18, %v3012_v34  ;;  %v598_v22 = vmax.f32 %v3172_v15, 0.0 }
 0x54f   : > { %vm3163_vm2 = vmmov %vm3157_vm0  ;;  %v597_v7 = vmax.f32 %v581_v1, 0.0 }
 0x550   : > { %1831 = vmatpush.bf16.msra.mxu3 %v1799_v25  ;;  %1855 = vmatpush.bf16.msrb.mxu1 %v1807_v46  ;;  %v1087_v12 = vmax.f32 %v1086_v17, 0.0 }
 0x553   : > { %2158 = vmatmul.msk.bf16.vlgmr.msra.gmra.mxu3 %vm1811_vm3, %v1777_v23 }
 0x554   : > { %1856 = vmatpush.bf16.msrb.mxu1 %v1804_v33  ;;  %v1783_v36 = vld [vmem:[#allocation5 + $0x28] sm:$0xff] }
 0x555   : > { %v1782_v40 = vld [vmem:[#allocation5 + $0x20] sm:$0xff]  ;;  %v1801_v42 = vpack.c.bf16 %v1783_v36, %v1780_v61 }
 0x556   : > { %v1800_v20 = vpack.c.bf16 %v1782_v40, %v1779_v38 }
 0x558   : > { %1844 = vmatpush.bf16.msrb.mxu0 %v1800_v20  ;;  %1857 = vmatpush.bf16.msrb.mxu1 %v1801_v42 }
 0x55b   : > { %2159 = vmatmul.msk.bf16.vlgmr.msrb.gmra.mxu0 %vm1811_vm3, %v1777_v23  ;;  %2160 = vmatmul.msk.bf16.vlgmr.msrb.gmra.mxu1 %vm1811_vm3, %v1777_v23  ;;  %vm3167_vm3 = vcmask 850944  }
 0x5d6   : > { %v1833_v47 = vpop.f32.mrf.mxu3 }
 0x5d7   : > { %1863 = vst.msk [vmem:[#allocation6] sm:$0xf] %vm3151_vm10, %v1833_v47  ;;  %vm3169_vm10 = vmmov %vm3162_vm6 }
 0x5d8   : > { %v1846_v44 = vpop.f32.mrf.mxu0  ;;  %v1859_v16 = vpop.f32.mrf.mxu1 }
 0x5d9   : > { %1906 = vrot.lane.b32.xlu1 %v1846_v44, %s2306_s17  ;;  %1902 = vrot.lane.b32.xlu2 %v1846_v44, %s2275_s26  ;;  %s3152_s26 = smov 112   ;;  %s3153_s17 = smov 120   ;;  %v1886_v55 = vrot.slane %v1846_v44, 4 }
 0x5da   : > { %1898 = vrot.lane.b32.xlu0 %v1846_v44, %s2316_s14 }
 0x5db   : > { %v1887_v35 = vsel %vm1027_vm1, %v1833_v47, %v1886_v55 }
 0x5de   : > { %v1835_v51 = vpop.f32.mrf.mxu3 }
 0x5e0   : > { %v1848_v54 = vpop.f32.mrf.mxu0  ;;  %v1861_v28 = vpop.f32.mrf.mxu1 }
 0x5e1   : > { %1910 = vrot.lane.b32.xlu1 %v1846_v44, %s2309_s22  ;;  %1919 = vrot.lane.b32.xlu2 %v1859_v16, %s2317_s23  ;;  %s3154_s22 = smov 68  }
 0x5e2   : > { %1914 = vrot.lane.b32.xlu0 %v1846_v44, %s2318_s18 }
 0x5e9   : > { %1894 = vrot.lane.b32.xlu1 %v1846_v44, %s2302_s27  ;;  %1873 = vrot.lane.b32.xlu2 %v1833_v47, %s2296_s29 }
 0x5ea   : > { %1923 = vrot.lane.b32.xlu0 %v1859_v16, %s2319_s28 }
 0x5f1   : > { %1865 = vrot.lane.b32.xlu1 %v1833_v47, %s2295_s19  ;;  %1877 = vrot.lane.b32.xlu2 %v1833_v47, %s3152_s26  ;;  %s2146_s26 = sshll.u32 %s3175_s21, 1 }
 0x5f2   : > { %1869 = vrot.lane.b32.xlu0 %v1833_v47, %s3153_s17 }
 0x5f9   : > { %1881 = vrot.lane.b32.xlu1 %v1833_v47, %s2274_s25  ;;  %1927 = vrot.lane.b32.xlu2 %v1859_v16, %s3154_s22 }
 0x5fa   : > { %1888 = vrot.lane.b32.xlu0 %v1887_v35, %s3155_s16  ;;  %s494_s16 = scalar_lea.vmem %s3095_s15, %s2146_s26 }
 0x601   : > { %1935 = vperm.xlu1 %2243, %v1932_v48   ;;  %2002 = vperm.xlu2 %2242, %v1999_v57   ;;  %v3173_v57 = vld [vmem:[#allocation8_spill] sm:$0xff] }
 0x602   : > { %1969 = vperm.xlu0 %2241, %v1966_v27  }
 0x609   : > { %1947 = vperm.xlu1 %2243, %v1944_v58   ;;  %2068 = vperm.xlu2 %2242, %v2065_v60  }
 0x60a   : > { %2035 = vperm.xlu0 %2241, %v2032_v0  }
 0x633   : > { %v1903_v3 = vpop.permute.xlu2 %1902 }
 0x63b   : > { %v1920_v6 = vpop.permute.xlu2 %1919 }
 0x643   : > { %v1874_v62 = vpop.permute.xlu2 %1873 }
 0x64b   : > { %v1907_v30 = vpop.permute.xlu1 %1906  ;;  %v1878_v11 = vpop.permute.xlu2 %1877 }
 0x64c   : > { %v1899_v10 = vpop.permute.xlu0 %1898 }
 0x64d   : > { %1901 = vst.msk [vmem:[#allocation6 + $0x4] sm:$0xf] %vm3156_vm11, %v1899_v10 }
 0x64e   : > { %1905 = vst.msk [vmem:[#allocation6 + $0x4] sm:$0xf] %vm998_vm8, %v1903_v3 }
 0x64f   : > { %1909 = vst.msk [vmem:[#allocation6 + $0x4] sm:$0xf] %vm3157_vm0, %v1907_v30 }
 0x653   : > { %v1911_v52 = vpop.permute.xlu1 %1910  ;;  %v1928_v2 = vpop.permute.xlu2 %1927 }
 0x654   : > { %1913 = vst.msk [vmem:[#allocation6 + $0x4] sm:$0xf] %vm3158_vm5, %v1911_v52  ;;  %v1915_v41 = vpop.permute.xlu0 %1914 }
 0x655   : > { %1917 = vst.msk [vmem:[#allocation6 + $0x4] sm:$0xf] %vm3159_vm4, %v1915_v41 }
 0x656   : > { %1922 = vst.msk [vmem:[#allocation6 + $0x4] sm:$0xf] %vm3160_vm13, %v1920_v6 }
 0x65b   : > { %v1895_v53 = vpop.permute.xlu1 %1894  ;;  %v2003_v31 = vpop.permute.xlu2 %2002 }
 0x65c   : > { %v1924_v63 = vpop.permute.xlu0 %1923  ;;  %v2007_v26 = vperm.slane %v2003_v31, %v1083_v32 }
 0x65d   : > { %1926 = vst.msk [vmem:[#allocation6 + $0x4] sm:$0xf] %vm3161_vm15, %v1924_v63 }
 0x65e   : > { %1930 = vst.msk [vmem:[#allocation6 + $0x4] sm:$0xf] %vm3162_vm6, %v1928_v2 }
 0x663   : > { %v1866_v4 = vpop.permute.xlu1 %1865 }
 0x664   : > { %1868 = vst.msk [vmem:[#allocation6] sm:$0xf] %vm998_vm8, %v1866_v4  ;;  %v1870_v24 = vpop.permute.xlu0 %1869  ;;  %vm3168_vm8 = vmmov %vm3161_vm15 }
 0x665   : > { %1872 = vst.msk [vmem:[#allocation6] sm:$0xf] %vm3163_vm2, %v1870_v24 }
 0x666   : > { %1876 = vst.msk [vmem:[#allocation6] sm:$0xf] %vm3164_vm9, %v1874_v62 }
 0x667   : > { %1880 = vst.msk [vmem:[#allocation6] sm:$0xf] %vm3165_vm14, %v1878_v11 }
 0x66b   : > { %v1882_v29 = vpop.permute.xlu1 %1881 }
 0x66c   : > { %1884 = vst.msk [vmem:[#allocation6] sm:$0xf] %vm3166_vm12, %v1882_v29  ;;  %v1889_v50 = vpop.permute.xlu0 %1888 }
 0x66d   : > { %v1890_v56 = vrot.slane %v1889_v50, 4 }
 0x66f   : > { %v1891_v59 = vsel %vm3167_vm3, %v1889_v50, %v1890_v56 }
 0x670   : > { %1893 = vst.msk [vmem:[#allocation6] sm:$0xf] %vm3168_vm8, %v1891_v59 }
 0x671   : > { %1897 = vst.msk [vmem:[#allocation6] sm:$0xf] %vm3169_vm10, %v1895_v53 }
 0x673   : > { %v1936_v39 = vpop.permute.xlu1 %1935 }
 0x674   : > { %v1970_v9 = vpop.permute.xlu0 %1969  ;;  %v1940_v49 = vperm.slane %v1936_v39, %v1083_v32 }
 0x675   : > { %v1974_v19 = vperm.slane %v1970_v9, %v1083_v32 }
 0x677   : > { %v1976_v43 = vmul.f32 %v1974_v19, %v1087_v12 }
 0x678   : > { %v1931_v45 = vld [vmem:[#allocation6] sm:$0xff] }
 0x679   : > { %v1942_v5 = vadd.f32 %v1940_v49, %v1931_v45  ;;  %1978 = vst [vmem:[#allocation1] ss:$2 sm:$0xff] %v1976_v43 }
 0x67b   : > { %v1943_v25 = vmax.f32 %v1942_v5, 0.0  ;;  %v1948_v46 = vpop.permute.xlu1 %1947 }
 0x67c   : > { %v1950_v14 = vmul.f32 %v1948_v46, %v597_v7  ;;  %v1951_v23 = vmul.f32 %v1948_v46, %v598_v22  ;;  %v2036_v42 = vpop.permute.xlu0 %2035 }
 0x67d   : > { %v2009_v33 = vmul.f32 %v2007_v26, %v1943_v25  ;;  %v2040_v54 = vperm.slane %v2036_v42, %v1083_v32 }
 0x67e   : > { %v1952_v61 = vsel %vm1027_vm1, %v1950_v14, 0.0  ;;  %v1959_v36 = vsel %vm1027_vm1, %v1951_v23, 0.0 }
 0x67f   : > { %v1953_v16 = vrot.slane %v1952_v61, 4  ;;  %v1960_v51 = vrot.slane %v1959_v36, 4  ;;  %v2042_v27 = vmul.f32 %v2040_v54, %v3173_v57 }
 0x680   : > { %v1979_v38 = vld.sshfl [vmem:[#allocation1] sm:$0xff pattern:$0x75316420]  ;;  %v1980_v40 = vld.sshfl [vmem:[#allocation1 + $0x8] sm:$0xff pattern:$0x75316420] }
 0x681   : > { %v1983_v20 = vsel %vm1027_vm1, %v1979_v38, 0.0  ;;  %v1990_v34 = vsel %vm1027_vm1, %v1980_v40, 0.0  ;;  %2011 = vst [vmem:[#allocation1] ss:$2 sm:$0xff] %v2009_v33  ;;  %v1954_v35 = vadd.f32 %v1953_v16, %v1952_v61  ;;  %v1961_v48 = vadd.f32 %v1960_v51, %v1959_v36  ;;  %v2069_v38 = vpop.permute.xlu2 %2068 }
 0x682   : > { %v1984_v47 = vrot.slane %v1983_v20, 4  ;;  %v1991_v44 = vrot.slane %v1990_v34, 4  ;;  %v2081_v51 = vlaneseq }
 0x683   : > { %v1955_v11 = vrot.slane %v1954_v35, 2  ;;  %v1962_v52 = vrot.slane %v1961_v48, 2 }
 0x684   : > { %v1985_v28 = vadd.f32 %v1984_v47, %v1983_v20  ;;  %v1992_v55 = vadd.f32 %v1991_v44, %v1990_v34  ;;  %v2071_v47 = vperm.slane %v2069_v38, 0 }
 0x685   : > { %v1956_v21 = vadd.f32 %v1955_v11, %v1954_v35  ;;  %v1963_v13 = vadd.f32 %v1962_v52, %v1961_v48 }
 0x686   : > { %v1986_v6 = vrot.slane %v1985_v28, 2  ;;  %v1993_v62 = vrot.slane %v1992_v55, 2 }
 0x687   : > { %v1957_v19 = vrot.slane %v1956_v21, 1  ;;  %v1964_v8 = vrot.slane %v1963_v13, 1 }
 0x688   : > { %v2012_v58 = vld.sshfl [vmem:[#allocation1] sm:$0xff pattern:$0x75316420]  ;;  %v2013_v60 = vld.sshfl [vmem:[#allocation1 + $0x8] sm:$0xff pattern:$0x75316420]  ;;  %v1987_v63 = vadd.f32 %v1986_v6, %v1985_v28  ;;  %v1994_v2 = vadd.f32 %v1993_v62, %v1992_v55 }
 0x689   : > { %v2016_v0 = vsel %vm1027_vm1, %v2012_v58, 0.0  ;;  %v2023_v3 = vsel %vm1027_vm1, %v2013_v60, 0.0  ;;  %2044 = vst [vmem:[#allocation1] ss:$2 sm:$0xff] %v2042_v27  ;;  %v1958_v22 = vadd.f32 %v1957_v19, %v1956_v21  ;;  %v1965_v31 = vadd.f32 %v1964_v8, %v1963_v13 }
 0x68a   : > { %v2017_v30 = vrot.slane %v2016_v0, 4  ;;  %v2024_v10 = vrot.slane %v2023_v3, 4  ;;  %v1988_v17 = vrot.slane %v1987_v63, 1  ;;  %v1995_v39 = vrot.slane %v1994_v2, 1 }
 0x68c   : > { %v2018_v41 = vadd.f32 %v2017_v30, %v2016_v0  ;;  %v2025_v53 = vadd.f32 %v2024_v10, %v2023_v3  ;;  %v1989_v45 = vadd.f32 %v1988_v17, %v1987_v63  ;;  %v1996_v5 = vadd.f32 %v1995_v39, %v1994_v2 }
 0x68e   : > { %v2019_v4 = vrot.slane %v2018_v41, 2  ;;  %v2026_v24 = vrot.slane %v2025_v53, 2  ;;  %v1997_v26 = vadd.f32 %v1989_v45, %v1958_v22  ;;  %v1998_v33 = vadd.f32 %v1996_v5, %v1965_v31 }
 0x690   : > { %v2020_v32 = vadd.f32 %v2019_v4, %v2018_v41  ;;  %v2027_v29 = vadd.f32 %v2026_v24, %v2025_v53  ;;  %v2045_v50 = vld.sshfl [vmem:[#allocation1] sm:$0xff pattern:$0x75316420]  ;;  %v2046_v18 = vld.sshfl [vmem:[#allocation1 + $0x8] sm:$0xff pattern:$0x75316420] }
 0x691   : > { %v2049_v56 = vsel %vm1027_vm1, %v2045_v50, 0.0  ;;  %v2056_v59 = vsel %vm1027_vm1, %v2046_v18, 0.0  ;;  %vm2083_vm1 = vcmp.lt.s32.totalorder %v2081_v51, 256 }
 0x692   : > { %v2050_v9 = vrot.slane %v2049_v56, 4  ;;  %v2057_v12 = vrot.slane %v2056_v59, 4  ;;  %v2021_v37 = vrot.slane %v2020_v32, 1  ;;  %v2028_v1 = vrot.slane %v2027_v29, 1 }
 0x694   : > { %v2051_v49 = vadd.f32 %v2050_v9, %v2049_v56  ;;  %v2058_v43 = vadd.f32 %v2057_v12, %v2056_v59  ;;  %v2022_v25 = vadd.f32 %v2021_v37, %v2020_v32  ;;  %v2029_v46 = vadd.f32 %v2028_v1, %v2027_v29 }
 0x696   : > { %v2052_v7 = vrot.slane %v2051_v49, 2  ;;  %v2059_v15 = vrot.slane %v2058_v43, 2  ;;  %v2030_v40 = vadd.f32 %v2022_v25, %v1997_v26  ;;  %v2031_v42 = vadd.f32 %v2029_v46, %v1998_v33 }
 0x698   : > { %v2053_v14 = vadd.f32 %v2052_v7, %v2051_v49  ;;  %v2060_v23 = vadd.f32 %v2059_v15, %v2058_v43 }
 0x69a   : > { %v2054_v61 = vrot.slane %v2053_v14, 1  ;;  %v2061_v36 = vrot.slane %v2060_v23, 1 }
 0x69c   : > { %v2055_v20 = vadd.f32 %v2054_v61, %v2053_v14  ;;  %v2062_v34 = vadd.f32 %v2061_v36, %v2060_v23 }
 0x69e   : > { %v2063_v44 = vadd.f32 %v2055_v20, %v2030_v40  ;;  %v2064_v16 = vadd.f32 %v2062_v34, %v2031_v42 }
 0x6a0   : > { %v2072_v54 = vadd.f32 %v2071_v47, %v2063_v44  ;;  %v2073_v28 = vadd.f32 %v2071_v47, %v2064_v16 }
 0x6a2   : > { %v2075_v55 = vmax.f32 %v2073_v28, 0.0  ;;  %v2074_v35 = vmax.f32 %v2072_v54, 0.0 }
 0x6a4   : > { %v2078_v48 = vrot.slane %v2075_v55, 7 }
 0x6a6   : > { %v2079_v57 = vsel %vm564_vm7, %v2074_v35, %v2078_v48 }
 0x6a7   : > { %2085 = vst.msk [vmem:[%s494_s16] sm:$0x3] %vm2083_vm1, %v2079_v57 }
 0x6a8 PF: > { %s27_s20 = sadd.s32 1, %s2250_s20  }
 0x6a9   : > { %p24_p4 = scmp.ge.s32.totalorder %s27_s20, 4  }
 0x6ab   :  { %26 = sbr.rel (!%p24_p4) target bundleno = 3 (0x3), region = 134 }

</bundles_post_ra>
